<compile_context>
chip_gen: v7x
topology: tpu7x:2x2x1
jax: 0.10.0
libtpu: 0.0.40
codegen_flags: <defaults>
</compile_context>

<pallas_src>
import functools

import jax
import jax.numpy as jnp
from jax import lax
from jax.experimental import pallas as pl
from jax.experimental.pallas import tpu as pltpu


# ----------------------------------------------------------------------------
# Model dimensions (synthetic, consistent small shapes)
# ----------------------------------------------------------------------------
LATENT_C = 4       # UNet in/out channels (SD latent channels)
MODEL_C = 32       # UNet hidden channels
CROSS_D = 32       # cross-attention / token dim
N_PT_TOK = 4       # point tokens from vpmatrix_points
N_IM_TOK = 4       # tokens from image_proj_model
IMG_EMB_D = 64     # CLIP image-embedding dim (synthetic)
H = W = 16
B = 2
LN_EPS = 1e-5


# ----------------------------------------------------------------------------
# Kernel 1: conditioning path (point tokens + image tokens + timestep MLP)
# ----------------------------------------------------------------------------
def _conditioning_kernel(vp_x_ref, img_ref, tsin_ref, mavg_ref,
                         vp_w1_ref, vp_b1_ref, vp_w2_ref, vp_b2_ref,
                         vp_g_ref, vp_bt_ref,
                         ip_w_ref, ip_b_ref, ip_g_ref, ip_bt_ref,
                         t_w1_ref, t_b1_ref, t_w2_ref, t_b2_ref, cib_ref,
                         ctx_ref, temb_ref, *, eps):
    f32 = jnp.float32
    mavg = mavg_ref[...]   # (n_tok*D, n_tok*D) block-diag averaging matrix

    def token_layernorm(y, g, b):
        # LayerNorm over each CROSS_D-lane token chunk: the block-diagonal
        # averaging matmul broadcasts per-token mean/var to all of its lanes,
        # so no lane-chunk slicing / reshapes are needed (MXU does the work).
        mu = jnp.dot(y, mavg, preferred_element_type=f32)
        var = jnp.dot((y - mu) ** 2, mavg, preferred_element_type=f32)
        return (y - mu) * lax.rsqrt(var + eps) * g + b

    # vpmatrix_points: MLP over flattened V|P matrices + per-token LayerNorm
    h = jnp.dot(vp_x_ref[...], vp_w1_ref[...],
                preferred_element_type=f32) + vp_b1_ref[...]
    h = h * jax.nn.sigmoid(h)                                   # SiLU
    pt = token_layernorm(
        jnp.dot(h, vp_w2_ref[...], preferred_element_type=f32) + vp_b2_ref[...],
        vp_g_ref[...], vp_bt_ref[...])                          # (B, 4*D)

    # image_proj_model: Linear + per-token LayerNorm (IP-Adapter style)
    ft = token_layernorm(
        jnp.dot(img_ref[...], ip_w_ref[...],
                preferred_element_type=f32) + ip_b_ref[...],
        ip_g_ref[...], ip_bt_ref[...])                          # (B, 4*D)

    # ctx = [point_tokens | feature_tokens]  (lane concat at 128 alignment)
    ctx_ref[...] = jnp.concatenate([pt, ft], axis=-1).astype(ctx_ref.dtype)

    # timestep MLP; conv_in bias is folded in here so the per-batch UNet kernel
    # only does a single broadcast add.
    t = jnp.dot(tsin_ref[...], t_w1_ref[...],
                preferred_element_type=f32) + t_b1_ref[...]
    t = t * jax.nn.sigmoid(t)
    temb_ref[...] = (jnp.dot(t, t_w2_ref[...], preferred_element_type=f32)
                     + t_b2_ref[...] + cib_ref[...]).astype(temb_ref.dtype)


# ----------------------------------------------------------------------------
# Kernel 2: fused UNet block (per-batch grid step)
#   conv_in + temb + SiLU -> cross-attn (q/kv/softmax/out-proj) + residual
#   -> in-kernel 3x3 conv_out over a zero-padded VMEM scratch
# ----------------------------------------------------------------------------
def _unet_kernel(cols_ref, ctx_ref, temb_ref,
                 w_in_ref, wq_ref, bq_ref, wkv_ref, bkv_ref, wo_ref, bo_ref,
                 w_out_ref, b_out_ref,
                 out_ref, pad_ref, *, scale):
    f32 = jnp.float32
    bf16 = jnp.bfloat16

    # --- conv_in (3x3, rows pre-im2col'd in the wrapper, bf16) + (bias+temb) + SiLU
    h = jnp.dot(cols_ref[0], w_in_ref[...],
                preferred_element_type=f32)                      # (HW, MODEL_C)
    h = h + temb_ref[0]                                          # temb already has conv_in bias
    h = h * jax.nn.sigmoid(h)                                    # SiLU (EUP), f32

    # --- cross-attention against the conditioning tokens + out-proj + residual
    ctx = ctx_ref[0]                                             # (T, CROSS_D) bf16
    q = jnp.dot(h.astype(bf16), wq_ref[...],
                preferred_element_type=f32) + bq_ref[...]        # (HW, D)
    kv = jnp.dot(ctx, wkv_ref[...],
                 preferred_element_type=f32) + bkv_ref[...]      # (T, 2D) fused k|v
    k = kv[:, :CROSS_D]
    v = kv[:, CROSS_D:]
    # q @ k^T via dot_general contracting last dims (no explicit transpose)
    s = lax.dot_general(q.astype(bf16), k.astype(bf16),
                        (((1,), (1,)), ((), ())),
                        preferred_element_type=f32) * scale      # (HW, T)
    m = jnp.max(s, axis=-1, keepdims=True)
    p = jnp.exp(s - m)
    p = p * pl.reciprocal(jnp.sum(p, axis=-1, keepdims=True), approx=True)
    attn = jnp.dot(p.astype(bf16), v.astype(bf16),
                   preferred_element_type=f32)                   # (HW, D)
    o = jnp.dot(attn.astype(bf16), wo_ref[...],
                preferred_element_type=f32) + bo_ref[...]        # (HW, MODEL_C)
    h = h + o                                                    # residual

    # --- conv_out (3x3 'same') as 9 accumulated taps on a padded VMEM tile
    pad_ref[...] = jnp.zeros((H + 2, W + 2, MODEL_C), f32)
    pad_ref[1:H + 1, 1:W + 1, :] = h.reshape(H, W, MODEL_C)
    acc = jnp.zeros((H * W, LATENT_C), f32)
    for di in range(3):
        for dj in range(3):
            tap = pad_ref[di:di + H, dj:dj + W, :].reshape(H * W, MODEL_C)
            acc = acc + jnp.dot(tap.astype(bf16), w_out_ref[di * 3 + dj],
                                preferred_element_type=f32)
    out_ref[0] = (acc + b_out_ref[...]).astype(out_ref.dtype)


# ----------------------------------------------------------------------------
# Plain-JAX glue
# ----------------------------------------------------------------------------
def timestep_embedding(t, dim):
    """Sinusoidal timestep embedding (diffusers-style). t: (B,) -> (B, dim)."""
    half = dim // 2
    freqs = jnp.exp(-jnp.log(10000.0) * jnp.arange(half, dtype=jnp.float32) / half)
    args = t.astype(jnp.float32)[:, None] * freqs[None, :]
    return jnp.concatenate([jnp.sin(args), jnp.cos(args)], axis=-1)


def im2col_3x3(x_nhwc):
    """3x3 'same' patches.  (B, H, W, C) -> (B, H*W, 9*C).  Tiny for conv_in."""
    Bn, Hh, Ww, C = x_nhwc.shape
    xp = jnp.pad(x_nhwc, ((0, 0), (1, 1), (1, 1), (0, 0)))
    patches = [xp[:, i:i + Hh, j:j + Ww, :] for i in range(3) for j in range(3)]
    cols = jnp.concatenate(patches, axis=-1)
    return cols.reshape(Bn, Hh * Ww, 9 * C)


def _row(v):
    return v.reshape(1, -1)


def _tiled_row(v, n):
    return jnp.tile(v, n).reshape(1, -1)


# ----------------------------------------------------------------------------
# Deterministic synthetic parameters
# ----------------------------------------------------------------------------
def init_params(seed=0):
    key = jax.random.PRNGKey(seed)
    ks = iter(jax.random.split(key, 32))
    w = lambda shape: (0.02 * jax.random.normal(next(ks), shape)).astype(jnp.float32)
    z = lambda n: jnp.zeros((n,), jnp.float32)
    o = lambda n: jnp.ones((n,), jnp.float32)

    p = {}
    # vpmatrix_points: MLP(32 -> 64 -> N_PT_TOK*CROSS_D) + LayerNorm(CROSS_D)
    p["vp_fc1_w"], p["vp_fc1_b"] = w((32, 64)), z(64)
    p["vp_fc2_w"], p["vp_fc2_b"] = w((64, N_PT_TOK * CROSS_D)), z(N_PT_TOK * CROSS_D)
    p["vp_ln_g"], p["vp_ln_b"] = o(CROSS_D), z(CROSS_D)
    # image_proj_model: Linear(IMG_EMB_D -> N_IM_TOK*CROSS_D) + LayerNorm(CROSS_D)
    p["ip_w"], p["ip_b"] = w((IMG_EMB_D, N_IM_TOK * CROSS_D)), z(N_IM_TOK * CROSS_D)
    p["ip_ln_g"], p["ip_ln_b"] = o(CROSS_D), z(CROSS_D)
    # unet: time MLP
    p["t_fc1_w"], p["t_fc1_b"] = w((MODEL_C, MODEL_C)), z(MODEL_C)
    p["t_fc2_w"], p["t_fc2_b"] = w((MODEL_C, MODEL_C)), z(MODEL_C)
    # unet: conv_in (3x3, LATENT_C -> MODEL_C) as im2col matrix (9*Cin, Cout)
    p["conv_in_w"], p["conv_in_b"] = w((9 * LATENT_C, MODEL_C)), z(MODEL_C)
    # unet: cross-attention projections
    p["wq"], p["bq"] = w((MODEL_C, CROSS_D)), z(CROSS_D)
    p["wk"], p["bk"] = w((CROSS_D, CROSS_D)), z(CROSS_D)
    p["wv"], p["bv"] = w((CROSS_D, CROSS_D)), z(CROSS_D)
    p["wo"], p["bo"] = w((CROSS_D, MODEL_C)), z(MODEL_C)
    # unet: conv_out (3x3, MODEL_C -> LATENT_C) as per-tap matrices (9*Cin, Cout)
    p["conv_out_w"], p["conv_out_b"] = w((9 * MODEL_C, LATENT_C)), z(LATENT_C)
    return p


# ----------------------------------------------------------------------------
# Wrappers around the two pallas_calls
# ----------------------------------------------------------------------------
def conditioning_fwd(p, V_matrix, P_matrix, image_embeds, timesteps):
    """-> ctx (B, 8, CROSS_D), temb (B, MODEL_C) with conv_in bias folded in."""
    Bn = V_matrix.shape[0]
    vp_x = jnp.concatenate([V_matrix.reshape(Bn, 16), P_matrix.reshape(Bn, 16)],
                           axis=-1)                                    # (B, 32)
    t_sin = timestep_embedding(timesteps, MODEL_C)                     # (B, MODEL_C)
    # Block-diagonal per-token averaging matrix for the chunked LayerNorm.
    m_avg = jnp.kron(jnp.eye(N_PT_TOK, dtype=jnp.float32),
                     jnp.full((CROSS_D, CROSS_D), 1.0 / CROSS_D, jnp.float32))

    operands = (
        vp_x, image_embeds, t_sin, m_avg,
        p["vp_fc1_w"], _row(p["vp_fc1_b"]), p["vp_fc2_w"], _row(p["vp_fc2_b"]),
        _tiled_row(p["vp_ln_g"], N_PT_TOK), _tiled_row(p["vp_ln_b"], N_PT_TOK),
        p["ip_w"], _row(p["ip_b"]),
        _tiled_row(p["ip_ln_g"], N_IM_TOK), _tiled_row(p["ip_ln_b"], N_IM_TOK),
        p["t_fc1_w"], _row(p["t_fc1_b"]), p["t_fc2_w"], _row(p["t_fc2_b"]),
        _row(p["conv_in_b"]),
    )
    in_specs = [pl.BlockSpec(op.shape, lambda i: (0, 0)) for op in operands]

    n_tok = N_PT_TOK + N_IM_TOK
    ctx_flat, temb = pl.pallas_call(
        functools.partial(_conditioning_kernel, eps=LN_EPS),
        out_shape=(jax.ShapeDtypeStruct((Bn, n_tok * CROSS_D), jnp.float32),
                   jax.ShapeDtypeStruct((Bn, MODEL_C), jnp.float32)),
        grid=(1,),
        in_specs=in_specs,
        out_specs=(pl.BlockSpec((Bn, n_tok * CROSS_D), lambda i: (0, 0)),
                   pl.BlockSpec((Bn, MODEL_C), lambda i: (0, 0))),
        compiler_params=pltpu.CompilerParams(dimension_semantics=("arbitrary",)),
    )(*operands)
    return ctx_flat.reshape(Bn, n_tok, CROSS_D), temb


def unet_fwd(p, noisy_latents_nchw, temb, ctx):
    """(B, LATENT_C, H, W) NCHW latents + temb (B, C) + ctx (B, T, D) -> NCHW."""
    Bn = noisy_latents_nchw.shape[0]
    T = ctx.shape[1]
    HW = H * W
    bf16 = jnp.bfloat16

    # MXU-side operands are pre-cast to bf16 here (accumulation stays f32 in-kernel).
    x = jnp.transpose(noisy_latents_nchw, (0, 2, 3, 1)).astype(bf16)   # NHWC bf16
    cols = im2col_3x3(x)                                               # (B, HW, 9*Cin)

    wkv = jnp.concatenate([p["wk"], p["wv"]], axis=1).astype(bf16)     # (D, 2D)
    bkv = jnp.concatenate([p["bk"], p["bv"]], axis=0).reshape(1, -1)   # (1, 2D) f32
    w_out = p["conv_out_w"].reshape(9, MODEL_C, LATENT_C).astype(bf16)  # per-tap

    out = pl.pallas_call(
        functools.partial(_unet_kernel, scale=1.0 / (CROSS_D ** 0.5)),
        out_shape=jax.ShapeDtypeStruct((Bn, HW, LATENT_C), jnp.float32),
        grid=(Bn,),
        in_specs=[
            pl.BlockSpec((1, HW, 9 * LATENT_C), lambda b: (b, 0, 0)),   # cols (bf16)
            pl.BlockSpec((1, T, CROSS_D), lambda b: (b, 0, 0)),         # ctx  (bf16)
            pl.BlockSpec((1, 1, MODEL_C), lambda b: (b, 0, 0)),         # temb+conv_in_b
            pl.BlockSpec((9 * LATENT_C, MODEL_C), lambda b: (0, 0)),    # conv_in_w
            pl.BlockSpec((MODEL_C, CROSS_D), lambda b: (0, 0)),         # wq
            pl.BlockSpec((1, CROSS_D), lambda b: (0, 0)),               # bq
            pl.BlockSpec((CROSS_D, 2 * CROSS_D), lambda b: (0, 0)),     # wkv
            pl.BlockSpec((1, 2 * CROSS_D), lambda b: (0, 0)),           # bkv
            pl.BlockSpec((CROSS_D, MODEL_C), lambda b: (0, 0)),         # wo
            pl.BlockSpec((1, MODEL_C), lambda b: (0, 0)),               # bo
            pl.BlockSpec((9, MODEL_C, LATENT_C), lambda b: (0, 0, 0)),  # conv_out_w
            pl.BlockSpec((1, LATENT_C), lambda b: (0, 0)),              # conv_out_b
        ],
        out_specs=pl.BlockSpec((1, HW, LATENT_C), lambda b: (b, 0, 0)),
        scratch_shapes=[pltpu.VMEM((H + 2, W + 2, MODEL_C), jnp.float32)],
        compiler_params=pltpu.CompilerParams(dimension_semantics=("parallel",)),
    )(cols, ctx.astype(bf16), temb.reshape(Bn, 1, MODEL_C),
      p["conv_in_w"].astype(bf16),
      p["wq"].astype(bf16), _row(p["bq"]), wkv, bkv,
      p["wo"].astype(bf16), _row(p["bo"]),
      w_out, _row(p["conv_out_b"]))

    out = out.reshape(Bn, H, W, LATENT_C)
    return jnp.transpose(out, (0, 3, 1, 2))                            # NCHW


# ----------------------------------------------------------------------------
# posectrl forward
# ----------------------------------------------------------------------------
def posectrl_forward(p, noisy_latents, timesteps, encoder_hidden_states,
                     V_matrix, P_matrix, image_embeds):
    ctx, temb = conditioning_fwd(p, V_matrix, P_matrix, image_embeds, timesteps)
    # Note: torch code uses truthiness (`if encoder_hidden_states:`); here we
    # use `is not None`, which only differs for an empty (B, 0, D) tensor.
    if encoder_hidden_states is not None:
        ctx = jnp.concatenate([ctx, encoder_hidden_states], axis=1)
    return unet_fwd(p, noisy_latents, temb, ctx)


# TODO(synk): load_from_checkpoint (torch.load of .pt state dicts) has no Pallas
# equivalent and is intentionally replaced by deterministic in-script init.

if __name__ == "__main__":
    params = init_params(seed=0)

    key = jax.random.PRNGKey(0)
    k1, k2, k3, k4, k5 = jax.random.split(key, 5)
    noisy_latents = jax.random.normal(k1, (B, LATENT_C, H, W), jnp.float32)  # NCHW
    timesteps = jax.random.randint(k2, (B,), 0, 1000).astype(jnp.int32)
    V_matrix = jax.random.normal(k3, (B, 4, 4), jnp.float32)
    P_matrix = jax.random.normal(k4, (B, 4, 4), jnp.float32)
    image_embeds = jax.random.normal(k5, (B, IMG_EMB_D), jnp.float32)
    encoder_hidden_states = None   # matches the falsy branch of the torch check

    fwd = jax.jit(posectrl_forward)
    noise_pred = fwd(params, noisy_latents, timesteps, encoder_hidden_states,
                     V_matrix, P_matrix, image_embeds)
    jax.block_until_ready(noise_pred)

    assert noise_pred.shape == (B, LATENT_C, H, W), noise_pred.shape
    assert noise_pred.dtype == jnp.float32
    assert bool(jnp.all(jnp.isfinite(noise_pred)))
    print("KERNEL_OK")
</pallas_src>

<mosaic_0001>
module attributes {stable_mosaic.version = 11 : i64} {
  func.func @_conditioning_kernel(%arg0: i32, %arg1: memref<2x32xf32, #tpu.memory_space<vmem>>, %arg2: memref<2x64xf32, #tpu.memory_space<vmem>>, %arg3: memref<2x32xf32, #tpu.memory_space<vmem>>, %arg4: memref<128x128xf32, #tpu.memory_space<vmem>>, %arg5: memref<32x64xf32, #tpu.memory_space<vmem>>, %arg6: memref<1x64xf32, #tpu.memory_space<vmem>>, %arg7: memref<64x128xf32, #tpu.memory_space<vmem>>, %arg8: memref<1x128xf32, #tpu.memory_space<vmem>>, %arg9: memref<1x128xf32, #tpu.memory_space<vmem>>, %arg10: memref<1x128xf32, #tpu.memory_space<vmem>>, %arg11: memref<64x128xf32, #tpu.memory_space<vmem>>, %arg12: memref<1x128xf32, #tpu.memory_space<vmem>>, %arg13: memref<1x128xf32, #tpu.memory_space<vmem>>, %arg14: memref<1x128xf32, #tpu.memory_space<vmem>>, %arg15: memref<32x32xf32, #tpu.memory_space<vmem>>, %arg16: memref<1x32xf32, #tpu.memory_space<vmem>>, %arg17: memref<32x32xf32, #tpu.memory_space<vmem>>, %arg18: memref<1x32xf32, #tpu.memory_space<vmem>>, %arg19: memref<1x32xf32, #tpu.memory_space<vmem>>, %arg20: memref<2x256xf32, #tpu.memory_space<vmem>>, %arg21: memref<2x32xf32, #tpu.memory_space<vmem>>) attributes {dimension_semantics = [#tpu.dimension_semantics<arbitrary>], iteration_bounds = array<i64: 1>, scalar_prefetch = 0 : i64, scratch_operands = 0 : i64, tpu.core_type = #tpu.core_type<tc>, window_params = [{pipeline_mode = #tpu.pipeline_mode<synchronous>, transform_indices = @transform_0, window_bounds = array<i64: 2, 32>}, {pipeline_mode = #tpu.pipeline_mode<synchronous>, transform_indices = @transform_1, window_bounds = array<i64: 2, 64>}, {pipeline_mode = #tpu.pipeline_mode<synchronous>, transform_indices = @transform_2, window_bounds = array<i64: 2, 32>}, {pipeline_mode = #tpu.pipeline_mode<synchronous>, transform_indices = @transform_3, window_bounds = array<i64: 128, 128>}, {pipeline_mode = #tpu.pipeline_mode<synchronous>, transform_indices = @transform_4, window_bounds = array<i64: 32, 64>}, {pipeline_mode = #tpu.pipeline_mode<synchronous>, transform_indices = @transform_5, window_bounds = array<i64: 1, 64>}, {pipeline_mode = #tpu.pipeline_mode<synchronous>, transform_indices = @transform_6, window_bounds = array<i64: 64, 128>}, {pipeline_mode = #tpu.pipeline_mode<synchronous>, transform_indices = @transform_7, window_bounds = array<i64: 1, 128>}, {pipeline_mode = #tpu.pipeline_mode<synchronous>, transform_indices = @transform_8, window_bounds = array<i64: 1, 128>}, {pipeline_mode = #tpu.pipeline_mode<synchronous>, transform_indices = @transform_9, window_bounds = array<i64: 1, 128>}, {pipeline_mode = #tpu.pipeline_mode<synchronous>, transform_indices = @transform_10, window_bounds = array<i64: 64, 128>}, {pipeline_mode = #tpu.pipeline_mode<synchronous>, transform_indices = @transform_11, window_bounds = array<i64: 1, 128>}, {pipeline_mode = #tpu.pipeline_mode<synchronous>, transform_indices = @transform_12, window_bounds = array<i64: 1, 128>}, {pipeline_mode = #tpu.pipeline_mode<synchronous>, transform_indices = @transform_13, window_bounds = array<i64: 1, 128>}, {pipeline_mode = #tpu.pipeline_mode<synchronous>, transform_indices = @transform_14, window_bounds = array<i64: 32, 32>}, {pipeline_mode = #tpu.pipeline_mode<synchronous>, transform_indices = @transform_15, window_bounds = array<i64: 1, 32>}, {pipeline_mode = #tpu.pipeline_mode<synchronous>, transform_indices = @transform_16, window_bounds = array<i64: 32, 32>}, {pipeline_mode = #tpu.pipeline_mode<synchronous>, transform_indices = @transform_17, window_bounds = array<i64: 1, 32>}, {pipeline_mode = #tpu.pipeline_mode<synchronous>, transform_indices = @transform_18, window_bounds = array<i64: 1, 32>}, {pipeline_mode = #tpu.pipeline_mode<synchronous>, transform_indices = @transform_19, window_bounds = array<i64: 2, 256>}, {pipeline_mode = #tpu.pipeline_mode<synchronous>, transform_indices = @transform_20, window_bounds = array<i64: 2, 32>}]} {
    %c0 = arith.constant 0 : index
    %c0_0 = arith.constant 0 : index
    %0 = vector.load %arg4[%c0, %c0_0] : memref<128x128xf32, #tpu.memory_space<vmem>>, vector<128x128xf32>
    %c0_1 = arith.constant 0 : index
    %c0_2 = arith.constant 0 : index
    %1 = vector.load %arg1[%c0_1, %c0_2] : memref<2x32xf32, #tpu.memory_space<vmem>>, vector<2x32xf32>
    %c0_3 = arith.constant 0 : index
    %c0_4 = arith.constant 0 : index
    %2 = vector.load %arg5[%c0_3, %c0_4] : memref<32x64xf32, #tpu.memory_space<vmem>>, vector<32x64xf32>
    %cst = arith.constant dense<0.000000e+00> : vector<2x64xf32>
    %3 = tpu.matmul %1, %2, %cst {dimension_numbers = #tpu.dot_dimension_numbers<[1], [0], [0], [1], [0, 0, 1, 1], [], []>} : vector<2x32xf32>, vector<32x64xf32>, vector<2x64xf32> -> vector<2x64xf32>
    %c0_5 = arith.constant 0 : index
    %c0_6 = arith.constant 0 : index
    %4 = vector.load %arg6[%c0_5, %c0_6] : memref<1x64xf32, #tpu.memory_space<vmem>>, vector<1x64xf32>
    %5 = vector.broadcast %4 : vector<1x64xf32> to vector<2x64xf32>
    %6 = arith.addf %3, %5 : vector<2x64xf32>
    %7 = arith.negf %6 : vector<2x64xf32>
    %8 = math.exp %7 : vector<2x64xf32>
    %cst_7 = arith.constant 1.000000e+00 : f32
    %9 = vector.broadcast %cst_7 : f32 to vector<2x64xf32>
    %10 = arith.addf %9, %8 : vector<2x64xf32>
    %11 = arith.divf %9, %10 : vector<2x64xf32>
    %12 = arith.mulf %6, %11 : vector<2x64xf32>
    %c0_8 = arith.constant 0 : index
    %c0_9 = arith.constant 0 : index
    %13 = vector.load %arg7[%c0_8, %c0_9] : memref<64x128xf32, #tpu.memory_space<vmem>>, vector<64x128xf32>
    %cst_10 = arith.constant dense<0.000000e+00> : vector<2x128xf32>
    %14 = tpu.matmul %12, %13, %cst_10 {dimension_numbers = #tpu.dot_dimension_numbers<[1], [0], [0], [1], [0, 0, 1, 1], [], []>} : vector<2x64xf32>, vector<64x128xf32>, vector<2x128xf32> -> vector<2x128xf32>
    %c0_11 = arith.constant 0 : index
    %c0_12 = arith.constant 0 : index
    %15 = vector.load %arg8[%c0_11, %c0_12] : memref<1x128xf32, #tpu.memory_space<vmem>>, vector<1x128xf32>
    %16 = vector.broadcast %15 : vector<1x128xf32> to vector<2x128xf32>
    %17 = arith.addf %14, %16 : vector<2x128xf32>
    %c0_13 = arith.constant 0 : index
    %c0_14 = arith.constant 0 : index
    %18 = vector.load %arg9[%c0_13, %c0_14] : memref<1x128xf32, #tpu.memory_space<vmem>>, vector<1x128xf32>
    %c0_15 = arith.constant 0 : index
    %c0_16 = arith.constant 0 : index
    %19 = vector.load %arg10[%c0_15, %c0_16] : memref<1x128xf32, #tpu.memory_space<vmem>>, vector<1x128xf32>
    %cst_17 = arith.constant dense<0.000000e+00> : vector<2x128xf32>
    %20 = tpu.matmul %17, %0, %cst_17 {dimension_numbers = #tpu.dot_dimension_numbers<[1], [0], [0], [1], [0, 0, 1, 1], [], []>} : vector<2x128xf32>, vector<128x128xf32>, vector<2x128xf32> -> vector<2x128xf32>
    %21 = arith.subf %17, %20 : vector<2x128xf32>
    %22 = arith.mulf %21, %21 : vector<2x128xf32>
    %cst_18 = arith.constant dense<0.000000e+00> : vector<2x128xf32>
    %23 = tpu.matmul %22, %0, %cst_18 {dimension_numbers = #tpu.dot_dimension_numbers<[1], [0], [0], [1], [0, 0, 1, 1], [], []>} : vector<2x128xf32>, vector<128x128xf32>, vector<2x128xf32> -> vector<2x128xf32>
    %24 = arith.subf %17, %20 : vector<2x128xf32>
    %cst_19 = arith.constant 9.99999974E-6 : f32
    %25 = vector.broadcast %cst_19 : f32 to vector<2x128xf32>
    %26 = arith.addf %23, %25 : vector<2x128xf32>
    %27 = math.rsqrt %26 : vector<2x128xf32>
    %28 = arith.mulf %24, %27 : vector<2x128xf32>
    %29 = vector.broadcast %18 : vector<1x128xf32> to vector<2x128xf32>
    %30 = arith.mulf %28, %29 : vector<2x128xf32>
    %31 = vector.broadcast %19 : vector<1x128xf32> to vector<2x128xf32>
    %32 = arith.addf %30, %31 : vector<2x128xf32>
    %c0_20 = arith.constant 0 : index
    %c0_21 = arith.constant 0 : index
    %33 = vector.load %arg2[%c0_20, %c0_21] : memref<2x64xf32, #tpu.memory_space<vmem>>, vector<2x64xf32>
    %c0_22 = arith.constant 0 : index
    %c0_23 = arith.constant 0 : index
    %34 = vector.load %arg11[%c0_22, %c0_23] : memref<64x128xf32, #tpu.memory_space<vmem>>, vector<64x128xf32>
    %cst_24 = arith.constant dense<0.000000e+00> : vector<2x128xf32>
    %35 = tpu.matmul %33, %34, %cst_24 {dimension_numbers = #tpu.dot_dimension_numbers<[1], [0], [0], [1], [0, 0, 1, 1], [], []>} : vector<2x64xf32>, vector<64x128xf32>, vector<2x128xf32> -> vector<2x128xf32>
    %c0_25 = arith.constant 0 : index
    %c0_26 = arith.constant 0 : index
    %36 = vector.load %arg12[%c0_25, %c0_26] : memref<1x128xf32, #tpu.memory_space<vmem>>, vector<1x128xf32>
    %37 = vector.broadcast %36 : vector<1x128xf32> to vector<2x128xf32>
    %38 = arith.addf %35, %37 : vector<2x128xf32>
    %c0_27 = arith.constant 0 : index
    %c0_28 = arith.constant 0 : index
    %39 = vector.load %arg13[%c0_27, %c0_28] : memref<1x128xf32, #tpu.memory_space<vmem>>, vector<1x128xf32>
    %c0_29 = arith.constant 0 : index
    %c0_30 = arith.constant 0 : index
    %40 = vector.load %arg14[%c0_29, %c0_30] : memref<1x128xf32, #tpu.memory_space<vmem>>, vector<1x128xf32>
    %cst_31 = arith.constant dense<0.000000e+00> : vector<2x128xf32>
    %41 = tpu.matmul %38, %0, %cst_31 {dimension_numbers = #tpu.dot_dimension_numbers<[1], [0], [0], [1], [0, 0, 1, 1], [], []>} : vector<2x128xf32>, vector<128x128xf32>, vector<2x128xf32> -> vector<2x128xf32>
    %42 = arith.subf %38, %41 : vector<2x128xf32>
    %43 = arith.mulf %42, %42 : vector<2x128xf32>
    %cst_32 = arith.constant dense<0.000000e+00> : vector<2x128xf32>
    %44 = tpu.matmul %43, %0, %cst_32 {dimension_numbers = #tpu.dot_dimension_numbers<[1], [0], [0], [1], [0, 0, 1, 1], [], []>} : vector<2x128xf32>, vector<128x128xf32>, vector<2x128xf32> -> vector<2x128xf32>
    %45 = arith.subf %38, %41 : vector<2x128xf32>
    %cst_33 = arith.constant 9.99999974E-6 : f32
    %46 = vector.broadcast %cst_33 : f32 to vector<2x128xf32>
    %47 = arith.addf %44, %46 : vector<2x128xf32>
    %48 = math.rsqrt %47 : vector<2x128xf32>
    %49 = arith.mulf %45, %48 : vector<2x128xf32>
    %50 = vector.broadcast %39 : vector<1x128xf32> to vector<2x128xf32>
    %51 = arith.mulf %49, %50 : vector<2x128xf32>
    %52 = vector.broadcast %40 : vector<1x128xf32> to vector<2x128xf32>
    %53 = arith.addf %51, %52 : vector<2x128xf32>
    %54 = tpu.concatenate %32, %53 in 1 : vector<2x128xf32>, vector<2x128xf32> -> vector<2x256xf32>
    %c0_34 = arith.constant 0 : index
    %c0_35 = arith.constant 0 : index
    %55 = vector.load %arg20[%c0_34, %c0_35] : memref<2x256xf32, #tpu.memory_space<vmem>>, vector<2x256xf32>
    tpu.vector_store %arg20[%c0_34, %c0_35], %54 {strides = array<i32>} : memref<2x256xf32, #tpu.memory_space<vmem>>, vector<2x256xf32>,
    %c0_36 = arith.constant 0 : index
    %c0_37 = arith.constant 0 : index
    %56 = vector.load %arg3[%c0_36, %c0_37] : memref<2x32xf32, #tpu.memory_space<vmem>>, vector<2x32xf32>
    %c0_38 = arith.constant 0 : index
    %c0_39 = arith.constant 0 : index
    %57 = vector.load %arg15[%c0_38, %c0_39] : memref<32x32xf32, #tpu.memory_space<vmem>>, vector<32x32xf32>
    %cst_40 = arith.constant dense<0.000000e+00> : vector<2x32xf32>
    %58 = tpu.matmul %56, %57, %cst_40 {dimension_numbers = #tpu.dot_dimension_numbers<[1], [0], [0], [1], [0, 0, 1, 1], [], []>} : vector<2x32xf32>, vector<32x32xf32>, vector<2x32xf32> -> vector<2x32xf32>
    %c0_41 = arith.constant 0 : index
    %c0_42 = arith.constant 0 : index
    %59 = vector.load %arg16[%c0_41, %c0_42] : memref<1x32xf32, #tpu.memory_space<vmem>>, vector<1x32xf32>
    %60 = vector.broadcast %59 : vector<1x32xf32> to vector<2x32xf32>
    %61 = arith.addf %58, %60 : vector<2x32xf32>
    %62 = arith.negf %61 : vector<2x32xf32>
    %63 = math.exp %62 : vector<2x32xf32>
    %cst_43 = arith.constant 1.000000e+00 : f32
    %64 = vector.broadcast %cst_43 : f32 to vector<2x32xf32>
    %65 = arith.addf %64, %63 : vector<2x32xf32>
    %66 = arith.divf %64, %65 : vector<2x32xf32>
    %67 = arith.mulf %61, %66 : vector<2x32xf32>
    %c0_44 = arith.constant 0 : index
    %c0_45 = arith.constant 0 : index
    %68 = vector.load %arg17[%c0_44, %c0_45] : memref<32x32xf32, #tpu.memory_space<vmem>>, vector<32x32xf32>
    %cst_46 = arith.constant dense<0.000000e+00> : vector<2x32xf32>
    %69 = tpu.matmul %67, %68, %cst_46 {dimension_numbers = #tpu.dot_dimension_numbers<[1], [0], [0], [1], [0, 0, 1, 1], [], []>} : vector<2x32xf32>, vector<32x32xf32>, vector<2x32xf32> -> vector<2x32xf32>
    %c0_47 = arith.constant 0 : index
    %c0_48 = arith.constant 0 : index
    %70 = vector.load %arg18[%c0_47, %c0_48] : memref<1x32xf32, #tpu.memory_space<vmem>>, vector<1x32xf32>
    %71 = vector.broadcast %70 : vector<1x32xf32> to vector<2x32xf32>
    %72 = arith.addf %69, %71 : vector<2x32xf32>
    %c0_49 = arith.constant 0 : index
    %c0_50 = arith.constant 0 : index
    %73 = vector.load %arg19[%c0_49, %c0_50] : memref<1x32xf32, #tpu.memory_space<vmem>>, vector<1x32xf32>
    %74 = vector.broadcast %73 : vector<1x32xf32> to vector<2x32xf32>
    %75 = arith.addf %72, %74 : vector<2x32xf32>
    %c0_51 = arith.constant 0 : index
    %c0_52 = arith.constant 0 : index
    %76 = vector.load %arg21[%c0_51, %c0_52] : memref<2x32xf32, #tpu.memory_space<vmem>>, vector<2x32xf32>
    tpu.vector_store %arg21[%c0_51, %c0_52], %75 {strides = array<i32>} : memref<2x32xf32, #tpu.memory_space<vmem>>, vector<2x32xf32>,
    return
  }
  func.func @transform_0(%arg0: i32) -> (i32, i32) {
    %c0_i32 = arith.constant 0 : i32
    %c0_i32_0 = arith.constant 0 : i32
    %c0_i32_1 = arith.constant 0 : i32
    return %c0_i32, %c0_i32_0 : i32, i32
  }
  func.func @transform_1(%arg0: i32) -> (i32, i32) {
    %c0_i32 = arith.constant 0 : i32
    %c0_i32_0 = arith.constant 0 : i32
    %c0_i32_1 = arith.constant 0 : i32
    return %c0_i32, %c0_i32_0 : i32, i32
  }
  func.func @transform_2(%arg0: i32) -> (i32, i32) {
    %c0_i32 = arith.constant 0 : i32
    %c0_i32_0 = arith.constant 0 : i32
    %c0_i32_1 = arith.constant 0 : i32
    return %c0_i32, %c0_i32_0 : i32, i32
  }
  func.func @transform_3(%arg0: i32) -> (i32, i32) {
    %c0_i32 = arith.constant 0 : i32
    %c0_i32_0 = arith.constant 0 : i32
    %c0_i32_1 = arith.constant 0 : i32
    return %c0_i32, %c0_i32_0 : i32, i32
  }
  func.func @transform_4(%arg0: i32) -> (i32, i32) {
    %c0_i32 = arith.constant 0 : i32
    %c0_i32_0 = arith.constant 0 : i32
    %c0_i32_1 = arith.constant 0 : i32
    return %c0_i32, %c0_i32_0 : i32, i32
  }
  func.func @transform_5(%arg0: i32) -> (i32, i32) {
    %c0_i32 = arith.constant 0 : i32
    %c0_i32_0 = arith.constant 0 : i32
    %c0_i32_1 = arith.constant 0 : i32
    return %c0_i32, %c0_i32_0 : i32, i32
  }
  func.func @transform_6(%arg0: i32) -> (i32, i32) {
    %c0_i32 = arith.constant 0 : i32
    %c0_i32_0 = arith.constant 0 : i32
    %c0_i32_1 = arith.constant 0 : i32
    return %c0_i32, %c0_i32_0 : i32, i32
  }
  func.func @transform_7(%arg0: i32) -> (i32, i32) {
    %c0_i32 = arith.constant 0 : i32
    %c0_i32_0 = arith.constant 0 : i32
    %c0_i32_1 = arith.constant 0 : i32
    return %c0_i32, %c0_i32_0 : i32, i32
  }
  func.func @transform_8(%arg0: i32) -> (i32, i32) {
    %c0_i32 = arith.constant 0 : i32
    %c0_i32_0 = arith.constant 0 : i32
    %c0_i32_1 = arith.constant 0 : i32
    return %c0_i32, %c0_i32_0 : i32, i32
  }
  func.func @transform_9(%arg0: i32) -> (i32, i32) {
    %c0_i32 = arith.constant 0 : i32
    %c0_i32_0 = arith.constant 0 : i32
    %c0_i32_1 = arith.constant 0 : i32
    return %c0_i32, %c0_i32_0 : i32, i32
  }
  func.func @transform_10(%arg0: i32) -> (i32, i32) {
    %c0_i32 = arith.constant 0 : i32
    %c0_i32_0 = arith.constant 0 : i32
    %c0_i32_1 = arith.constant 0 : i32
    return %c0_i32, %c0_i32_0 : i32, i32
  }
  func.func @transform_11(%arg0: i32) -> (i32, i32) {
    %c0_i32 = arith.constant 0 : i32
    %c0_i32_0 = arith.constant 0 : i32
    %c0_i32_1 = arith.constant 0 : i32
    return %c0_i32, %c0_i32_0 : i32, i32
  }
  func.func @transform_12(%arg0: i32) -> (i32, i32) {
    %c0_i32 = arith.constant 0 : i32
    %c0_i32_0 = arith.constant 0 : i32
    %c0_i32_1 = arith.constant 0 : i32
    return %c0_i32, %c0_i32_0 : i32, i32
  }
  func.func @transform_13(%arg0: i32) -> (i32, i32) {
    %c0_i32 = arith.constant 0 : i32
    %c0_i32_0 = arith.constant 0 : i32
    %c0_i32_1 = arith.constant 0 : i32
    return %c0_i32, %c0_i32_0 : i32, i32
  }
  func.func @transform_14(%arg0: i32) -> (i32, i32) {
    %c0_i32 = arith.constant 0 : i32
    %c0_i32_0 = arith.constant 0 : i32
    %c0_i32_1 = arith.constant 0 : i32
    return %c0_i32, %c0_i32_0 : i32, i32
  }
  func.func @transform_15(%arg0: i32) -> (i32, i32) {
    %c0_i32 = arith.constant 0 : i32
    %c0_i32_0 = arith.constant 0 : i32
    %c0_i32_1 = arith.constant 0 : i32
    return %c0_i32, %c0_i32_0 : i32, i32
  }
  func.func @transform_16(%arg0: i32) -> (i32, i32) {
    %c0_i32 = arith.constant 0 : i32
    %c0_i32_0 = arith.constant 0 : i32
    %c0_i32_1 = arith.constant 0 : i32
    return %c0_i32, %c0_i32_0 : i32, i32
  }
  func.func @transform_17(%arg0: i32) -> (i32, i32) {
    %c0_i32 = arith.constant 0 : i32
    %c0_i32_0 = arith.constant 0 : i32
    %c0_i32_1 = arith.constant 0 : i32
    return %c0_i32, %c0_i32_0 : i32, i32
  }
  func.func @transform_18(%arg0: i32) -> (i32, i32) {
    %c0_i32 = arith.constant 0 : i32
    %c0_i32_0 = arith.constant 0 : i32
    %c0_i32_1 = arith.constant 0 : i32
    return %c0_i32, %c0_i32_0 : i32, i32
  }
  func.func @transform_19(%arg0: i32) -> (i32, i32) {
    %c0_i32 = arith.constant 0 : i32
    %c0_i32_0 = arith.constant 0 : i32
    %c0_i32_1 = arith.constant 0 : i32
    return %c0_i32, %c0_i32_0 : i32, i32
  }
  func.func @transform_20(%arg0: i32) -> (i32, i32) {
    %c0_i32 = arith.constant 0 : i32
    %c0_i32_0 = arith.constant 0 : i32
    %c0_i32_1 = arith.constant 0 : i32
    return %c0_i32, %c0_i32_0 : i32, i32
  }
}

module attributes {stable_mosaic.version = 11 : i64} {
  func.func @_unet_kernel(%arg0: i32, %arg1: memref<1x256x36xbf16, #tpu.memory_space<vmem>>, %arg2: memref<1x8x32xbf16, #tpu.memory_space<vmem>>, %arg3: memref<1x1x32xf32, #tpu.memory_space<vmem>>, %arg4: memref<36x32xbf16, #tpu.memory_space<vmem>>, %arg5: memref<32x32xbf16, #tpu.memory_space<vmem>>, %arg6: memref<1x32xf32, #tpu.memory_space<vmem>>, %arg7: memref<32x64xbf16, #tpu.memory_space<vmem>>, %arg8: memref<1x64xf32, #tpu.memory_space<vmem>>, %arg9: memref<32x32xbf16, #tpu.memory_space<vmem>>, %arg10: memref<1x32xf32, #tpu.memory_space<vmem>>, %arg11: memref<9x32x4xbf16, #tpu.memory_space<vmem>>, %arg12: memref<1x4xf32, #tpu.memory_space<vmem>>, %arg13: memref<1x256x4xf32, #tpu.memory_space<vmem>>, %arg14: memref<18x18x32xf32, #tpu.memory_space<vmem>>) attributes {dimension_semantics = [#tpu.dimension_semantics<parallel>], iteration_bounds = array<i64: 2>, scalar_prefetch = 0 : i64, scratch_operands = 1 : i64, tpu.core_type = #tpu.core_type<tc>, window_params = [{transform_indices = @transform_0, window_bounds = array<i64: 1, 256, 36>}, {transform_indices = @transform_1, window_bounds = array<i64: 1, 8, 32>}, {transform_indices = @transform_2, window_bounds = array<i64: 1, 1, 32>}, {pipeline_mode = #tpu.pipeline_mode<synchronous>, transform_indices = @transform_3, window_bounds = array<i64: 36, 32>}, {pipeline_mode = #tpu.pipeline_mode<synchronous>, transform_indices = @transform_4, window_bounds = array<i64: 32, 32>}, {pipeline_mode = #tpu.pipeline_mode<synchronous>, transform_indices = @transform_5, window_bounds = array<i64: 1, 32>}, {pipeline_mode = #tpu.pipeline_mode<synchronous>, transform_indices = @transform_6, window_bounds = array<i64: 32, 64>}, {pipeline_mode = #tpu.pipeline_mode<synchronous>, transform_indices = @transform_7, window_bounds = array<i64: 1, 64>}, {pipeline_mode = #tpu.pipeline_mode<synchronous>, transform_indices = @transform_8, window_bounds = array<i64: 32, 32>}, {pipeline_mode = #tpu.pipeline_mode<synchronous>, transform_indices = @transform_9, window_bounds = array<i64: 1, 32>}, {pipeline_mode = #tpu.pipeline_mode<synchronous>, transform_indices = @transform_10, window_bounds = array<i64: 9, 32, 4>}, {pipeline_mode = #tpu.pipeline_mode<synchronous>, transform_indices = @transform_11, window_bounds = array<i64: 1, 4>}, {transform_indices = @transform_12, window_bounds = array<i64: 1, 256, 4>}]} {
    %c0 = arith.constant 0 : index
    %c0_0 = arith.constant 0 : index
    %c0_1 = arith.constant 0 : index
    %0 = vector.load %arg1[%c0, %c0_0, %c0_1] : memref<1x256x36xbf16, #tpu.memory_space<vmem>>, vector<1x256x36xbf16>
    %1 = vector.shape_cast %0 : vector<1x256x36xbf16> to vector<256x36xbf16>
    %c0_2 = arith.constant 0 : index
    %c0_3 = arith.constant 0 : index
    %2 = vector.load %arg4[%c0_2, %c0_3] : memref<36x32xbf16, #tpu.memory_space<vmem>>, vector<36x32xbf16>
    %cst = arith.constant dense<0.000000e+00> : vector<256x32xf32>
    %3 = tpu.matmul %1, %2, %cst {dimension_numbers = #tpu.dot_dimension_numbers<[1], [0], [0], [1], [0, 0, 1, 1], [], []>} : vector<256x36xbf16>, vector<36x32xbf16>, vector<256x32xf32> -> vector<256x32xf32>
    %c0_4 = arith.constant 0 : index
    %c0_5 = arith.constant 0 : index
    %c0_6 = arith.constant 0 : index
    %4 = vector.load %arg3[%c0_4, %c0_5, %c0_6] : memref<1x1x32xf32, #tpu.memory_space<vmem>>, vector<1x1x32xf32>
    %5 = vector.shape_cast %4 : vector<1x1x32xf32> to vector<1x32xf32>
    %6 = vector.broadcast %5 : vector<1x32xf32> to vector<256x32xf32>
    %7 = arith.addf %3, %6 : vector<256x32xf32>
    %8 = arith.negf %7 : vector<256x32xf32>
    %9 = math.exp %8 : vector<256x32xf32>
    %cst_7 = arith.constant 1.000000e+00 : f32
    %10 = vector.broadcast %cst_7 : f32 to vector<256x32xf32>
    %11 = arith.addf %10, %9 : vector<256x32xf32>
    %12 = arith.divf %10, %11 : vector<256x32xf32>
    %13 = arith.mulf %7, %12 : vector<256x32xf32>
    %c0_8 = arith.constant 0 : index
    %c0_9 = arith.constant 0 : index
    %c0_10 = arith.constant 0 : index
    %14 = vector.load %arg2[%c0_8, %c0_9, %c0_10] : memref<1x8x32xbf16, #tpu.memory_space<vmem>>, vector<1x8x32xbf16>
    %15 = vector.shape_cast %14 : vector<1x8x32xbf16> to vector<8x32xbf16>
    %16 = arith.truncf %13 : vector<256x32xf32> to vector<256x32xbf16>
    %c0_11 = arith.constant 0 : index
    %c0_12 = arith.constant 0 : index
    %17 = vector.load %arg5[%c0_11, %c0_12] : memref<32x32xbf16, #tpu.memory_space<vmem>>, vector<32x32xbf16>
    %cst_13 = arith.constant dense<0.000000e+00> : vector<256x32xf32>
    %18 = tpu.matmul %16, %17, %cst_13 {dimension_numbers = #tpu.dot_dimension_numbers<[1], [0], [0], [1], [0, 0, 1, 1], [], []>} : vector<256x32xbf16>, vector<32x32xbf16>, vector<256x32xf32> -> vector<256x32xf32>
    %c0_14 = arith.constant 0 : index
    %c0_15 = arith.constant 0 : index
    %19 = vector.load %arg6[%c0_14, %c0_15] : memref<1x32xf32, #tpu.memory_space<vmem>>, vector<1x32xf32>
    %20 = vector.broadcast %19 : vector<1x32xf32> to vector<256x32xf32>
    %21 = arith.addf %18, %20 : vector<256x32xf32>
    %c0_16 = arith.constant 0 : index
    %c0_17 = arith.constant 0 : index
    %22 = vector.load %arg7[%c0_16, %c0_17] : memref<32x64xbf16, #tpu.memory_space<vmem>>, vector<32x64xbf16>
    %cst_18 = arith.constant dense<0.000000e+00> : vector<8x64xf32>
    %23 = tpu.matmul %15, %22, %cst_18 {dimension_numbers = #tpu.dot_dimension_numbers<[1], [0], [0], [1], [0, 0, 1, 1], [], []>} : vector<8x32xbf16>, vector<32x64xbf16>, vector<8x64xf32> -> vector<8x64xf32>
    %c0_19 = arith.constant 0 : index
    %c0_20 = arith.constant 0 : index
    %24 = vector.load %arg8[%c0_19, %c0_20] : memref<1x64xf32, #tpu.memory_space<vmem>>, vector<1x64xf32>
    %25 = vector.broadcast %24 : vector<1x64xf32> to vector<8x64xf32>
    %26 = arith.addf %23, %25 : vector<8x64xf32>
    %27 = vector.extract_strided_slice %26 {offsets = [0, 0], sizes = [8, 32], strides = [1, 1]} : vector<8x64xf32> to vector<8x32xf32>
    %28 = vector.extract_strided_slice %26 {offsets = [0, 32], sizes = [8, 32], strides = [1, 1]} : vector<8x64xf32> to vector<8x32xf32>
    %29 = arith.truncf %21 : vector<256x32xf32> to vector<256x32xbf16>
    %30 = arith.truncf %27 : vector<8x32xf32> to vector<8x32xbf16>
    %cst_21 = arith.constant dense<0.000000e+00> : vector<256x8xf32>
    %31 = tpu.matmul %29, %30, %cst_21 {dimension_numbers = #tpu.dot_dimension_numbers<[1], [1], [0], [0], [0, 0, 1, 0], [], []>} : vector<256x32xbf16>, vector<8x32xbf16>, vector<256x8xf32> -> vector<256x8xf32>
    %cst_22 = arith.constant 0.176776692 : f32
    %32 = vector.broadcast %cst_22 : f32 to vector<256x8xf32>
    %33 = arith.mulf %31, %32 : vector<256x8xf32>
    %cst_23 = arith.constant dense<0xFF800000> : vector<256xf32>
    %34 = vector.multi_reduction <maximumf>, %33, %cst_23 [1] : vector<256x8xf32> to vector<256xf32>
    %35 = vector.shape_cast %34 : vector<256xf32> to vector<256x1xf32>
    %36 = vector.broadcast %35 : vector<256x1xf32> to vector<256x8xf32>
    %37 = arith.subf %33, %36 : vector<256x8xf32>
    %38 = math.exp %37 : vector<256x8xf32>
    %cst_24 = arith.constant dense<0.000000e+00> : vector<256xf32>
    %39 = vector.multi_reduction <add>, %38, %cst_24 [1] : vector<256x8xf32> to vector<256xf32>
    %40 = vector.shape_cast %39 : vector<256xf32> to vector<256x1xf32>
    %41 = tpu.reciprocal %40 {approx = true} : vector<256x1xf32> -> vector<256x1xf32>
    %42 = vector.broadcast %41 : vector<256x1xf32> to vector<256x8xf32>
    %43 = arith.mulf %38, %42 : vector<256x8xf32>
    %44 = arith.truncf %43 : vector<256x8xf32> to vector<256x8xbf16>
    %45 = arith.truncf %28 : vector<8x32xf32> to vector<8x32xbf16>
    %cst_25 = arith.constant dense<0.000000e+00> : vector<256x32xf32>
    %46 = tpu.matmul %44, %45, %cst_25 {dimension_numbers = #tpu.dot_dimension_numbers<[1], [0], [0], [1], [0, 0, 1, 1], [], []>} : vector<256x8xbf16>, vector<8x32xbf16>, vector<256x32xf32> -> vector<256x32xf32>
    %47 = arith.truncf %46 : vector<256x32xf32> to vector<256x32xbf16>
    %c0_26 = arith.constant 0 : index
    %c0_27 = arith.constant 0 : index
    %48 = vector.load %arg9[%c0_26, %c0_27] : memref<32x32xbf16, #tpu.memory_space<vmem>>, vector<32x32xbf16>
    %cst_28 = arith.constant dense<0.000000e+00> : vector<256x32xf32>
    %49 = tpu.matmul %47, %48, %cst_28 {dimension_numbers = #tpu.dot_dimension_numbers<[1], [0], [0], [1], [0, 0, 1, 1], [], []>} : vector<256x32xbf16>, vector<32x32xbf16>, vector<256x32xf32> -> vector<256x32xf32>
    %c0_29 = arith.constant 0 : index
    %c0_30 = arith.constant 0 : index
    %50 = vector.load %arg10[%c0_29, %c0_30] : memref<1x32xf32, #tpu.memory_space<vmem>>, vector<1x32xf32>
    %51 = vector.broadcast %50 : vector<1x32xf32> to vector<256x32xf32>
    %52 = arith.addf %49, %51 : vector<256x32xf32>
    %53 = arith.addf %13, %52 : vector<256x32xf32>
    %cst_31 = arith.constant 0.000000e+00 : f32
    %54 = vector.broadcast %cst_31 : f32 to vector<18x18x32xf32>
    %c0_32 = arith.constant 0 : index
    %c0_33 = arith.constant 0 : index
    %c0_34 = arith.constant 0 : index
    %55 = vector.load %arg14[%c0_32, %c0_33, %c0_34] : memref<18x18x32xf32, #tpu.memory_space<vmem>>, vector<18x18x32xf32>
    tpu.vector_store %arg14[%c0_32, %c0_33, %c0_34], %54 {strides = array<i32>} : memref<18x18x32xf32, #tpu.memory_space<vmem>>, vector<18x18x32xf32>,
    %56 = vector.shape_cast %53 : vector<256x32xf32> to vector<16x16x32xf32>
    %c1 = arith.constant 1 : index
    %c1_35 = arith.constant 1 : index
    %c0_36 = arith.constant 0 : index
    %57 = vector.load %arg14[%c1, %c1_35, %c0_36] : memref<18x18x32xf32, #tpu.memory_space<vmem>>, vector<16x16x32xf32>
    tpu.vector_store %arg14[%c1, %c1_35, %c0_36], %56 {strides = array<i32>} : memref<18x18x32xf32, #tpu.memory_space<vmem>>, vector<16x16x32xf32>,
    %cst_37 = arith.constant 0.000000e+00 : f32
    %58 = vector.broadcast %cst_37 : f32 to vector<256x4xf32>
    %c0_38 = arith.constant 0 : index
    %c0_39 = arith.constant 0 : index
    %c0_40 = arith.constant 0 : index
    %59 = vector.load %arg14[%c0_38, %c0_39, %c0_40] : memref<18x18x32xf32, #tpu.memory_space<vmem>>, vector<16x16x32xf32>
    %60 = vector.shape_cast %59 : vector<16x16x32xf32> to vector<256x32xf32>
    %61 = arith.truncf %60 : vector<256x32xf32> to vector<256x32xbf16>
    %c0_41 = arith.constant 0 : index
    %c0_42 = arith.constant 0 : index
    %c0_43 = arith.constant 0 : index
    %62 = vector.load %arg11[%c0_41, %c0_42, %c0_43] : memref<9x32x4xbf16, #tpu.memory_space<vmem>>, vector<1x32x4xbf16>
    %63 = vector.shape_cast %62 : vector<1x32x4xbf16> to vector<32x4xbf16>
    %cst_44 = arith.constant dense<0.000000e+00> : vector<256x4xf32>
    %64 = tpu.matmul %61, %63, %cst_44 {dimension_numbers = #tpu.dot_dimension_numbers<[1], [0], [0], [1], [0, 0, 1, 1], [], []>} : vector<256x32xbf16>, vector<32x4xbf16>, vector<256x4xf32> -> vector<256x4xf32>
    %65 = arith.addf %58, %64 : vector<256x4xf32>
    %c0_45 = arith.constant 0 : index
    %c1_46 = arith.constant 1 : index
    %c0_47 = arith.constant 0 : index
    %66 = vector.load %arg14[%c0_45, %c1_46, %c0_47] : memref<18x18x32xf32, #tpu.memory_space<vmem>>, vector<16x16x32xf32>
    %67 = vector.shape_cast %66 : vector<16x16x32xf32> to vector<256x32xf32>
    %68 = arith.truncf %67 : vector<256x32xf32> to vector<256x32xbf16>
    %c1_48 = arith.constant 1 : index
    %c0_49 = arith.constant 0 : index
    %c0_50 = arith.constant 0 : index
    %69 = vector.load %arg11[%c1_48, %c0_49, %c0_50] : memref<9x32x4xbf16, #tpu.memory_space<vmem>>, vector<1x32x4xbf16>
    %70 = vector.shape_cast %69 : vector<1x32x4xbf16> to vector<32x4xbf16>
    %cst_51 = arith.constant dense<0.000000e+00> : vector<256x4xf32>
    %71 = tpu.matmul %68, %70, %cst_51 {dimension_numbers = #tpu.dot_dimension_numbers<[1], [0], [0], [1], [0, 0, 1, 1], [], []>} : vector<256x32xbf16>, vector<32x4xbf16>, vector<256x4xf32> -> vector<256x4xf32>
    %72 = arith.addf %65, %71 : vector<256x4xf32>
    %c0_52 = arith.constant 0 : index
    %c2 = arith.constant 2 : index
    %c0_53 = arith.constant 0 : index
    %73 = vector.load %arg14[%c0_52, %c2, %c0_53] : memref<18x18x32xf32, #tpu.memory_space<vmem>>, vector<16x16x32xf32>
    %74 = vector.shape_cast %73 : vector<16x16x32xf32> to vector<256x32xf32>
    %75 = arith.truncf %74 : vector<256x32xf32> to vector<256x32xbf16>
    %c2_54 = arith.constant 2 : index
    %c0_55 = arith.constant 0 : index
    %c0_56 = arith.constant 0 : index
    %76 = vector.load %arg11[%c2_54, %c0_55, %c0_56] : memref<9x32x4xbf16, #tpu.memory_space<vmem>>, vector<1x32x4xbf16>
    %77 = vector.shape_cast %76 : vector<1x32x4xbf16> to vector<32x4xbf16>
    %cst_57 = arith.constant dense<0.000000e+00> : vector<256x4xf32>
    %78 = tpu.matmul %75, %77, %cst_57 {dimension_numbers = #tpu.dot_dimension_numbers<[1], [0], [0], [1], [0, 0, 1, 1], [], []>} : vector<256x32xbf16>, vector<32x4xbf16>, vector<256x4xf32> -> vector<256x4xf32>
    %79 = arith.addf %72, %78 : vector<256x4xf32>
    %c1_58 = arith.constant 1 : index
    %c0_59 = arith.constant 0 : index
    %c0_60 = arith.constant 0 : index
    %80 = vector.load %arg14[%c1_58, %c0_59, %c0_60] : memref<18x18x32xf32, #tpu.memory_space<vmem>>, vector<16x16x32xf32>
    %81 = vector.shape_cast %80 : vector<16x16x32xf32> to vector<256x32xf32>
    %82 = arith.truncf %81 : vector<256x32xf32> to vector<256x32xbf16>
    %c3 = arith.constant 3 : index
    %c0_61 = arith.constant 0 : index
    %c0_62 = arith.constant 0 : index
    %83 = vector.load %arg11[%c3, %c0_61, %c0_62] : memref<9x32x4xbf16, #tpu.memory_space<vmem>>, vector<1x32x4xbf16>
    %84 = vector.shape_cast %83 : vector<1x32x4xbf16> to vector<32x4xbf16>
    %cst_63 = arith.constant dense<0.000000e+00> : vector<256x4xf32>
    %85 = tpu.matmul %82, %84, %cst_63 {dimension_numbers = #tpu.dot_dimension_numbers<[1], [0], [0], [1], [0, 0, 1, 1], [], []>} : vector<256x32xbf16>, vector<32x4xbf16>, vector<256x4xf32> -> vector<256x4xf32>
    %86 = arith.addf %79, %85 : vector<256x4xf32>
    %c1_64 = arith.constant 1 : index
    %c1_65 = arith.constant 1 : index
    %c0_66 = arith.constant 0 : index
    %87 = vector.load %arg14[%c1_64, %c1_65, %c0_66] : memref<18x18x32xf32, #tpu.memory_space<vmem>>, vector<16x16x32xf32>
    %88 = vector.shape_cast %87 : vector<16x16x32xf32> to vector<256x32xf32>
    %89 = arith.truncf %88 : vector<256x32xf32> to vector<256x32xbf16>
    %c4 = arith.constant 4 : index
    %c0_67 = arith.constant 0 : index
    %c0_68 = arith.constant 0 : index
    %90 = vector.load %arg11[%c4, %c0_67, %c0_68] : memref<9x32x4xbf16, #tpu.memory_space<vmem>>, vector<1x32x4xbf16>
    %91 = vector.shape_cast %90 : vector<1x32x4xbf16> to vector<32x4xbf16>
    %cst_69 = arith.constant dense<0.000000e+00> : vector<256x4xf32>
    %92 = tpu.matmul %89, %91, %cst_69 {dimension_numbers = #tpu.dot_dimension_numbers<[1], [0], [0], [1], [0, 0, 1, 1], [], []>} : vector<256x32xbf16>, vector<32x4xbf16>, vector<256x4xf32> -> vector<256x4xf32>
    %93 = arith.addf %86, %92 : vector<256x4xf32>
    %c1_70 = arith.constant 1 : index
    %c2_71 = arith.constant 2 : index
    %c0_72 = arith.constant 0 : index
    %94 = vector.load %arg14[%c1_70, %c2_71, %c0_72] : memref<18x18x32xf32, #tpu.memory_space<vmem>>, vector<16x16x32xf32>
    %95 = vector.shape_cast %94 : vector<16x16x32xf32> to vector<256x32xf32>
    %96 = arith.truncf %95 : vector<256x32xf32> to vector<256x32xbf16>
    %c5 = arith.constant 5 : index
    %c0_73 = arith.constant 0 : index
    %c0_74 = arith.constant 0 : index
    %97 = vector.load %arg11[%c5, %c0_73, %c0_74] : memref<9x32x4xbf16, #tpu.memory_space<vmem>>, vector<1x32x4xbf16>
    %98 = vector.shape_cast %97 : vector<1x32x4xbf16> to vector<32x4xbf16>
    %cst_75 = arith.constant dense<0.000000e+00> : vector<256x4xf32>
    %99 = tpu.matmul %96, %98, %cst_75 {dimension_numbers = #tpu.dot_dimension_numbers<[1], [0], [0], [1], [0, 0, 1, 1], [], []>} : vector<256x32xbf16>, vector<32x4xbf16>, vector<256x4xf32> -> vector<256x4xf32>
    %100 = arith.addf %93, %99 : vector<256x4xf32>
    %c2_76 = arith.constant 2 : index
    %c0_77 = arith.constant 0 : index
    %c0_78 = arith.constant 0 : index
    %101 = vector.load %arg14[%c2_76, %c0_77, %c0_78] : memref<18x18x32xf32, #tpu.memory_space<vmem>>, vector<16x16x32xf32>
    %102 = vector.shape_cast %101 : vector<16x16x32xf32> to vector<256x32xf32>
    %103 = arith.truncf %102 : vector<256x32xf32> to vector<256x32xbf16>
    %c6 = arith.constant 6 : index
    %c0_79 = arith.constant 0 : index
    %c0_80 = arith.constant 0 : index
    %104 = vector.load %arg11[%c6, %c0_79, %c0_80] : memref<9x32x4xbf16, #tpu.memory_space<vmem>>, vector<1x32x4xbf16>
    %105 = vector.shape_cast %104 : vector<1x32x4xbf16> to vector<32x4xbf16>
    %cst_81 = arith.constant dense<0.000000e+00> : vector<256x4xf32>
    %106 = tpu.matmul %103, %105, %cst_81 {dimension_numbers = #tpu.dot_dimension_numbers<[1], [0], [0], [1], [0, 0, 1, 1], [], []>} : vector<256x32xbf16>, vector<32x4xbf16>, vector<256x4xf32> -> vector<256x4xf32>
    %107 = arith.addf %100, %106 : vector<256x4xf32>
    %c2_82 = arith.constant 2 : index
    %c1_83 = arith.constant 1 : index
    %c0_84 = arith.constant 0 : index
    %108 = vector.load %arg14[%c2_82, %c1_83, %c0_84] : memref<18x18x32xf32, #tpu.memory_space<vmem>>, vector<16x16x32xf32>
    %109 = vector.shape_cast %108 : vector<16x16x32xf32> to vector<256x32xf32>
    %110 = arith.truncf %109 : vector<256x32xf32> to vector<256x32xbf16>
    %c7 = arith.constant 7 : index
    %c0_85 = arith.constant 0 : index
    %c0_86 = arith.constant 0 : index
    %111 = vector.load %arg11[%c7, %c0_85, %c0_86] : memref<9x32x4xbf16, #tpu.memory_space<vmem>>, vector<1x32x4xbf16>
    %112 = vector.shape_cast %111 : vector<1x32x4xbf16> to vector<32x4xbf16>
    %cst_87 = arith.constant dense<0.000000e+00> : vector<256x4xf32>
    %113 = tpu.matmul %110, %112, %cst_87 {dimension_numbers = #tpu.dot_dimension_numbers<[1], [0], [0], [1], [0, 0, 1, 1], [], []>} : vector<256x32xbf16>, vector<32x4xbf16>, vector<256x4xf32> -> vector<256x4xf32>
    %114 = arith.addf %107, %113 : vector<256x4xf32>
    %c2_88 = arith.constant 2 : index
    %c2_89 = arith.constant 2 : index
    %c0_90 = arith.constant 0 : index
    %115 = vector.load %arg14[%c2_88, %c2_89, %c0_90] : memref<18x18x32xf32, #tpu.memory_space<vmem>>, vector<16x16x32xf32>
    %116 = vector.shape_cast %115 : vector<16x16x32xf32> to vector<256x32xf32>
    %117 = arith.truncf %116 : vector<256x32xf32> to vector<256x32xbf16>
    %c8 = arith.constant 8 : index
    %c0_91 = arith.constant 0 : index
    %c0_92 = arith.constant 0 : index
    %118 = vector.load %arg11[%c8, %c0_91, %c0_92] : memref<9x32x4xbf16, #tpu.memory_space<vmem>>, vector<1x32x4xbf16>
    %119 = vector.shape_cast %118 : vector<1x32x4xbf16> to vector<32x4xbf16>
    %cst_93 = arith.constant dense<0.000000e+00> : vector<256x4xf32>
    %120 = tpu.matmul %117, %119, %cst_93 {dimension_numbers = #tpu.dot_dimension_numbers<[1], [0], [0], [1], [0, 0, 1, 1], [], []>} : vector<256x32xbf16>, vector<32x4xbf16>, vector<256x4xf32> -> vector<256x4xf32>
    %121 = arith.addf %114, %120 : vector<256x4xf32>
    %c0_94 = arith.constant 0 : index
    %c0_95 = arith.constant 0 : index
    %122 = vector.load %arg12[%c0_94, %c0_95] : memref<1x4xf32, #tpu.memory_space<vmem>>, vector<1x4xf32>
    %123 = vector.broadcast %122 : vector<1x4xf32> to vector<256x4xf32>
    %124 = arith.addf %121, %123 : vector<256x4xf32>
    %c0_96 = arith.constant 0 : index
    %c0_97 = arith.constant 0 : index
    %c0_98 = arith.constant 0 : index
    %125 = vector.load %arg13[%c0_96, %c0_97, %c0_98] : memref<1x256x4xf32, #tpu.memory_space<vmem>>, vector<1x256x4xf32>
    %126 = vector.shape_cast %125 : vector<1x256x4xf32> to vector<256x4xf32>
    %127 = vector.shape_cast %124 : vector<256x4xf32> to vector<1x256x4xf32>
    tpu.vector_store %arg13[%c0_96, %c0_97, %c0_98], %127 {strides = array<i32>} : memref<1x256x4xf32, #tpu.memory_space<vmem>>, vector<1x256x4xf32>,
    return
  }
  func.func @transform_0(%arg0: i32) -> (i32, i32, i32) {
    %c0_i32 = arith.constant 0 : i32
    %c0_i32_0 = arith.constant 0 : i32
    %c0_i32_1 = arith.constant 0 : i32
    return %arg0, %c0_i32, %c0_i32_0 : i32, i32, i32
  }
  func.func @transform_1(%arg0: i32) -> (i32, i32, i32) {
    %c0_i32 = arith.constant 0 : i32
    %c0_i32_0 = arith.constant 0 : i32
    %c0_i32_1 = arith.constant 0 : i32
    return %arg0, %c0_i32, %c0_i32_0 : i32, i32, i32
  }
  func.func @transform_2(%arg0: i32) -> (i32, i32, i32) {
    %c0_i32 = arith.constant 0 : i32
    %c0_i32_0 = arith.constant 0 : i32
    %c0_i32_1 = arith.constant 0 : i32
    return %arg0, %c0_i32, %c0_i32_0 : i32, i32, i32
  }
  func.func @transform_3(%arg0: i32) -> (i32, i32) {
    %c0_i32 = arith.constant 0 : i32
    %c0_i32_0 = arith.constant 0 : i32
    %c0_i32_1 = arith.constant 0 : i32
    return %c0_i32, %c0_i32_0 : i32, i32
  }
  func.func @transform_4(%arg0: i32) -> (i32, i32) {
    %c0_i32 = arith.constant 0 : i32
    %c0_i32_0 = arith.constant 0 : i32
    %c0_i32_1 = arith.constant 0 : i32
    return %c0_i32, %c0_i32_0 : i32, i32
  }
  func.func @transform_5(%arg0: i32) -> (i32, i32) {
    %c0_i32 = arith.constant 0 : i32
    %c0_i32_0 = arith.constant 0 : i32
    %c0_i32_1 = arith.constant 0 : i32
    return %c0_i32, %c0_i32_0 : i32, i32
  }
  func.func @transform_6(%arg0: i32) -> (i32, i32) {
    %c0_i32 = arith.constant 0 : i32
    %c0_i32_0 = arith.constant 0 : i32
    %c0_i32_1 = arith.constant 0 : i32
    return %c0_i32, %c0_i32_0 : i32, i32
  }
  func.func @transform_7(%arg0: i32) -> (i32, i32) {
    %c0_i32 = arith.constant 0 : i32
    %c0_i32_0 = arith.constant 0 : i32
    %c0_i32_1 = arith.constant 0 : i32
    return %c0_i32, %c0_i32_0 : i32, i32
  }
  func.func @transform_8(%arg0: i32) -> (i32, i32) {
    %c0_i32 = arith.constant 0 : i32
    %c0_i32_0 = arith.constant 0 : i32
    %c0_i32_1 = arith.constant 0 : i32
    return %c0_i32, %c0_i32_0 : i32, i32
  }
  func.func @transform_9(%arg0: i32) -> (i32, i32) {
    %c0_i32 = arith.constant 0 : i32
    %c0_i32_0 = arith.constant 0 : i32
    %c0_i32_1 = arith.constant 0 : i32
    return %c0_i32, %c0_i32_0 : i32, i32
  }
  func.func @transform_10(%arg0: i32) -> (i32, i32, i32) {
    %c0_i32 = arith.constant 0 : i32
    %c0_i32_0 = arith.constant 0 : i32
    %c0_i32_1 = arith.constant 0 : i32
    %c0_i32_2 = arith.constant 0 : i32
    return %c0_i32, %c0_i32_0, %c0_i32_1 : i32, i32, i32
  }
  func.func @transform_11(%arg0: i32) -> (i32, i32) {
    %c0_i32 = arith.constant 0 : i32
    %c0_i32_0 = arith.constant 0 : i32
    %c0_i32_1 = arith.constant 0 : i32
    return %c0_i32, %c0_i32_0 : i32, i32
  }
  func.func @transform_12(%arg0: i32) -> (i32, i32, i32) {
    %c0_i32 = arith.constant 0 : i32
    %c0_i32_0 = arith.constant 0 : i32
    %c0_i32_1 = arith.constant 0 : i32
    return %arg0, %c0_i32, %c0_i32_0 : i32, i32, i32
  }
}

</mosaic_0001>

<bundles_post_ra>
// kernel: tile.23
= control target key start
LH: loop header
LB: loop body
LE: loop exit
PB: predicated region body
PF: predicated region fallthrough
CT: control target
= control target key end

     0   :  { %s22_s0 = inlined_call_operand.vmem [shape: f32[32], index: 0, kind: input, shape index: {}]   ;;  %s23_s1 = inlined_call_operand.vmem [shape: f32[4,32], index: 1, kind: output, shape index: {}]  }
   0x1   :  { %v4_v0 = vld [vmem:[%s22_s0] ss:$0 sm:$0xff] }
   0x2   :  { %5 = vst [vmem:[%s23_s1] sm:$0xf] %v4_v0 }

// kernel: tile.24
= control target key start
LH: loop header
LB: loop body
LE: loop exit
PB: predicated region body
PF: predicated region fallthrough
CT: control target
= control target key end

     0   :  { %vm7_vm0 = vcmask 261120   ;;  %s37_s8 = smov 32   ;;  %s38_s9 = smov 64   ;;  %vm13_vm1 = vcmask 1048320   ;;  %vm19_vm2 = vcmask 785920   ;;  %vm25_vm3 = vcmask 523520   ;;  %s55_s0 = inlined_call_operand.vmem [shape: f32[4,32], index: 0, kind: input, shape index: {}]   ;;  %s56_s1 = inlined_call_operand.vmem [shape: f32[1,128], index: 1, kind: output, shape index: {}]  }
   0x1   :  { %v4_v0 = vld [vmem:[%s55_s0] sm:$0xf]  ;;  %s36_s0 = smov 96  }
   0x2   :  { %5 = vst [vmem:[#allocation1] sm:$0xf] %v4_v0 }
   0x9   :  { %v10_v1 = vld [vmem:[#allocation1 + $0x3] sm:$0x1]   ;;  %v22_v2 = vld [vmem:[#allocation1 + $0x1] sm:$0x1]   ;;  %v6_v3 = vld [vmem:[#allocation1] sm:$0x1]  }
   0xa   :  { %11 = vrot.lane.b32.xlu0 %v10_v1, %s36_s0  ;;  %23 = vrot.lane.b32.xlu1 %v22_v2, %s37_s8  ;;  %v16_v4 = vld [vmem:[#allocation1 + $0x2] sm:$0x1]   ;;  %8 = vst.msk [vmem:[#allocation0] sm:$0x1] %vm7_vm0, %v6_v3  }
   0xe   :  { %17 = vrot.lane.b32.xlu0 %v16_v4, %s38_s9 }
  0x7c   :  { %v12_v5 = vpop.permute.xlu0 %11   ;;  %v24_v6 = vpop.permute.xlu1 %23  }
  0x7d   :  { %14 = vst.msk [vmem:[#allocation0] sm:$0x1] %vm13_vm1, %v12_v5  }
  0x80   :  { %v18_v7 = vpop.permute.xlu0 %17  }
  0x81   :  { %20 = vst.msk [vmem:[#allocation0] sm:$0x1] %vm19_vm2, %v18_v7  }
  0x82   :  { %26 = vst.msk [vmem:[#allocation0] sm:$0x1] %vm25_vm3, %v24_v6  }
  0x89   :  { %v30_v8 = vld [vmem:[#allocation0] sm:$0x1] }
  0x8a   :  { %32 = vst [vmem:[%s56_s1] sm:$0x1] %v30_v8 }

// kernel: posectrl_forward.2
= control target key start
LH: loop header
LB: loop body
LE: loop exit
PB: predicated region body
PF: predicated region fallthrough
CT: control target
= control target key end

     0   :  { %v1360_v0 = vmov 0.0|0.0   ;;  %vm1361_vm0 = vmmov 0   ;;  %v1362_v4 = vmov 0.0   ;;  %vm92_vm1 = vcmask 261120   ;;  %s1767_s4 = inlined_call_operand.vmem [shape: f32[32,64], index: 4, kind: input, shape index: {}]   ;;  %s1768_s0 = inlined_call_operand.vmem [shape: f32[2,32], index: 0, kind: input, shape index: {}]   ;;  %s1769_s6 = inlined_call_operand.vmem [shape: f32[64,128], index: 6, kind: input, shape index: {}]   ;;  %s1770_s3 = inlined_call_operand.vmem [shape: f32[128,128], index: 3, kind: input, shape index: {}]   ;;  %s1771_s5 = inlined_call_operand.vmem [shape: f32[1,64], index: 5, kind: input, shape index: {}]   ;;  %s1772_s10 = inlined_call_operand.vmem [shape: f32[64,128], index: 10, kind: input, shape index: {}]   ;;  %s1773_s7 = inlined_call_operand.vmem [shape: f32[1,128], index: 7, kind: input, shape index: {}]   ;;  %s1774_s1 = inlined_call_operand.vmem [shape: f32[2,64], index: 1, kind: input, shape index: {}]   ;;  %s1775_s11 = inlined_call_operand.vmem [shape: f32[1,128], index: 11, kind: input, shape index: {}]   ;;  %s1776_s14 = inlined_call_operand.vmem [shape: f32[32,32], index: 14, kind: input, shape index: {}]   ;;  %s1777_s2 = inlined_call_operand.vmem [shape: f32[2,32], index: 2, kind: input, shape index: {}]   ;;  %s1778_s16 = inlined_call_operand.vmem [shape: f32[32,32], index: 16, kind: input, shape index: {}]   ;;  %s1779_s15 = inlined_call_operand.vmem [shape: f32[1,32], index: 15, kind: input, shape index: {}]   ;;  %s1780_s8 = inlined_call_operand.vmem [shape: f32[1,128], index: 8, kind: input, shape index: {}]   ;;  %s1781_s12 = inlined_call_operand.vmem [shape: f32[1,128], index: 12, kind: input, shape index: {}]   ;;  %s1782_s9 = inlined_call_operand.vmem [shape: f32[1,128], index: 9, kind: input, shape index: {}]   ;;  %s1783_s13 = inlined_call_operand.vmem [shape: f32[1,128], index: 13, kind: input, shape index: {}]   ;;  %s1784_s19 = inlined_call_operand.vmem [shape: f32[2,256], index: 19, kind: output, shape index: {0}]   ;;  %s1785_s17 = inlined_call_operand.vmem [shape: f32[1,32], index: 17, kind: input, shape index: {}]   ;;  %s1786_s18 = inlined_call_operand.vmem [shape: f32[1,32], index: 18, kind: input, shape index: {}]   ;;  %s1787_s20 = inlined_call_operand.vmem [shape: f32[2,32], index: 20, kind: output, shape index: {1}]  }
   0x1   :  { %1791 = sst [smem:[#allocation2_spill]] %s1767_s4  ;;  %1207 = vmatprep.subr.bf16.mxu0 %v1360_v0  ;;  %1004 = vmatprep.mubr.msk.f32.mxu0 %vm1361_vm0, %v1362_v4  ;;  %vm188_vm2 = vcmask 523264   ;;  %v423_v54 = vld [vmem:[%s1772_s10] sm:$0xff]  ;;  %v424_v55 = vld [vmem:[%s1772_s10 + $0x8] sm:$0xff]  ;;  %v425_v61 = vld [vmem:[%s1772_s10 + $0x10] sm:$0xff]  ;;  %vm867_vm3 = vcmask 254976  }
   0x2   :  { %1792 = sst [smem:[#allocation3_spill]] %s1768_s0  ;;  %s1796_s23 = sld [smem:[#allocation2_spill]]  ;;  %1213 = vmatprep.subr.bf16.mxu1 %v1360_v0  ;;  %1023 = vmatprep.mubr.msk.f32.mxu1 %vm1361_vm0, %v1362_v4  ;;  %v880_v56 = vld [vmem:[%s1773_s7] ss:$0 sm:$0xff]  ;;  %v1274_v58 = vpack.c.bf16 %v424_v55, %v423_v54  ;;  %v426_v62 = vld [vmem:[%s1772_s10 + $0x18] sm:$0xff] }
   0x3   :  { %1793 = sst [smem:[#allocation4_spill]] %s1769_s6  ;;  %s1797_s29 = sld [smem:[#allocation3_spill]]  ;;  %v1277_v63 = vpack.c.bf16 %v426_v62, %v425_v61  ;;  %v883_v54 = vld [vmem:[%s1782_s9] ss:$0 sm:$0xff] }
   0x4   :  { %1794 = sst [smem:[#allocation5_spill]] %s1770_s3  ;;  %s1798_s21 = sld [smem:[#allocation4_spill]]  ;;  %v887_v55 = vld [vmem:[%s1783_s13] ss:$0 sm:$0xff] }
   0x5   :  { %1795 = sst [smem:[#allocation6_spill]] %s1771_s5  ;;  %v894_v62 = vld [vmem:[%s1786_s18] ss:$0 sm:$0xff] }
   0x6   :  { %s1800_s24 = sld [smem:[#allocation6_spill]] }
   0x8   :  { %v81_v1 = vld [vmem:[%s1796_s23] sm:$0xff]  ;;  %v82_v2 = vld [vmem:[%s1796_s23 + $0x8] sm:$0xff]  ;;  %v83_v3 = vld [vmem:[%s1796_s23 + $0x10] sm:$0xff] }
   0x9   :  { %v1208_v5 = vpack.c.bf16 %v82_v2, %v81_v1  ;;  %v84_v6 = vld [vmem:[%s1796_s23 + $0x18] sm:$0xff]  ;;  %v80_v8 = vld [vmem:[%s1797_s29] sm:$0x3]  ;;  %s1799_s23 = sld [smem:[#allocation5_spill]]  ;;  %v428_v2 = vld [vmem:[%s1772_s10 + $0x28] sm:$0xff] }
   0xa   :  { %v1211_v7 = vpack.c.bf16 %v84_v6, %v83_v3  ;;  %v173_v9 = vld [vmem:[%s1798_s21] sm:$0xff]  ;;  %v174_v10 = vld [vmem:[%s1798_s21 + $0x8] sm:$0xff]  ;;  %v175_v12 = vld [vmem:[%s1798_s21 + $0x10] sm:$0xff] }
   0xb   :  { %1209 = vmatpush3.bf16.msra.mxu0 %v1208_v5  ;;  %v1214_v11 = vpack.c.bf16 %v174_v10, %v173_v9  ;;  %v176_v13 = vld [vmem:[%s1798_s21 + $0x18] sm:$0xff]  ;;  %v177_v15 = vld [vmem:[%s1798_s21 + $0x20] sm:$0xff]  ;;  %v178_v16 = vld [vmem:[%s1798_s21 + $0x28] sm:$0xff] }
   0xc   :  { %1210 = vmatprep.subr.bf16.mxu0 %v1360_v0  ;;  %v1217_v14 = vpack.c.bf16 %v176_v13, %v175_v12  ;;  %v1220_v17 = vpack.c.bf16 %v178_v16, %v177_v15  ;;  %v179_v18 = vld [vmem:[%s1798_s21 + $0x30] sm:$0xff]  ;;  %v180_v19 = vld [vmem:[%s1798_s21 + $0x38] sm:$0xff]  ;;  %v877_v42 = vld [vmem:[%s1800_s24] ss:$0 sm:$0xff] }
   0xd   :  { %1215 = vmatpush3.bf16.msra.mxu1 %v1214_v11  ;;  %v1223_v20 = vpack.c.bf16 %v180_v19, %v179_v18  ;;  %v427_v1 = vld [vmem:[%s1772_s10 + $0x20] sm:$0xff]  ;;  %v429_v5 = vld [vmem:[%s1772_s10 + $0x30] sm:$0xff]  ;;  %v430_v6 = vld [vmem:[%s1772_s10 + $0x38] sm:$0xff] }
   0xe   :  { %1216 = vmatprep.subr.bf16.mxu1 %v1360_v0  ;;  %v1280_v3 = vpack.c.bf16 %v428_v2, %v427_v1  ;;  %v884_v15 = vld [vmem:[%s1775_s11] ss:$0 sm:$0xff] }
   0xf   :  { %1212 = vmatpush3.bf16.msra.mxu0 %v1211_v7  ;;  %v64_v21 = vld [vmem:[%s1799_s23] sm:$0xff]  ;;  %v65_v22 = vld [vmem:[%s1799_s23 + $0x8] sm:$0xff]  ;;  %v66_v23 = vld [vmem:[%s1799_s23 + $0x10] sm:$0xff]  ;;  %v1283_v7 = vpack.c.bf16 %v430_v6, %v429_v5 }
  0x10   :  { %1225 = vmatprep.subr.bf16.mxu0 %v1360_v0  ;;  %v1531_v24 = vpack.c.bf16 %v65_v22, %v64_v21  ;;  %v67_v25 = vld [vmem:[%s1799_s23 + $0x18] sm:$0xff]  ;;  %v68_v27 = vld [vmem:[%s1799_s23 + $0x20] sm:$0xff]  ;;  %v69_v28 = vld [vmem:[%s1799_s23 + $0x28] sm:$0xff] }
  0x11   :  { %1218 = vmatpush3.bf16.msra.mxu1 %v1217_v14  ;;  %v1537_v26 = vpack.c.bf16 %v67_v25, %v66_v23  ;;  %v1547_v29 = vpack.c.bf16 %v69_v28, %v68_v27  ;;  %v70_v30 = vld [vmem:[%s1799_s23 + $0x30] sm:$0xff]  ;;  %v71_v31 = vld [vmem:[%s1799_s23 + $0x38] sm:$0xff]  ;;  %v72_v33 = vld [vmem:[%s1799_s23 + $0x40] sm:$0xff] }
  0x12   :  { %1005 = vmatmul.mubr.msk.f32.vlgmr.msra.gmra.mrb[0].mxu0 %vm92_vm1, %v80_v8  ;;  %1219 = vmatprep.subr.bf16.mxu1 %v1360_v0  ;;  %v1557_v32 = vpack.c.bf16 %v71_v31, %v70_v30  ;;  %v73_v34 = vld [vmem:[%s1799_s23 + $0x48] sm:$0xff]  ;;  %v74_v36 = vld [vmem:[%s1799_s23 + $0x50] sm:$0xff]  ;;  %v75_v37 = vld [vmem:[%s1799_s23 + $0x58] sm:$0xff] }
  0x13   :  { %1058 = vmatprep.mubr.msk.f32.mxu0 %vm1361_vm0, %v1362_v4  ;;  %1227 = vmatpush3.bf16.msra.mxu0 %v1531_v24  ;;  %v1567_v35 = vpack.c.bf16 %v73_v34, %v72_v33  ;;  %v1577_v38 = vpack.c.bf16 %v75_v37, %v74_v36  ;;  %v76_v39 = vld [vmem:[%s1799_s23 + $0x60] sm:$0xff]  ;;  %v77_v40 = vld [vmem:[%s1799_s23 + $0x68] sm:$0xff]  ;;  %v78_v51 = vld [vmem:[%s1799_s23 + $0x70] sm:$0xff] }
  0x14   :  { %1228 = vmatprep.subr.bf16.mxu0 %v1360_v0  ;;  %v1587_v41 = vpack.c.bf16 %v77_v40, %v76_v39  ;;  %v79_v52 = vld [vmem:[%s1799_s23 + $0x78] sm:$0xff]  ;;  %v422_v8 = vld [vmem:[%s1774_s1] sm:$0x3]  ;;  %v776_v27 = vld [vmem:[%s1778_s16 + $0x8] sm:$0xff] }
  0x15   :  { %1221 = vmatpush3.bf16.msra.mxu1 %v1220_v17  ;;  %v1618_v53 = vpack.c.bf16 %v79_v52, %v78_v51  ;;  %v684_v16 = vld [vmem:[%s1776_s14] sm:$0xff]  ;;  %v685_v17 = vld [vmem:[%s1776_s14 + $0x8] sm:$0xff]  ;;  %v687_v21 = vld [vmem:[%s1776_s14 + $0x18] sm:$0xff] }
  0x16   :  { %1222 = vmatprep.subr.bf16.mxu1 %v1360_v0  ;;  %v1334_v19 = vpack.c.bf16 %v685_v17, %v684_v16  ;;  %v683_v23 = vld [vmem:[%s1777_s2] sm:$0x3]  ;;  %v777_v33 = vld [vmem:[%s1778_s16 + $0x10] sm:$0xff]  ;;  %v778_v34 = vld [vmem:[%s1778_s16 + $0x18] sm:$0xff] }
  0x17   :  { %1230 = vmatpush3.bf16.msra.mxu0 %v1537_v26  ;;  %v1343_v36 = vpack.c.bf16 %v778_v34, %v777_v33  ;;  %v886_v51 = vld [vmem:[%s1781_s12] ss:$0 sm:$0xff] }
  0x18   :  { %1231 = vmatprep.subr.bf16.mxu0 %v1360_v0 }
  0x19   :  { %1224 = vmatpush3.bf16.msra.mxu1 %v1223_v20  ;;  %v686_v20 = vld [vmem:[%s1776_s14 + $0x10] sm:$0xff] }
  0x1a   :  { %1249 = vmatprep.subr.bf16.mxu1 %v1360_v0  ;;  %v1337_v22 = vpack.c.bf16 %v687_v21, %v686_v20 }
  0x1b   :  { %1233 = vmatpush3.bf16.msra.mxu0 %v1547_v29 }
  0x1c   :  { %1234 = vmatprep.subr.bf16.mxu0 %v1360_v0 }
  0x1f   :  { %1236 = vmatpush3.bf16.msra.mxu0 %v1557_v32 }
  0x20   :  { %1237 = vmatprep.subr.bf16.mxu0 %v1360_v0 }
  0x23   :  { %1239 = vmatpush3.bf16.msra.mxu0 %v1567_v35 }
  0x24   :  { %1240 = vmatprep.subr.bf16.mxu0 %v1360_v0 }
  0x27   :  { %1242 = vmatpush3.bf16.msra.mxu0 %v1577_v38 }
  0x28   :  { %1243 = vmatprep.subr.bf16.mxu0 %v1360_v0 }
  0x2b   :  { %1245 = vmatpush3.bf16.msra.mxu0 %v1587_v41 }
  0x2c   :  { %1246 = vmatprep.subr.bf16.mxu0 %v1360_v0 }
  0x2f   :  { %1248 = vmatpush3.bf16.msra.mxu0 %v1618_v53 }
  0x30   :  { %1273 = vmatprep.subr.bf16.mxu0 %v1360_v0 }
  0xe5   :  { %v162_v43 = vpop.f32.mrb[0].mxu0 }
  0xe6   :  { %v163_v44 = vadd.f32 %v877_v42, %v162_v43  ;;  %v1006_v45 = vpop.f32.mrb[1].mxu0 }
  0xe8   :  { %v879_v46 = vmul.f32 -1.442695, %v163_v44 }
  0xea   :  { %1348 = vpow2.f32 %v879_v46 }
  0xf4   :  { %v1349_v47 = vpop.eup %1348 }
  0xf5   :  { %v169_v48 = vadd.f32 1.0, %v1349_v47 }
  0xf7   :  { %1350 = vrcp.f32 %v169_v48 }
 0x101   :  { %v1351_v49 = vpop.eup %1350 }
 0x102   :  { %v172_v50 = vmul.f32 %v1351_v49, %v163_v44  ;;  %v882_v49 = vld [vmem:[%s1780_s8] ss:$0 sm:$0xff] }
 0x104   :  { %1024 = vmatmul.mubr.msk.f32.vlgmr.msra.gmra.mrb[0].mxu1 %vm188_vm2, %v172_v50 }
 0x105   :  { %1251 = vmatpush3.bf16.msra.mxu1 %v1531_v24  ;;  %1093 = vmatprep.mubr.msk.f32.mxu1 %vm1361_vm0, %v1362_v4 }
 0x106   :  { %1252 = vmatprep.subr.bf16.mxu1 %v1360_v0 }
 0x109   :  { %1254 = vmatpush3.bf16.msra.mxu1 %v1537_v26 }
 0x10a   :  { %1255 = vmatprep.subr.bf16.mxu1 %v1360_v0 }
 0x10d   :  { %1257 = vmatpush3.bf16.msra.mxu1 %v1547_v29 }
 0x10e   :  { %1258 = vmatprep.subr.bf16.mxu1 %v1360_v0 }
 0x111   :  { %1260 = vmatpush3.bf16.msra.mxu1 %v1557_v32 }
 0x112   :  { %1261 = vmatprep.subr.bf16.mxu1 %v1360_v0 }
 0x115   :  { %1263 = vmatpush3.bf16.msra.mxu1 %v1567_v35 }
 0x116   :  { %1264 = vmatprep.subr.bf16.mxu1 %v1360_v0 }
 0x119   :  { %1266 = vmatpush3.bf16.msra.mxu1 %v1577_v38 }
 0x11a   :  { %1267 = vmatprep.subr.bf16.mxu1 %v1360_v0 }
 0x11d   :  { %1269 = vmatpush3.bf16.msra.mxu1 %v1587_v41 }
 0x11e   :  { %1270 = vmatprep.subr.bf16.mxu1 %v1360_v0 }
 0x121   :  { %1272 = vmatpush3.bf16.msra.mxu1 %v1618_v53 }
 0x122   :  { %1285 = vmatprep.subr.bf16.mxu1 %v1360_v0 }
 0x1d7   :  { %v258_v57 = vpop.f32.mrb[0].mxu1 }
 0x1d8   :  { %v259_v59 = vadd.f32 %v880_v56, %v258_v57  ;;  %v1025_v60 = vpop.f32.mrb[1].mxu1 }
 0x1d9   :  { %v892_v60 = vld [vmem:[%s1785_s17] ss:$0 sm:$0xff] }
 0x1da   :  { %1059 = vmatmul.mubr.f32.vlgmr.msra.gmra.mrb[2].mxu0 %v259_v59 }
 0x1db   :  { %1275 = vmatpush3.bf16.msra.mxu0 %v1274_v58  ;;  %1112 = vmatprep.mubr.msk.f32.mxu0 %vm1361_vm0, %v1362_v4 }
 0x1dc   :  { %1276 = vmatprep.subr.bf16.mxu0 %v1360_v0 }
 0x1df   :  { %1278 = vmatpush3.bf16.msra.mxu0 %v1277_v63 }
 0x1e0   :  { %1279 = vmatprep.subr.bf16.mxu0 %v1360_v0 }
 0x1e3   :  { %1281 = vmatpush3.bf16.msra.mxu0 %v1280_v3 }
 0x1e4   :  { %1282 = vmatprep.subr.bf16.mxu0 %v1360_v0 }
 0x1e7   :  { %1284 = vmatpush3.bf16.msra.mxu0 %v1283_v7 }
 0x1e8   :  { %1309 = vmatprep.subr.bf16.mxu0 %v1360_v0 }
 0x1ea   :  { %1113 = vmatmul.mubr.msk.f32.vlgmr.msra.gmra.mrb[4].mxu0 %vm188_vm2, %v422_v8 }
 0x1eb   :  { %1311 = vmatpush3.bf16.msra.mxu0 %v1531_v24  ;;  %1182 = vmatprep.mubr.msk.f32.mxu0 %vm1361_vm0, %v1362_v4 }
 0x1ec   :  { %1312 = vmatprep.subr.bf16.mxu0 %v1360_v0 }
 0x1ef   :  { %1314 = vmatpush3.bf16.msra.mxu0 %v1537_v26 }
 0x1f0   :  { %1315 = vmatprep.subr.bf16.mxu0 %v1360_v0 }
 0x1f3   :  { %1317 = vmatpush3.bf16.msra.mxu0 %v1547_v29 }
 0x1f4   :  { %1318 = vmatprep.subr.bf16.mxu0 %v1360_v0 }
 0x1f7   :  { %1320 = vmatpush3.bf16.msra.mxu0 %v1557_v32 }
 0x1f8   :  { %1321 = vmatprep.subr.bf16.mxu0 %v1360_v0 }
 0x1fb   :  { %1323 = vmatpush3.bf16.msra.mxu0 %v1567_v35 }
 0x1fc   :  { %1324 = vmatprep.subr.bf16.mxu0 %v1360_v0 }
 0x1ff   :  { %1326 = vmatpush3.bf16.msra.mxu0 %v1577_v38 }
 0x200   :  { %1327 = vmatprep.subr.bf16.mxu0 %v1360_v0 }
 0x203   :  { %1329 = vmatpush3.bf16.msra.mxu0 %v1587_v41 }
 0x204   :  { %1330 = vmatprep.subr.bf16.mxu0 %v1360_v0 }
 0x207   :  { %1332 = vmatpush3.bf16.msra.mxu0 %v1618_v53 }
 0x208   :  { %1339 = vmatprep.subr.bf16.mxu0 %v1360_v0 }
 0x2ad   :  { %v330_v9 = vpop.f32.mrb[2].mxu0 }
 0x2ae   :  { %v1679_v10 = vsub.f32 %v259_v59, %v330_v9  ;;  %v1060_v11 = vpop.f32.mrb[3].mxu0 }
 0x2b0   :  { %v335_v12 = vmul.f32 %v1679_v10, %v1679_v10 }
 0x2b2   :  { %1094 = vmatmul.mubr.f32.vlgmr.msra.gmra.mrb[2].mxu1 %v335_v12 }
 0x2b3   :  { %1287 = vmatpush3.bf16.msra.mxu1 %v1531_v24  ;;  %1147 = vmatprep.mubr.msk.f32.mxu1 %vm1361_vm0, %v1362_v4 }
 0x2b4   :  { %1288 = vmatprep.subr.bf16.mxu1 %v1360_v0 }
 0x2b7   :  { %1290 = vmatpush3.bf16.msra.mxu1 %v1537_v26  ;;  %v775_v26 = vld [vmem:[%s1778_s16] sm:$0xff] }
 0x2b8   :  { %1291 = vmatprep.subr.bf16.mxu1 %v1360_v0  ;;  %v1340_v31 = vpack.c.bf16 %v776_v27, %v775_v26 }
 0x2bb   :  { %1293 = vmatpush3.bf16.msra.mxu1 %v1547_v29 }
 0x2bc   :  { %1294 = vmatprep.subr.bf16.mxu1 %v1360_v0 }
 0x2bd   :  { %v507_v13 = vpop.f32.mrb[4].mxu0 }
 0x2be   :  { %v1114_v14 = vpop.f32.mrb[5].mxu0  ;;  %v508_v18 = vadd.f32 %v884_v15, %v507_v13 }
 0x2bf   :  { %1296 = vmatpush3.bf16.msra.mxu1 %v1557_v32 }
 0x2c0   :  { %1297 = vmatprep.subr.bf16.mxu1 %v1360_v0 }
 0x2c3   :  { %1299 = vmatpush3.bf16.msra.mxu1 %v1567_v35  ;;  %v889_v35 = vld [vmem:[%s1779_s15] ss:$0 sm:$0xff] }
 0x2c4   :  { %1300 = vmatprep.subr.bf16.mxu1 %v1360_v0 }
 0x2c7   :  { %1302 = vmatpush3.bf16.msra.mxu1 %v1577_v38 }
 0x2c8   :  { %1303 = vmatprep.subr.bf16.mxu1 %v1360_v0 }
 0x2cb   :  { %1305 = vmatpush3.bf16.msra.mxu1 %v1587_v41 }
 0x2cc   :  { %1306 = vmatprep.subr.bf16.mxu1 %v1360_v0 }
 0x2cf   :  { %1308 = vmatpush3.bf16.msra.mxu1 %v1618_v53 }
 0x2d0   :  { %1333 = vmatprep.subr.bf16.mxu1 %v1360_v0 }
 0x2d2   :  { %1148 = vmatmul.mubr.f32.vlgmr.msra.gmra.mrb[4].mxu1 %v508_v18 }
 0x2d3   :  { %1335 = vmatpush3.bf16.msra.mxu1 %v1334_v19  ;;  %1193 = vmatprep.mubr.msk.f32.mxu1 %vm1361_vm0, %v1362_v4 }
 0x2d4   :  { %1336 = vmatprep.subr.bf16.mxu1 %v1360_v0 }
 0x2d7   :  { %1338 = vmatpush3.bf16.msra.mxu1 %v1337_v22 }
 0x2da   :  { %1194 = vmatmul.mubr.msk.f32.vlgmr.msra.gmra.mrb[6].mxu1 %vm92_vm1, %v683_v23 }
 0x385   :  { %v402_v24 = vpop.f32.mrb[2].mxu1 }
 0x386   :  { %v1095_v25 = vpop.f32.mrb[3].mxu1  ;;  %v403_v45 = vadd.f32 1e-05, %v402_v24 }
 0x3a5   :  { %v579_v28 = vpop.f32.mrb[4].mxu1 }
 0x3a6   :  { %v583_v29 = vsub.f32 %v508_v18, %v579_v28  ;;  %v1149_v30 = vpop.f32.mrb[5].mxu1 }
 0x3a8   :  { %v584_v32 = vmul.f32 %v583_v29, %v583_v29 }
 0x3aa   :  { %1183 = vmatmul.mubr.f32.vlgmr.msra.gmra.mrb[6].mxu0 %v584_v32 }
 0x3ab   :  { %1341 = vmatpush3.bf16.msra.mxu0 %v1340_v31  ;;  %1204 = vmatprep.mubr.msk.f32.mxu0 %vm1361_vm0, %v1362_v4 }
 0x3ac   :  { %1342 = vmatprep.subr.bf16.mxu0 %v1360_v0 }
 0x3ad   :  { %v764_v37 = vpop.f32.mrb[6].mxu1 }
 0x3ae   :  { %v765_v38 = vadd.f32 %v889_v35, %v764_v37  ;;  %v1195_v39 = vpop.f32.mrb[7].mxu1 }
 0x3af   :  { %1344 = vmatpush3.bf16.msra.mxu0 %v1343_v36 }
 0x3b0   :  { %v891_v40 = vmul.f32 -1.442695, %v765_v38 }
 0x3b2   :  { %1352 = vpow2.f32 %v891_v40 }
 0x3bc   :  { %v1353_v41 = vpop.eup %1352 }
 0x3bd   :  { %v771_v42 = vadd.f32 1.0, %v1353_v41 }
 0x3bf   :  { %1354 = vrcp.f32 %v771_v42 }
 0x3c0   :  { %1356 = vrsqrt.f32 %v403_v45 }
 0x3c9   :  { %v1355_v43 = vpop.eup %1354 }
 0x3ca   :  { %v774_v44 = vmul.f32 %v1355_v43, %v765_v38  ;;  %v1357_v0 = vpop.eup %1356 }
 0x3cb   :  { %v407_v48 = vmul.f32 %v1357_v0, %v1679_v10 }
 0x3cc   :  { %1205 = vmatmul.mubr.msk.f32.vlgmr.msra.gmra.mrb[8].mxu0 %vm92_vm1, %v774_v44 }
 0x3cd   :  { %v414_v52 = vmul.f32 %v882_v49, %v407_v48 }
 0x3cf   :  { %v421_v57 = vadd.f32 %v883_v54, %v414_v52 }
 0x47d   :  { %v651_v46 = vpop.f32.mrb[6].mxu0 }
 0x47e   :  { %v652_v47 = vadd.f32 1e-05, %v651_v46  ;;  %v1184_v4 = vpop.f32.mrb[7].mxu0 }
 0x480   :  { %1358 = vrsqrt.f32 %v652_v47 }
 0x48a   :  { %v1359_v50 = vpop.eup %1358 }
 0x48b   :  { %v656_v53 = vmul.f32 %v1359_v50, %v583_v29 }
 0x48d   :  { %v663_v56 = vmul.f32 %v886_v51, %v656_v53 }
 0x48f   :  { %v670_v58 = vadd.f32 %v887_v55, %v663_v56 }
 0x491   :  { %v673_v59 = vcombine.low %v421_v57, %v670_v58 }
 0x493   :  { %888 = vst.sshfl [vmem:[%s1784_s19] sm:$0x33 pattern:$0x76325410] %v673_v59 }
 0x49f   :  { %v855_v61 = vpop.f32.mrb[8].mxu0 }
 0x4a0   :  { %v856_v63 = vadd.f32 %v892_v60, %v855_v61  ;;  %v1206_v1 = vpop.f32.mrb[9].mxu0 }
 0x4a2   :  { %v866_v2 = vadd.f32 %v894_v62, %v856_v63 }
 0x4a4   :  { %868 = vst.msk [vmem:[%s1787_s20] sm:$0x3] %vm867_vm3, %v866_v2 }

// kernel: posectrl_forward.3
= control target key start
LH: loop header
LB: loop body
LE: loop exit
PB: predicated region body
PF: predicated region fallthrough
CT: control target
= control target key end

     0   :  { %s7151_s21 = smov 0   ;;  %s8766_s0 = inlined_call_operand.vmem [shape: bf16[2,256,36], index: 0, kind: input, shape index: {}]   ;;  %s8767_s1 = inlined_call_operand.vmem [shape: bf16[2,8,32], index: 1, kind: input, shape index: {}]   ;;  %s8768_s2 = inlined_call_operand.vmem [shape: f32[2,1,32], index: 2, kind: input, shape index: {}]   ;;  %s8769_s3 = inlined_call_operand.vmem [shape: bf16[36,32], index: 3, kind: input, shape index: {}]   ;;  %s8770_s4 = inlined_call_operand.vmem [shape: bf16[32,32], index: 4, kind: input, shape index: {}]   ;;  %s8771_s5 = inlined_call_operand.vmem [shape: f32[1,32], index: 5, kind: input, shape index: {}]   ;;  %s8772_s6 = inlined_call_operand.vmem [shape: bf16[32,64], index: 6, kind: input, shape index: {}]   ;;  %s8773_s7 = inlined_call_operand.vmem [shape: f32[1,64], index: 7, kind: input, shape index: {}]   ;;  %s8774_s8 = inlined_call_operand.vmem [shape: bf16[32,32], index: 8, kind: input, shape index: {}]   ;;  %s8775_s9 = inlined_call_operand.vmem [shape: f32[1,32], index: 9, kind: input, shape index: {}]   ;;  %s8776_s10 = inlined_call_operand.vmem [shape: bf16[9,32,4], index: 10, kind: input, shape index: {}]   ;;  %s8777_s11 = inlined_call_operand.vmem [shape: f32[1,4], index: 11, kind: input, shape index: {}]   ;;  %s8778_s12 = inlined_call_operand.vmem [shape: f32[2,256,4], index: 12, kind: output, shape index: {}]  }
   0x1 LB: > { %s5391_s22 = sadd.s32 4294967295, %s7081_s21   ;;  %p5395_p0 = scmp.ge.s32.totalorder %s7081_s21, 1  ;;  %s7081_s21 = sphi %s7151_s21, %s22_s21  }
   0x2   : > { %p379_p1 = scmp.lt.s32.totalorder %s7081_s21, 3 }
   0x4   : > { %p380_p2 = pnand %p5395_p0, %p379_p1 }
   0x6   : > { %383 = sbr.rel (%p380_p2) target bundleno = 2175 (0x87f), region = 68 }
   0xd   : > { %v6776_v0 = vld [vmem:[%s8769_s3] sm:$0xff]   ;;  %v6777_v1 = vld [vmem:[%s8769_s3 + $0x8] sm:$0xff]   ;;  %p428_p3 = scmp.lt.s32.totalorder %s5391_s22, 1  ;;  %v6778_v2 = vld [vmem:[%s8769_s3 + $0x10] ss:$0 sps:$4 sm:$0x33]  }
   0xe   : > { %5996 = vmatprep.subr.bf16.mxu0 %v6776_v0  ;;  %vm634_vm0 = vcmask 1041408   ;;  %vm585_vm1 = vcmask 293888   ;;  %v6795_v20 = vld [vmem:[%s8772_s6] sm:$0xff]   ;;  %v8779_v21 = vmov 0.0   ;;  %v6796_v22 = vld [vmem:[%s8772_s6 + $0x8] sm:$0xff]   ;;  %vm7084_vm2 = vmmov 0  }
   0xf   : > { %5997 = vmatpush3.bf16.msra.mxu0 %v6776_v0  ;;  %s8837_s22 = smov (!%p428_p3, %s5391_s22), 1  ;;  %v636_v4 = vsel %vm634_vm0, %v6778_v2, 0  ;;  %6070 = vmatprep.subr.bf16.mxu1 %v8779_v21  ;;  %v6797_v23 = vld [vmem:[%s8770_s4] sm:$0xff]   ;;  %vm1063_vm3 = vcmask 261120   ;;  %v6798_v25 = vld [vmem:[%s8770_s4 + $0x8] sm:$0xff]   ;;  %vm1600_vm4 = vcmask 64512  }
  0x10   : > { %5998 = vmatprep.subr.bf16.mxu0 %v6777_v1  ;;  %s5740_s29 = sshll.u32 %s8837_s22, 7  ;;  %6071 = vmatpush3.bf16.msra.mxu1 %v6795_v20  ;;  %s5398_s23 = sshll.u32 %s8837_s22, 2  ;;  %2465 = vst.msk [vmem:[#allocation2] sm:$0xff] %vm1063_vm3, %v8779_v21  ;;  %2466 = vst.msk [vmem:[#allocation2 + $0x8] sm:$0xff] %vm1063_vm3, %v8779_v21  ;;  %vm2020_vm5 = vcmask 1043456   ;;  %vm2467_vm6 = vcmask 254976  }
  0x11   : > { %s7174_s14 = scalar_lea.vmem %s8766_s0, %s5740_s29  ;;  %6072 = vmatprep.subr.bf16.mxu1 %v8779_v21  ;;  %s436_s26 = scalar_lea.vmem %s8767_s1, %s5398_s23  ;;  %6074 = vmatprep.mubr.msk.bf16.mxu1 %vm7084_vm2, %v8779_v21  ;;  %2469 = vst.msk [vmem:[#allocation2 + $0x18] sm:$0xff] %vm1063_vm3, %v8779_v21  ;;  %2470 = vst.msk [vmem:[#allocation2 + $0x20] sm:$0xff] %vm1063_vm3, %v8779_v21  ;;  %vm5282_vm7 = vcmask 31744  }
  0x12   : > { %v6779_v3 = vld [vmem:[%s7174_s14] sm:$0xff]   ;;  %v6780_v5 = vld [vmem:[%s7174_s14 + $0x8] sm:$0xff]   ;;  %v6781_v6 = vld [vmem:[%s7174_s14 + $0x10] sm:$0xff]   ;;  %2472 = vst.msk [vmem:[#allocation2 + $0x30] sm:$0xff] %vm1063_vm3, %v8779_v21  ;;  %s439_s13 = scalar_lea.vmem %s8768_s2, %s8837_s22  ;;  %s7085_s18 = smov 96  }
  0x13   : > { %5999 = vmatpush3.bf16.msra.mxu0 %v6777_v1  ;;  %6002 = vmatprep.mubr.msk.bf16.mxu0 %vm585_vm1, %v6779_v3  ;;  %v6782_v7 = vld [vmem:[%s7174_s14 + $0x18] sm:$0xff]   ;;  %v6783_v8 = vld [vmem:[%s7174_s14 + $0x20] sm:$0xff]   ;;  %v6784_v9 = vld [vmem:[%s7174_s14 + $0x28] sm:$0xff]   ;;  %2473 = vst.msk [vmem:[#allocation2 + $0x38] sm:$0xff] %vm1063_vm3, %v8779_v21 }
  0x14   : > { %6762 = vmatprep.subr.msk.bf16.mxu0 %vm634_vm0, %v6778_v2  ;;  %v6785_v10 = vld [vmem:[%s7174_s14 + $0x30] sm:$0xff]   ;;  %v6786_v11 = vld [vmem:[%s7174_s14 + $0x38] sm:$0xff]   ;;  %v6787_v12 = vld [vmem:[%s7174_s14 + $0x40] sm:$0xff]   ;;  %6073 = vmatpush3.bf16.msra.mxu1 %v6796_v22  ;;  %2475 = vst.msk [vmem:[#allocation2 + $0x48] sm:$0xff] %vm1063_vm3, %v8779_v21 }
  0x15   : > { %v6788_v13 = vld [vmem:[%s7174_s14 + $0x48] sm:$0xff]   ;;  %v6789_v14 = vld [vmem:[%s7174_s14 + $0x50] sm:$0xff]   ;;  %v6790_v15 = vld [vmem:[%s7174_s14 + $0x58] sm:$0xff]   ;;  %2476 = vst.msk [vmem:[#allocation2 + $0x50] sm:$0xff] %vm1063_vm3, %v8779_v21 }
  0x16   : > { %v6791_v16 = vld [vmem:[%s7174_s14 + $0x60] sm:$0xff]   ;;  %v6792_v17 = vld [vmem:[%s7174_s14 + $0x68] sm:$0xff]   ;;  %v6793_v18 = vld [vmem:[%s7174_s14 + $0x70] sm:$0xff]   ;;  %2478 = vst.msk [vmem:[#allocation2 + $0x60] sm:$0xff] %vm1063_vm3, %v8779_v21 }
  0x17   : > { %6001 = vmatpush3.bf16.msra.mxu0 %v636_v4  ;;  %v6794_v19 = vld [vmem:[%s7174_s14 + $0x78] sm:$0xff]   ;;  %v1023_v24 = vld [vmem:[%s436_s26] sm:$0xf]  ;;  %2479 = vst.msk [vmem:[#allocation2 + $0x68] sm:$0xff] %vm1063_vm3, %v8779_v21  ;;  %2481 = vst.msk [vmem:[#allocation2 + $0x78] sm:$0xff] %vm1063_vm3, %v8779_v21 }
  0x18   : > { %6034 = vmatprep.subr.bf16.mxu0 %v6797_v23  ;;  %6075 = vmatmul.mubr.msk.bf16.vlgmr.msra.gmra.mrb[0].mxu1 %vm1063_vm3, %v1023_v24  ;;  %2482 = vst.msk [vmem:[#allocation2 + $0x80] sm:$0xff] %vm1063_vm3, %v8779_v21  ;;  %2484 = vst.msk [vmem:[#allocation2 + $0x90] sm:$0xff] %vm1063_vm3, %v8779_v21  ;;  %v7304_v26 = vld [vmem:[%s439_s13] ss:$0 sm:$0xff]  ;;  %s5741_s13 = sshll.u32 %s8837_s22, 8 }
  0x19   : > { %2485 = vst.msk [vmem:[#allocation2 + $0x98] sm:$0xff] %vm1063_vm3, %v8779_v21  ;;  %2487 = vst.msk [vmem:[#allocation2 + $0xa8] sm:$0xff] %vm1063_vm3, %v8779_v21 }
  0x1a   : > { %6003 = vmatmul.mubr.msk.bf16.vlgmr.msra.gmra.mrb[0].mxu0 %vm585_vm1, %v6780_v5  ;;  %2488 = vst.msk [vmem:[#allocation2 + $0xb0] sm:$0xff] %vm1063_vm3, %v8779_v21  ;;  %2490 = vst.msk [vmem:[#allocation2 + $0xc0] sm:$0xff] %vm1063_vm3, %v8779_v21 }
  0x1b   : > { %6006 = vmatprep.mubr.msk.bf16.mxu0 %vm585_vm1, %v6781_v6  ;;  %6035 = vmatpush3.bf16.msra.mxu0 %v6797_v23  ;;  %2491 = vst.msk [vmem:[#allocation2 + $0xc8] sm:$0xff] %vm1063_vm3, %v8779_v21  ;;  %2493 = vst.msk [vmem:[#allocation2 + $0xd8] sm:$0xff] %vm1063_vm3, %v8779_v21 }
  0x1c   : > { %2494 = vst.msk [vmem:[#allocation2 + $0xe0] sm:$0xff] %vm1063_vm3, %v8779_v21  ;;  %2496 = vst.msk [vmem:[#allocation2 + $0xf0] sm:$0xff] %vm1063_vm3, %v8779_v21  ;;  %6036 = vmatprep.subr.bf16.mxu0 %v6798_v25 }
  0x1d   : > { %2497 = vst.msk [vmem:[#allocation2 + $0xf8] sm:$0xff] %vm1063_vm3, %v8779_v21  ;;  %2499 = vst.msk [vmem:[#allocation2 + $0x108] sm:$0xff] %vm1063_vm3, %v8779_v21 }
  0x1e   : > { %2500 = vst.msk [vmem:[#allocation2 + $0x110] sm:$0xff] %vm1063_vm3, %v8779_v21  ;;  %2502 = vst.msk [vmem:[#allocation2 + $0x120] sm:$0xff] %vm1063_vm3, %v8779_v21 }
  0x1f   : > { %2503 = vst.msk [vmem:[#allocation2 + $0x128] sm:$0xff] %vm1063_vm3, %v8779_v21  ;;  %2505 = vst.msk [vmem:[#allocation2 + $0x138] sm:$0xff] %vm1063_vm3, %v8779_v21  ;;  %6037 = vmatpush3.bf16.msra.mxu0 %v6798_v25 }
  0x20   : > { %2506 = vst.msk [vmem:[#allocation2 + $0x140] sm:$0xff] %vm1063_vm3, %v8779_v21  ;;  %2508 = vst.msk [vmem:[#allocation2 + $0x150] sm:$0xff] %vm1063_vm3, %v8779_v21 }
  0x21   : > { %2509 = vst.msk [vmem:[#allocation2 + $0x158] sm:$0xff] %vm1063_vm3, %v8779_v21  ;;  %2511 = vst.msk [vmem:[#allocation2 + $0x168] sm:$0xff] %vm1063_vm3, %v8779_v21 }
  0x22   : > { %6007 = vmatmul.mubr.msk.bf16.gmra.mrb[4].mxu0 %vm585_vm1, %v6782_v7  ;;  %2512 = vst.msk [vmem:[#allocation2 + $0x170] sm:$0xff] %vm1063_vm3, %v8779_v21  ;;  %2514 = vst.msk [vmem:[#allocation2 + $0x180] sm:$0xff] %vm1063_vm3, %v8779_v21 }
  0x23   : > { %6010 = vmatprep.mubr.msk.bf16.mxu0 %vm585_vm1, %v6783_v8  ;;  %2515 = vst.msk [vmem:[#allocation2 + $0x188] sm:$0xff] %vm1063_vm3, %v8779_v21  ;;  %2517 = vst.msk [vmem:[#allocation2 + $0x198] sm:$0xff] %vm1063_vm3, %v8779_v21 }
  0x24   : > { %2518 = vst.msk [vmem:[#allocation2 + $0x1a0] sm:$0xff] %vm1063_vm3, %v8779_v21 }
  0x2a   : > { %6011 = vmatmul.mubr.msk.bf16.gmra.mrb[8].mxu0 %vm585_vm1, %v6784_v9 }
  0x2b   : > { %6014 = vmatprep.mubr.msk.bf16.mxu0 %vm585_vm1, %v6785_v10 }
  0x32   : > { %6015 = vmatmul.mubr.msk.bf16.gmra.mrb[12].mxu0 %vm585_vm1, %v6786_v11 }
  0x33   : > { %6018 = vmatprep.mubr.msk.bf16.mxu0 %vm585_vm1, %v6787_v12 }
  0x3a   : > { %6019 = vmatmul.mubr.msk.bf16.gmra.mrb[16].mxu0 %vm585_vm1, %v6788_v13 }
  0x3b   : > { %6022 = vmatprep.mubr.msk.bf16.mxu0 %vm585_vm1, %v6789_v14 }
  0x42   : > { %6023 = vmatmul.mubr.msk.bf16.gmra.mrb[20].mxu0 %vm585_vm1, %v6790_v15 }
  0x43   : > { %6026 = vmatprep.mubr.msk.bf16.mxu0 %vm585_vm1, %v6791_v16 }
  0x4a   : > { %6027 = vmatmul.mubr.msk.bf16.gmra.mrb[24].mxu0 %vm585_vm1, %v6792_v17 }
  0x4b   : > { %6030 = vmatprep.mubr.msk.bf16.mxu0 %vm585_vm1, %v6793_v18 }
  0x52   : > { %6031 = vmatmul.mubr.msk.bf16.gmra.mrb[28].mxu0 %vm585_vm1, %v6794_v19 }
  0xed   : > { %v6004_v27 = vpop.f32.mrb[0].mxu0 }
  0xee   : > { %v7307_v28 = vadd.f32 %v6004_v27, %v7304_v26  ;;  %v672_v29 = vpop.f32.mrb[1].mxu0 }
  0xef   : > { %v7310_v30 = vadd.f32 %v7304_v26, %v672_v29  ;;  %v6005_v31 = vpop.f32.mrb[2].mxu0 }
  0xf0   : > { %v5439_v32 = vmul.f32 -1.442695, %v7307_v28  ;;  %v7314_v33 = vadd.f32 %v6005_v31, %v7304_v26  ;;  %v675_v34 = vpop.f32.mrb[3].mxu0 }
  0xf1   : > { %v5437_v35 = vmul.f32 -1.442695, %v7310_v30  ;;  %v7318_v36 = vadd.f32 %v7304_v26, %v675_v34 }
  0xf2   : > { %6819 = vpow2.f32 %v5439_v32  ;;  %v5440_v37 = vmul.f32 -1.442695, %v7314_v33 }
  0xf3   : > { %6821 = vpow2.f32 %v5437_v35  ;;  %v5438_v38 = vmul.f32 -1.442695, %v7318_v36 }
  0xf4   : > { %6823 = vpow2.f32 %v5440_v37 }
  0xf5   : > { %6825 = vpow2.f32 %v5438_v38  ;;  %v6008_v39 = vpop.f32.mrb[4].mxu0 }
  0xf6   : > { %v7323_v40 = vadd.f32 %v6008_v39, %v7304_v26  ;;  %v688_v41 = vpop.f32.mrb[5].mxu0 }
  0xf7   : > { %v7326_v42 = vadd.f32 %v7304_v26, %v688_v41  ;;  %v6009_v43 = vpop.f32.mrb[6].mxu0 }
  0xf8   : > { %v5443_v44 = vmul.f32 -1.442695, %v7323_v40  ;;  %v7330_v45 = vadd.f32 %v6009_v43, %v7304_v26  ;;  %v691_v46 = vpop.f32.mrb[7].mxu0 }
  0xf9   : > { %v5441_v47 = vmul.f32 -1.442695, %v7326_v42  ;;  %v7334_v48 = vadd.f32 %v7304_v26, %v691_v46 }
  0xfa   : > { %6827 = vpow2.f32 %v5443_v44  ;;  %v5444_v49 = vmul.f32 -1.442695, %v7330_v45 }
  0xfb   : > { %6829 = vpow2.f32 %v5441_v47  ;;  %v5442_v50 = vmul.f32 -1.442695, %v7334_v48 }
  0xfc   : > { %v6820_v51 = vpop.eup %6819  ;;  %6831 = vpow2.f32 %v5444_v49 }
  0xfd   : > { %v6822_v52 = vpop.eup %6821  ;;  %v897_v53 = vadd.f32 1.0, %v6820_v51  ;;  %6833 = vpow2.f32 %v5442_v50  ;;  %v6012_v54 = vpop.f32.mrb[8].mxu0 }
  0xfe   : > { %v6824_v55 = vpop.eup %6823  ;;  %v895_v56 = vadd.f32 1.0, %v6822_v52  ;;  %v7339_v57 = vadd.f32 %v6012_v54, %v7304_v26  ;;  %v704_v58 = vpop.f32.mrb[9].mxu0 }
  0xff   : > { %v6826_v59 = vpop.eup %6825  ;;  %6835 = vrcp.f32 %v897_v53  ;;  %v898_v60 = vadd.f32 1.0, %v6824_v55  ;;  %v7342_v61 = vadd.f32 %v7304_v26, %v704_v58  ;;  %v6013_v62 = vpop.f32.mrb[10].mxu0 }
 0x100   : > { %6837 = vrcp.f32 %v895_v56  ;;  %v896_v63 = vadd.f32 1.0, %v6826_v59  ;;  %v5447_v0 = vmul.f32 -1.442695, %v7339_v57  ;;  %v7346_v1 = vadd.f32 %v6013_v62, %v7304_v26  ;;  %v707_v2 = vpop.f32.mrb[11].mxu0 }
 0x101   : > { %6839 = vrcp.f32 %v898_v60  ;;  %v5445_v3 = vmul.f32 -1.442695, %v7342_v61  ;;  %v7350_v4 = vadd.f32 %v7304_v26, %v707_v2 }
 0x102   : > { %6841 = vrcp.f32 %v896_v63  ;;  %v5448_v5 = vmul.f32 -1.442695, %v7346_v1 }
 0x103   : > { %6843 = vpow2.f32 %v5447_v0  ;;  %v5446_v6 = vmul.f32 -1.442695, %v7350_v4 }
 0x104   : > { %v6828_v7 = vpop.eup %6827  ;;  %6845 = vpow2.f32 %v5445_v3 }
 0x105   : > { %v6830_v8 = vpop.eup %6829  ;;  %v901_v9 = vadd.f32 1.0, %v6828_v7  ;;  %6847 = vpow2.f32 %v5448_v5  ;;  %v6016_v10 = vpop.f32.mrb[12].mxu0 }
 0x106   : > { %v6832_v11 = vpop.eup %6831  ;;  %v899_v12 = vadd.f32 1.0, %v6830_v8  ;;  %6849 = vpow2.f32 %v5446_v6  ;;  %v7355_v13 = vadd.f32 %v6016_v10, %v7304_v26  ;;  %v720_v14 = vpop.f32.mrb[13].mxu0 }
 0x107   : > { %v6834_v15 = vpop.eup %6833  ;;  %6851 = vrcp.f32 %v901_v9  ;;  %v902_v16 = vadd.f32 1.0, %v6832_v11  ;;  %v7358_v17 = vadd.f32 %v7304_v26, %v720_v14  ;;  %v6017_v18 = vpop.f32.mrb[14].mxu0 }
 0x108   : > { %6853 = vrcp.f32 %v899_v12  ;;  %v900_v19 = vadd.f32 1.0, %v6834_v15  ;;  %v5451_v20 = vmul.f32 -1.442695, %v7355_v13  ;;  %v7362_v22 = vadd.f32 %v6017_v18, %v7304_v26  ;;  %v723_v23 = vpop.f32.mrb[15].mxu0 }
 0x109   : > { %v6836_v24 = vpop.eup %6835  ;;  %6855 = vrcp.f32 %v902_v16  ;;  %v5449_v25 = vmul.f32 -1.442695, %v7358_v17  ;;  %v7366_v27 = vadd.f32 %v7304_v26, %v723_v23 }
 0x10a   : > { %v6838_v29 = vpop.eup %6837  ;;  %6857 = vrcp.f32 %v900_v19  ;;  %v5452_v31 = vmul.f32 -1.442695, %v7362_v22  ;;  %v7374_v39 = vmul.f32 %v6836_v24, %v7307_v28 }
 0x10b   : > { %v6840_v32 = vpop.eup %6839  ;;  %6859 = vpow2.f32 %v5451_v20  ;;  %v5450_v34 = vmul.f32 -1.442695, %v7366_v27  ;;  %v7377_v41 = vmul.f32 %v6838_v29, %v7310_v30 }
 0x10c   : > { %v6842_v35 = vpop.eup %6841  ;;  %v7371_v37 = vmul.f32 %v6840_v32, %v7314_v33  ;;  %6861 = vpow2.f32 %v5449_v25 }
 0x10d   : > { %v6844_v38 = vpop.eup %6843  ;;  %v7380_v43 = vmul.f32 %v6842_v35, %v7318_v36  ;;  %6863 = vpow2.f32 %v5452_v31  ;;  %v6020_v44 = vpop.f32.mrb[16].mxu0 }
 0x10e   : > { %v6846_v46 = vpop.eup %6845  ;;  %v905_v47 = vadd.f32 1.0, %v6844_v38  ;;  %6865 = vpow2.f32 %v5450_v34  ;;  %v7383_v49 = vadd.f32 %v6020_v44, %v7304_v26  ;;  %v736_v33 = vpop.f32.mrb[17].mxu0  ;;  %v1025_v28 = vpack.c.bf16 %v7371_v37, %v7374_v39 }
 0x10f   : > { %v6848_v50 = vpop.eup %6847  ;;  %v1024_v30 = vpack.c.bf16 %v7380_v43, %v7377_v41  ;;  %v903_v51 = vadd.f32 1.0, %v6846_v46  ;;  %v7390_v36 = vadd.f32 %v7304_v26, %v736_v33  ;;  %v6021_v52 = vpop.f32.mrb[18].mxu0 }
 0x110   : > { %v6850_v53 = vpop.eup %6849  ;;  %6867 = vrcp.f32 %v905_v47  ;;  %v906_v54 = vadd.f32 1.0, %v6848_v50  ;;  %v5455_v55 = vmul.f32 -1.442695, %v7383_v49  ;;  %v7394_v56 = vadd.f32 %v6021_v52, %v7304_v26  ;;  %v739_v58 = vpop.f32.mrb[19].mxu0 }
 0x111   : > { %v6852_v59 = vpop.eup %6851  ;;  %6869 = vrcp.f32 %v903_v51  ;;  %v904_v60 = vadd.f32 1.0, %v6850_v53  ;;  %v5453_v62 = vmul.f32 -1.442695, %v7390_v36  ;;  %v7398_v63 = vadd.f32 %v7304_v26, %v739_v58  ;;  %6038 = vmatprep.mubr.msk.bf16.mxu0 %vm1063_vm3, %v1024_v30 }
 0x112   : > { %v6854_v0 = vpop.eup %6853  ;;  %6871 = vrcp.f32 %v906_v54  ;;  %v5456_v2 = vmul.f32 -1.442695, %v7394_v56  ;;  %6039 = vmatmul.mubr.msk.bf16.vlgmr.msra.gmra.mrb[32].mxu0 %vm1063_vm3, %v1025_v28  ;;  %v7405_v7 = vmul.f32 %v6852_v59, %v7323_v40 }
 0x113   : > { %v6856_v3 = vpop.eup %6855  ;;  %6873 = vrcp.f32 %v904_v60  ;;  %v5454_v5 = vmul.f32 -1.442695, %v7398_v63  ;;  %v7411_v10 = vmul.f32 %v6854_v0, %v7326_v42 }
 0x114   : > { %v6858_v6 = vpop.eup %6857  ;;  %v7408_v8 = vmul.f32 %v6856_v3, %v7330_v45  ;;  %6875 = vpow2.f32 %v5455_v55 }
 0x115   : > { %v6860_v9 = vpop.eup %6859  ;;  %v7414_v11 = vmul.f32 %v6858_v6, %v7334_v48  ;;  %6877 = vpow2.f32 %v5453_v62  ;;  %v6024_v12 = vpop.f32.mrb[20].mxu0 }
 0x116   : > { %v6862_v14 = vpop.eup %6861  ;;  %v1027_v15 = vpack.c.bf16 %v7408_v8, %v7405_v7  ;;  %v909_v16 = vadd.f32 1.0, %v6860_v9  ;;  %6879 = vpow2.f32 %v5456_v2  ;;  %v7419_v40 = vadd.f32 %v6024_v12, %v7304_v26  ;;  %v752_v45 = vpop.f32.mrb[21].mxu0 }
 0x117   : > { %v6864_v18 = vpop.eup %6863  ;;  %v1026_v42 = vpack.c.bf16 %v7414_v11, %v7411_v10  ;;  %v907_v19 = vadd.f32 1.0, %v6862_v14  ;;  %6881 = vpow2.f32 %v5454_v5  ;;  %v7424_v48 = vadd.f32 %v7304_v26, %v752_v45  ;;  %v6025_v20 = vpop.f32.mrb[22].mxu0 }
 0x118   : > { %v6866_v23 = vpop.eup %6865  ;;  %6883 = vrcp.f32 %v909_v16  ;;  %v910_v24 = vadd.f32 1.0, %v6864_v18  ;;  %v5459_v25 = vmul.f32 -1.442695, %v7419_v40  ;;  %v7428_v29 = vadd.f32 %v6025_v20, %v7304_v26  ;;  %v755_v31 = vpop.f32.mrb[23].mxu0 }
 0x119   : > { %6885 = vrcp.f32 %v907_v19  ;;  %v908_v32 = vadd.f32 1.0, %v6866_v23  ;;  %v5457_v34 = vmul.f32 -1.442695, %v7424_v48  ;;  %v7432_v35 = vadd.f32 %v7304_v26, %v755_v31  ;;  %6042 = vmatprep.mubr.msk.bf16.mxu0 %vm1063_vm3, %v1026_v42 }
 0x11a   : > { %v6868_v38 = vpop.eup %6867  ;;  %6887 = vrcp.f32 %v910_v24  ;;  %v5460_v44 = vmul.f32 -1.442695, %v7428_v29  ;;  %6043 = vmatmul.mubr.msk.bf16.gmra.mrb[36].mxu0 %vm1063_vm3, %v1027_v15 }
 0x11b   : > { %v6870_v46 = vpop.eup %6869  ;;  %6889 = vrcp.f32 %v908_v32  ;;  %v5458_v47 = vmul.f32 -1.442695, %v7432_v35  ;;  %v7439_v28 = vmul.f32 %v6868_v38, %v7339_v57 }
 0x11c   : > { %v6872_v33 = vpop.eup %6871  ;;  %6891 = vpow2.f32 %v5459_v25  ;;  %v7445_v53 = vmul.f32 %v6870_v46, %v7342_v61 }
 0x11d   : > { %v6874_v50 = vpop.eup %6873  ;;  %v7442_v30 = vmul.f32 %v6872_v33, %v7346_v1  ;;  %6893 = vpow2.f32 %v5457_v34  ;;  %v6028_v51 = vpop.f32.mrb[24].mxu0 }
 0x11e   : > { %v6876_v52 = vpop.eup %6875  ;;  %v7448_v54 = vmul.f32 %v6874_v50, %v7350_v4  ;;  %6895 = vpow2.f32 %v5460_v44  ;;  %v7451_v55 = vadd.f32 %v6028_v51, %v7304_v26  ;;  %v768_v58 = vpop.f32.mrb[25].mxu0 }
 0x11f   : > { %v6878_v59 = vpop.eup %6877  ;;  %v913_v57 = vadd.f32 1.0, %v6876_v52  ;;  %6897 = vpow2.f32 %v5458_v47  ;;  %v7454_v1 = vadd.f32 %v7304_v26, %v768_v58  ;;  %v6029_v60 = vpop.f32.mrb[26].mxu0  ;;  %v1029_v61 = vpack.c.bf16 %v7442_v30, %v7439_v28 }
 0x120   : > { %v6880_v62 = vpop.eup %6879  ;;  %v1028_v4 = vpack.c.bf16 %v7448_v54, %v7445_v53  ;;  %v911_v0 = vadd.f32 1.0, %v6878_v59  ;;  %v7461_v2 = vadd.f32 %v6029_v60, %v7304_v26  ;;  %v771_v3 = vpop.f32.mrb[27].mxu0  ;;  %v5463_v9 = vmul.f32 -1.442695, %v7451_v55 }
 0x121   : > { %v6882_v5 = vpop.eup %6881  ;;  %6899 = vrcp.f32 %v913_v57  ;;  %v914_v6 = vadd.f32 1.0, %v6880_v62  ;;  %v7465_v12 = vadd.f32 %v7304_v26, %v771_v3  ;;  %v5461_v16 = vmul.f32 -1.442695, %v7454_v1 }
 0x122   : > { %v6884_v14 = vpop.eup %6883  ;;  %6901 = vrcp.f32 %v911_v0  ;;  %v912_v15 = vadd.f32 1.0, %v6882_v5  ;;  %6046 = vmatprep.mubr.msk.bf16.mxu0 %vm1063_vm3, %v1028_v4  ;;  %v5464_v18 = vmul.f32 -1.442695, %v7461_v2 }
 0x123   : > { %v6886_v45 = vpop.eup %6885  ;;  %6903 = vrcp.f32 %v914_v6  ;;  %6047 = vmatmul.mubr.msk.bf16.gmra.mrb[40].mxu0 %vm1063_vm3, %v1029_v61  ;;  %v5462_v19 = vmul.f32 -1.442695, %v7465_v12  ;;  %v7473_v23 = vmul.f32 %v6884_v14, %v7355_v13 }
 0x124   : > { %v6888_v42 = vpop.eup %6887  ;;  %6905 = vrcp.f32 %v912_v15  ;;  %v7479_v32 = vmul.f32 %v6886_v45, %v7358_v17 }
 0x125   : > { %v6890_v20 = vpop.eup %6889  ;;  %v7476_v24 = vmul.f32 %v6888_v42, %v7362_v22  ;;  %6907 = vpow2.f32 %v5463_v9  ;;  %v6032_v25 = vpop.f32.mrb[28].mxu0 }
 0x126   : > { %v6892_v31 = vpop.eup %6891  ;;  %v7482_v34 = vmul.f32 %v6890_v20, %v7366_v27  ;;  %6909 = vpow2.f32 %v5461_v16  ;;  %v7485_v38 = vadd.f32 %v6032_v25, %v7304_v26  ;;  %v784_v44 = vpop.f32.mrb[29].mxu0 }
 0x127   : > { %8799 = vst [vmem:[#allocation3_spill] sm:$0xff] %v7476_v24  ;;  %v6894_v46 = vpop.eup %6893  ;;  %v917_v13 = vadd.f32 1.0, %v6892_v31  ;;  %6911 = vpow2.f32 %v5464_v18  ;;  %v7488_v22 = vadd.f32 %v7304_v26, %v784_v44  ;;  %v6033_v47 = vpop.f32.mrb[30].mxu0  ;;  %v1031_v17 = vpack.c.bf16 %v7476_v24, %v7473_v23 }
 0x128   : > { %8800 = vst [vmem:[#allocation4_spill] sm:$0xff] %v7482_v34  ;;  %v6896_v33 = vpop.eup %6895  ;;  %v1030_v27 = vpack.c.bf16 %v7482_v34, %v7479_v32  ;;  %v915_v50 = vadd.f32 1.0, %v6894_v46  ;;  %6913 = vpow2.f32 %v5462_v19  ;;  %v787_v51 = vpop.f32.mrb[31].mxu0  ;;  %v5467_v59 = vmul.f32 -1.442695, %v7485_v38 }
 0x129   : > { %v6898_v52 = vpop.eup %6897  ;;  %6915 = vrcp.f32 %v917_v13  ;;  %v918_v58 = vadd.f32 1.0, %v6896_v33  ;;  %v7496_v57 = vadd.f32 %v6033_v47, %v7304_v26  ;;  %v5465_v62 = vmul.f32 -1.442695, %v7488_v22 }
 0x12a   : > { %6917 = vrcp.f32 %v915_v50  ;;  %v916_v60 = vadd.f32 1.0, %v6898_v52  ;;  %v7500_v61 = vadd.f32 %v7304_v26, %v787_v51  ;;  %6050 = vmatprep.mubr.msk.bf16.mxu0 %vm1063_vm3, %v1030_v27 }
 0x12b   : > { %v6900_v4 = vpop.eup %6899  ;;  %6919 = vrcp.f32 %v918_v58  ;;  %v5468_v0 = vmul.f32 -1.442695, %v7496_v57  ;;  %6051 = vmatmul.mubr.msk.bf16.gmra.mrb[44].mxu0 %vm1063_vm3, %v1031_v17 }
 0x12c   : > { %v6902_v3 = vpop.eup %6901  ;;  %6921 = vrcp.f32 %v916_v60  ;;  %v5466_v5 = vmul.f32 -1.442695, %v7500_v61  ;;  %v7516_v18 = vmul.f32 %v6900_v4, %v7383_v49 }
 0x12d   : > { %v6904_v6 = vpop.eup %6903  ;;  %6923 = vpow2.f32 %v5467_v59  ;;  %v7510_v15 = vmul.f32 %v6902_v3, %v7390_v36 }
 0x12e   : > { %v6906_v9 = vpop.eup %6905  ;;  %v7507_v14 = vmul.f32 %v6904_v6, %v7394_v56  ;;  %6925 = vpow2.f32 %v5465_v62  ;;  %8804 = vst [vmem:[#allocation8_spill] sm:$0xff] %v7516_v18 }
 0x12f   : > { %v6908_v26 = vpop.eup %6907  ;;  %8802 = vst [vmem:[#allocation6_spill] sm:$0xff] %v7510_v15  ;;  %v7513_v16 = vmul.f32 %v6906_v9, %v7398_v63  ;;  %6927 = vpow2.f32 %v5468_v0 }
 0x130   : > { %8801 = vst [vmem:[#allocation5_spill] sm:$0xff] %v7507_v14  ;;  %v6910_v45 = vpop.eup %6909  ;;  %v921_v42 = vadd.f32 1.0, %v6908_v26  ;;  %6929 = vpow2.f32 %v5466_v5  ;;  %v1033_v36 = vpack.c.bf16 %v7507_v14, %v7516_v18 }
 0x131   : > { %8803 = vst [vmem:[#allocation7_spill] sm:$0xff] %v7513_v16  ;;  %v6912_v19 = vpop.eup %6911  ;;  %v1032_v56 = vpack.c.bf16 %v7513_v16, %v7510_v15  ;;  %v919_v20 = vadd.f32 1.0, %v6910_v45 }
 0x132   : > { %v6914_v25 = vpop.eup %6913  ;;  %6931 = vrcp.f32 %v921_v42  ;;  %v922_v31 = vadd.f32 1.0, %v6912_v19 }
 0x133   : > { %v6916_v63 = vpop.eup %6915  ;;  %6933 = vrcp.f32 %v919_v20  ;;  %v920_v44 = vadd.f32 1.0, %v6914_v25  ;;  %6054 = vmatprep.mubr.msk.bf16.mxu0 %vm1063_vm3, %v1032_v56 }
 0x134   : > { %v6918_v49 = vpop.eup %6917  ;;  %6935 = vrcp.f32 %v922_v31  ;;  %6055 = vmatmul.mubr.msk.bf16.gmra.mrb[48].mxu0 %vm1063_vm3, %v1033_v36  ;;  %v7534_v51 = vmul.f32 %v6916_v63, %v7419_v40  ;;  %v1333_v31 = vpop.f32.mrb[0].mxu1 }
 0x135   : > { %v6920_v46 = vpop.eup %6919  ;;  %6937 = vrcp.f32 %v920_v44  ;;  %v7528_v17 = vmul.f32 %v6918_v49, %v7424_v48  ;;  %v6076_v63 = vpop.f32.mrb[1].mxu1 }
 0x136   : > { %v6922_v13 = vpop.eup %6921  ;;  %v7525_v47 = vmul.f32 %v6920_v46, %v7428_v29  ;;  %8808 = vst [vmem:[#allocation12_spill] sm:$0xff] %v7534_v51  ;;  %v1336_v44 = vpop.f32.mrb[2].mxu1 }
 0x137   : > { %v6924_v33 = vpop.eup %6923  ;;  %8806 = vst [vmem:[#allocation10_spill] sm:$0xff] %v7528_v17  ;;  %v7531_v27 = vmul.f32 %v6922_v13, %v7432_v35  ;;  %v6077_v49 = vpop.f32.mrb[3].mxu1 }
 0x138   : > { %8805 = vst [vmem:[#allocation9_spill] sm:$0xff] %v7525_v47  ;;  %v6926_v50 = vpop.eup %6925  ;;  %v925_v52 = vadd.f32 1.0, %v6924_v33  ;;  %v1035_v29 = vpack.c.bf16 %v7525_v47, %v7534_v51  ;;  %v7590_v33 = vld [vmem:[%s8771_s5] ss:$0 sm:$0xff] }
 0x139   : > { %8807 = vst [vmem:[#allocation11_spill] sm:$0xff] %v7531_v27  ;;  %v6928_v58 = vpop.eup %6927  ;;  %v1034_v59 = vpack.c.bf16 %v7531_v27, %v7528_v17  ;;  %v923_v60 = vadd.f32 1.0, %v6926_v50 }
 0x13a   : > { %v6930_v62 = vpop.eup %6929  ;;  %6939 = vrcp.f32 %v925_v52  ;;  %v926_v48 = vadd.f32 1.0, %v6928_v58 }
 0x13b   : > { %6941 = vrcp.f32 %v923_v60  ;;  %v924_v4 = vadd.f32 1.0, %v6930_v62  ;;  %6058 = vmatprep.mubr.msk.bf16.mxu0 %vm1063_vm3, %v1034_v59 }
 0x13c   : > { %v6932_v35 = vpop.eup %6931  ;;  %6943 = vrcp.f32 %v926_v48  ;;  %6059 = vmatmul.mubr.msk.bf16.gmra.mrb[52].mxu0 %vm1063_vm3, %v1035_v29 }
 0x13d   : > { %v6934_v40 = vpop.eup %6933  ;;  %6945 = vrcp.f32 %v924_v4  ;;  %v7552_v26 = vmul.f32 %v6932_v35, %v7451_v55 }
 0x13e   : > { %v6936_v0 = vpop.eup %6935  ;;  %v7546_v6 = vmul.f32 %v6934_v40, %v7454_v1 }
 0x13f   : > { %v6938_v3 = vpop.eup %6937  ;;  %v7543_v5 = vmul.f32 %v6936_v0, %v7461_v2  ;;  %8812 = vst [vmem:[#allocation16_spill] sm:$0xff] %v7552_v26 }
 0x140   : > { %8810 = vst [vmem:[#allocation14_spill] sm:$0xff] %v7546_v6  ;;  %v7549_v9 = vmul.f32 %v6938_v3, %v7465_v12 }
 0x141   : > { %8809 = vst [vmem:[#allocation13_spill] sm:$0xff] %v7543_v5  ;;  %v1037_v42 = vpack.c.bf16 %v7543_v5, %v7552_v26 }
 0x142   : > { %8811 = vst [vmem:[#allocation15_spill] sm:$0xff] %v7549_v9  ;;  %v1036_v45 = vpack.c.bf16 %v7549_v9, %v7546_v6 }
 0x144   : > { %v6940_v19 = vpop.eup %6939  ;;  %6062 = vmatprep.mubr.msk.bf16.mxu0 %vm1063_vm3, %v1036_v45 }
 0x145   : > { %v6942_v2 = vpop.eup %6941  ;;  %v7560_v56 = vmul.f32 %v6940_v19, %v7485_v38  ;;  %6063 = vmatmul.mubr.msk.bf16.gmra.mrb[56].mxu0 %vm1063_vm3, %v1037_v42 }
 0x146   : > { %v6944_v1 = vpop.eup %6943  ;;  %v7564_v12 = vmul.f32 %v6942_v2, %v7488_v22  ;;  %v5488_v22 = vld [vmem:[%s8773_s7] ss:$0 sm:$0xff] }
 0x147   : > { %8813 = vst [vmem:[#allocation17_spill] sm:$0xff] %v7560_v56  ;;  %v6946_v55 = vpop.eup %6945  ;;  %v7567_v20 = vmul.f32 %v6944_v1, %v7496_v57  ;;  %v1334_v57 = vadd.f32 %v5488_v22, %v1333_v31 }
 0x148   : > { %8814 = vst [vmem:[#allocation18_spill] sm:$0xff] %v7564_v12  ;;  %v7570_v25 = vmul.f32 %v6946_v55, %v7500_v61 }
 0x149   : > { %8815 = vst [vmem:[#allocation19_spill] sm:$0xff] %v7567_v20  ;;  %v1039_v36 = vpack.c.bf16 %v7567_v20, %v7560_v56  ;;  %v7581_v61 = vpack.c.bf16 %v1334_v57, %v1334_v57 }
 0x14a   : > { %8816 = vst [vmem:[#allocation20_spill] sm:$0xff] %v7570_v25  ;;  %v1038_v38 = vpack.c.bf16 %v7570_v25, %v7564_v12 }
 0x14b   : > { %6763 = vmatprep.subr.msk.bf16.mxu0 %vm1063_vm3, %v7581_v61  ;;  %v1405_v46 = vsel %vm1063_vm3, %v7581_v61, 0 }
 0x14c   : > { %6066 = vmatprep.mubr.msk.bf16.mxu0 %vm1063_vm3, %v1038_v38  ;;  %6079 = vmatpush3.bf16.xpose.msra.mxu0 %v1405_v46 }
 0x14d   : > { %6067 = vmatmul.mubr.msk.bf16.gmra.mrb[60].mxu0 %vm1063_vm3, %v1039_v36 }
 0x1e5   : > { %v6040_v13 = vpop.f32.mrb[32].mxu0 }
 0x1e6   : > { %v1146_v50 = vpop.f32.mrb[33].mxu0  ;;  %v1155_v58 = vadd.f32 %v6040_v13, %v7590_v33 }
 0x1e7   : > { %v6041_v52 = vpop.f32.mrb[34].mxu0  ;;  %v1147_v62 = vadd.f32 %v7590_v33, %v1146_v50 }
 0x1e8   : > { %v1158_v59 = vadd.f32 %v6041_v52, %v7590_v33  ;;  %v1149_v60 = vpop.f32.mrb[35].mxu0 }
 0x1e9   : > { %v1150_v29 = vadd.f32 %v7590_v33, %v1149_v60 }
 0x1ea   : > { %v1340_v48 = vpack.c.bf16 %v1158_v59, %v1155_v58 }
 0x1eb   : > { %v1339_v4 = vpack.c.bf16 %v1150_v29, %v1147_v62 }
 0x1ed   : > { %v6044_v35 = vpop.f32.mrb[36].mxu0  ;;  %6080 = vmatprep.mubr.msk.bf16.mxu0 %vm1063_vm3, %v1339_v4 }
 0x1ee   : > { %v1162_v40 = vpop.f32.mrb[37].mxu0  ;;  %6081 = vmatmul.mubr.msk.bf16.vlgmr.msra.gmra.mrb[64].mxu0 %vm1063_vm3, %v1340_v48  ;;  %v1171_v3 = vadd.f32 %v6044_v35, %v7590_v33 }
 0x1ef   : > { %v6045_v0 = vpop.f32.mrb[38].mxu0  ;;  %v1163_v19 = vadd.f32 %v7590_v33, %v1162_v40 }
 0x1f0   : > { %v1174_v45 = vadd.f32 %v6045_v0, %v7590_v33  ;;  %v1165_v42 = vpop.f32.mrb[39].mxu0 }
 0x1f1   : > { %v1166_v2 = vadd.f32 %v7590_v33, %v1165_v42 }
 0x1f2   : > { %v1342_v1 = vpack.c.bf16 %v1174_v45, %v1171_v3 }
 0x1f3   : > { %v1341_v55 = vpack.c.bf16 %v1166_v2, %v1163_v19 }
 0x1f5   : > { %6084 = vmatprep.mubr.msk.bf16.mxu0 %vm1063_vm3, %v1341_v55 }
 0x1f6   : > { %v6048_v36 = vpop.f32.mrb[40].mxu0  ;;  %6085 = vmatmul.mubr.msk.bf16.gmra.mrb[68].mxu0 %vm1063_vm3, %v1342_v1 }
 0x1f7   : > { %v1178_v38 = vpop.f32.mrb[41].mxu0  ;;  %v1187_v31 = vadd.f32 %v6048_v36, %v7590_v33 }
 0x1f8   : > { %v6049_v22 = vpop.f32.mrb[42].mxu0  ;;  %v1179_v44 = vadd.f32 %v7590_v33, %v1178_v38 }
 0x1f9   : > { %v1190_v57 = vadd.f32 %v6049_v22, %v7590_v33  ;;  %v1181_v63 = vpop.f32.mrb[43].mxu0 }
 0x1fa   : > { %v1182_v49 = vadd.f32 %v7590_v33, %v1181_v63 }
 0x1fb   : > { %v1344_v46 = vpack.c.bf16 %v1190_v57, %v1187_v31 }
 0x1fc   : > { %v1343_v13 = vpack.c.bf16 %v1182_v49, %v1179_v44 }
 0x1fe   : > { %v6052_v50 = vpop.f32.mrb[44].mxu0  ;;  %6088 = vmatprep.mubr.msk.bf16.mxu0 %vm1063_vm3, %v1343_v13 }
 0x1ff   : > { %v1194_v52 = vpop.f32.mrb[45].mxu0  ;;  %6089 = vmatmul.mubr.msk.bf16.gmra.mrb[72].mxu0 %vm1063_vm3, %v1344_v46  ;;  %v1203_v59 = vadd.f32 %v6052_v50, %v7590_v33 }
 0x200   : > { %v6053_v58 = vpop.f32.mrb[46].mxu0  ;;  %v1195_v29 = vadd.f32 %v7590_v33, %v1194_v52 }
 0x201   : > { %v1206_v60 = vadd.f32 %v6053_v58, %v7590_v33  ;;  %v1197_v62 = vpop.f32.mrb[47].mxu0 }
 0x202   : > { %v1198_v48 = vadd.f32 %v7590_v33, %v1197_v62 }
 0x203   : > { %v1346_v4 = vpack.c.bf16 %v1206_v60, %v1203_v59 }
 0x204   : > { %v1345_v35 = vpack.c.bf16 %v1198_v48, %v1195_v29 }
 0x206   : > { %6092 = vmatprep.mubr.msk.bf16.mxu0 %vm1063_vm3, %v1345_v35 }
 0x207   : > { %v6056_v40 = vpop.f32.mrb[48].mxu0  ;;  %6093 = vmatmul.mubr.msk.bf16.gmra.mrb[76].mxu0 %vm1063_vm3, %v1346_v4 }
 0x208   : > { %v1210_v0 = vpop.f32.mrb[49].mxu0  ;;  %v1219_v45 = vadd.f32 %v6056_v40, %v7590_v33 }
 0x209   : > { %v6057_v3 = vpop.f32.mrb[50].mxu0  ;;  %v1211_v2 = vadd.f32 %v7590_v33, %v1210_v0 }
 0x20a   : > { %v1222_v42 = vadd.f32 %v6057_v3, %v7590_v33  ;;  %v1213_v19 = vpop.f32.mrb[51].mxu0 }
 0x20b   : > { %v1214_v1 = vadd.f32 %v7590_v33, %v1213_v19 }
 0x20c   : > { %v1348_v55 = vpack.c.bf16 %v1222_v42, %v1219_v45 }
 0x20d   : > { %v1347_v36 = vpack.c.bf16 %v1214_v1, %v1211_v2 }
 0x20f   : > { %v6060_v38 = vpop.f32.mrb[52].mxu0  ;;  %6096 = vmatprep.mubr.msk.bf16.mxu0 %vm1063_vm3, %v1347_v36 }
 0x210   : > { %v1226_v22 = vpop.f32.mrb[53].mxu0  ;;  %6097 = vmatmul.mubr.msk.bf16.gmra.mrb[80].mxu0 %vm1063_vm3, %v1348_v55  ;;  %v1235_v57 = vadd.f32 %v6060_v38, %v7590_v33 }
 0x211   : > { %v6061_v31 = vpop.f32.mrb[54].mxu0  ;;  %v1227_v49 = vadd.f32 %v7590_v33, %v1226_v22 }
 0x212   : > { %v1238_v63 = vadd.f32 %v6061_v31, %v7590_v33  ;;  %v1229_v44 = vpop.f32.mrb[55].mxu0 }
 0x213   : > { %v1230_v46 = vadd.f32 %v7590_v33, %v1229_v44 }
 0x214   : > { %v1350_v13 = vpack.c.bf16 %v1238_v63, %v1235_v57 }
 0x215   : > { %v1349_v50 = vpack.c.bf16 %v1230_v46, %v1227_v49 }
 0x217   : > { %6100 = vmatprep.mubr.msk.bf16.mxu0 %vm1063_vm3, %v1349_v50 }
 0x218   : > { %v6064_v52 = vpop.f32.mrb[56].mxu0  ;;  %6101 = vmatmul.mubr.msk.bf16.gmra.mrb[84].mxu0 %vm1063_vm3, %v1350_v13 }
 0x219   : > { %v1242_v58 = vpop.f32.mrb[57].mxu0  ;;  %v1251_v60 = vadd.f32 %v6064_v52, %v7590_v33 }
 0x21a   : > { %v6065_v59 = vpop.f32.mrb[58].mxu0  ;;  %v1243_v48 = vadd.f32 %v7590_v33, %v1242_v58 }
 0x21b   : > { %v1254_v62 = vadd.f32 %v6065_v59, %v7590_v33  ;;  %v1245_v29 = vpop.f32.mrb[59].mxu0 }
 0x21c   : > { %v1246_v4 = vadd.f32 %v7590_v33, %v1245_v29 }
 0x21d   : > { %v1352_v35 = vpack.c.bf16 %v1254_v62, %v1251_v60 }
 0x21e   : > { %v1351_v40 = vpack.c.bf16 %v1246_v4, %v1243_v48 }
 0x220   : > { %v6068_v0 = vpop.f32.mrb[60].mxu0  ;;  %6104 = vmatprep.mubr.msk.bf16.mxu0 %vm1063_vm3, %v1351_v40 }
 0x221   : > { %v1258_v3 = vpop.f32.mrb[61].mxu0  ;;  %6105 = vmatmul.mubr.msk.bf16.gmra.mrb[88].mxu0 %vm1063_vm3, %v1352_v35  ;;  %v1267_v42 = vadd.f32 %v6068_v0, %v7590_v33 }
 0x222   : > { %v6069_v45 = vpop.f32.mrb[62].mxu0  ;;  %v1259_v1 = vadd.f32 %v7590_v33, %v1258_v3 }
 0x223   : > { %v1270_v19 = vadd.f32 %v6069_v45, %v7590_v33  ;;  %v1261_v2 = vpop.f32.mrb[63].mxu0 }
 0x224   : > { %v1262_v55 = vadd.f32 %v7590_v33, %v1261_v2 }
 0x225   : > { %v1354_v36 = vpack.c.bf16 %v1270_v19, %v1267_v42 }
 0x226   : > { %v1353_v38 = vpack.c.bf16 %v1262_v55, %v1259_v1 }
 0x228   : > { %6108 = vmatprep.mubr.msk.bf16.mxu0 %vm1063_vm3, %v1353_v38 }
 0x229   : > { %6109 = vmatmul.mubr.msk.bf16.gmra.mrb[92].mxu0 %vm1063_vm3, %v1354_v36 }
 0x2c1   : > { %v6082_v22 = vpop.f32.mrb[64].mxu0 }
 0x2c2   : > { %v7640_v31 = vmul.f32 0.17677669, %v6082_v22  ;;  %v1441_v57 = vpop.f32.mrb[65].mxu0 }
 0x2c3   : > { %v7642_v63 = vmul.f32 0.17677669, %v1441_v57  ;;  %v6083_v44 = vpop.f32.mrb[66].mxu0 }
 0x2c4   : > { %v7644_v49 = vmul.f32 0.17677669, %v6083_v44  ;;  %v1444_v46 = vpop.f32.mrb[67].mxu0  ;;  %v1607_v33 = vsel %vm1600_vm4, %v7640_v31, -inf }
 0x2c5   : > { %v7648_v13 = vmul.f32 0.17677669, %v1444_v46  ;;  %1608 = vmax.xlane.f32.xlu1 %v1607_v33  ;;  %v1601_v50 = vsel %vm1600_vm4, %v7642_v63, -inf }
 0x2c6   : > { %1602 = vmax.xlane.f32.xlu0 %v1601_v50  ;;  %v1610_v52 = vsel %vm1600_vm4, %v7644_v49, -inf }
 0x2c7   : > { %v1604_v59 = vsel %vm1600_vm4, %v7648_v13, -inf }
 0x2c9   : > { %1611 = vmax.xlane.f32.xlu1 %v1610_v52  ;;  %v6086_v58 = vpop.f32.mrb[68].mxu0 }
 0x2ca   : > { %v7656_v60 = vmul.f32 0.17677669, %v6086_v58  ;;  %1605 = vmax.xlane.f32.xlu0 %v1604_v59  ;;  %v1457_v62 = vpop.f32.mrb[69].mxu0 }
 0x2cb   : > { %v6087_v29 = vpop.f32.mrb[70].mxu0  ;;  %v7660_v35 = vmul.f32 0.17677669, %v1457_v62 }
 0x2cc   : > { %v1460_v48 = vpop.f32.mrb[71].mxu0  ;;  %v1619_v4 = vsel %vm1600_vm4, %v7656_v60, -inf  ;;  %v7664_v0 = vmul.f32 0.17677669, %v6087_v29 }
 0x2cd   : > { %v7662_v40 = vmul.f32 0.17677669, %v1460_v48  ;;  %v1613_v45 = vsel %vm1600_vm4, %v7660_v35, -inf }
 0x2ce   : > { %1620 = vmax.xlane.f32.xlu0 %v1619_v4  ;;  %v1622_v1 = vsel %vm1600_vm4, %v7664_v0, -inf }
 0x2cf   : > { %v1616_v3 = vsel %vm1600_vm4, %v7662_v40, -inf }
 0x2d0   : > { %1617 = vmax.xlane.f32.xlu1 %v1616_v3 }
 0x2d2   : > { %v6090_v42 = vpop.f32.mrb[72].mxu0  ;;  %1614 = vmax.xlane.f32.xlu0 %v1613_v45 }
 0x2d3   : > { %v7670_v19 = vmul.f32 0.17677669, %v6090_v42  ;;  %v1473_v2 = vpop.f32.mrb[73].mxu0 }
 0x2d4   : > { %v6091_v55 = vpop.f32.mrb[74].mxu0  ;;  %1623 = vmax.xlane.f32.xlu1 %v1622_v1  ;;  %v7674_v36 = vmul.f32 0.17677669, %v1473_v2 }
 0x2d5   : > { %v1476_v38 = vpop.f32.mrb[75].mxu0  ;;  %v1631_v22 = vsel %vm1600_vm4, %v7670_v19, -inf  ;;  %v7680_v44 = vmul.f32 0.17677669, %v6091_v55 }
 0x2d6   : > { %v7678_v57 = vmul.f32 0.17677669, %v1476_v38  ;;  %1632 = vmax.xlane.f32.xlu0 %v1631_v22  ;;  %v1625_v33 = vsel %vm1600_vm4, %v7674_v36, -inf }
 0x2d7   : > { %v1634_v62 = vsel %vm1600_vm4, %v7680_v44, -inf }
 0x2d8   : > { %v1628_v46 = vsel %vm1600_vm4, %v7678_v57, -inf }
 0x2d9   : > { %1629 = vmax.xlane.f32.xlu1 %v1628_v46 }
 0x2da   : > { %v6094_v50 = vpop.f32.mrb[76].mxu0  ;;  %1626 = vmax.xlane.f32.xlu0 %v1625_v33 }
 0x2db   : > { %v7686_v52 = vmul.f32 0.17677669, %v6094_v50  ;;  %v1489_v58 = vpop.f32.mrb[77].mxu0 }
 0x2dc   : > { %v6095_v59 = vpop.f32.mrb[78].mxu0  ;;  %v7690_v29 = vmul.f32 0.17677669, %v1489_v58 }
 0x2dd   : > { %1635 = vmax.xlane.f32.xlu1 %v1634_v62  ;;  %v1492_v48 = vpop.f32.mrb[79].mxu0  ;;  %v1643_v4 = vsel %vm1600_vm4, %v7686_v52, -inf  ;;  %v7696_v45 = vmul.f32 0.17677669, %v6095_v59 }
 0x2de   : > { %v7694_v3 = vmul.f32 0.17677669, %v1492_v48  ;;  %1644 = vmax.xlane.f32.xlu0 %v1643_v4  ;;  %v1637_v2 = vsel %vm1600_vm4, %v7690_v29, -inf }
 0x2df   : > { %v1646_v22 = vsel %vm1600_vm4, %v7696_v45, -inf }
 0x2e0   : > { %v1640_v42 = vsel %vm1600_vm4, %v7694_v3, -inf }
 0x2e1   : > { %1641 = vmax.xlane.f32.xlu1 %v1640_v42 }
 0x2e2   : > { %1638 = vmax.xlane.f32.xlu0 %v1637_v2 }
 0x2e3   : > { %v6098_v1 = vpop.f32.mrb[80].mxu0 }
 0x2e4   : > { %v7702_v55 = vmul.f32 0.17677669, %v6098_v1  ;;  %v1505_v38 = vpop.f32.mrb[81].mxu0 }
 0x2e5   : > { %v6099_v46 = vpop.f32.mrb[82].mxu0  ;;  %1647 = vmax.xlane.f32.xlu1 %v1646_v22  ;;  %v7706_v33 = vmul.f32 0.17677669, %v1505_v38 }
 0x2e6   : > { %v1508_v50 = vpop.f32.mrb[83].mxu0  ;;  %v1655_v58 = vsel %vm1600_vm4, %v7702_v55, -inf  ;;  %v7712_v62 = vmul.f32 0.17677669, %v6099_v46 }
 0x2e7   : > { %v7710_v59 = vmul.f32 0.17677669, %v1508_v50  ;;  %1656 = vmax.xlane.f32.xlu0 %v1655_v58  ;;  %v1649_v4 = vsel %vm1600_vm4, %v7706_v33, -inf }
 0x2e8   : > { %v1658_v22 = vsel %vm1600_vm4, %v7712_v62, -inf }
 0x2e9   : > { %v1652_v48 = vsel %vm1600_vm4, %v7710_v59, -inf }
 0x2ea   : > { %1653 = vmax.xlane.f32.xlu1 %v1652_v48 }
 0x2eb   : > { %v6102_v42 = vpop.f32.mrb[84].mxu0  ;;  %1650 = vmax.xlane.f32.xlu0 %v1649_v4 }
 0x2ec   : > { %v7718_v2 = vmul.f32 0.17677669, %v6102_v42  ;;  %v1521_v1 = vpop.f32.mrb[85].mxu0 }
 0x2ed   : > { %v6103_v38 = vpop.f32.mrb[86].mxu0  ;;  %v7722_v50 = vmul.f32 0.17677669, %v1521_v1 }
 0x2ee   : > { %1659 = vmax.xlane.f32.xlu1 %v1658_v22  ;;  %v1524_v46 = vpop.f32.mrb[87].mxu0  ;;  %v1667_v58 = vsel %vm1600_vm4, %v7718_v2, -inf  ;;  %v7728_v21 = vmul.f32 0.17677669, %v6103_v38 }
 0x2ef   : > { %v7726_v48 = vmul.f32 0.17677669, %v1524_v46  ;;  %1668 = vmax.xlane.f32.xlu0 %v1667_v58  ;;  %v1661_v42 = vsel %vm1600_vm4, %v7722_v50, -inf }
 0x2f0   : > { %v1670_v20 = vsel %vm1600_vm4, %v7728_v21, -inf }
 0x2f1   : > { %v1664_v4 = vsel %vm1600_vm4, %v7726_v48, -inf }
 0x2f2   : > { %1665 = vmax.xlane.f32.xlu1 %v1664_v4 }
 0x2f3   : > { %1662 = vmax.xlane.f32.xlu0 %v1661_v42 }
 0x2f4   : > { %v6106_v1 = vpop.f32.mrb[88].mxu0 }
 0x2f5   : > { %v7734_v25 = vmul.f32 0.17677669, %v6106_v1  ;;  %v1537_v22 = vpop.f32.mrb[89].mxu0 }
 0x2f6   : > { %v6107_v46 = vpop.f32.mrb[90].mxu0  ;;  %1671 = vmax.xlane.f32.xlu1 %v1670_v20  ;;  %v7738_v58 = vmul.f32 0.17677669, %v1537_v22 }
 0x2f7   : > { %v1540_v38 = vpop.f32.mrb[91].mxu0  ;;  %v1679_v12 = vsel %vm1600_vm4, %v7734_v25, -inf  ;;  %v7744_v56 = vmul.f32 0.17677669, %v6107_v46 }
 0x2f8   : > { %v7742_v4 = vmul.f32 0.17677669, %v1540_v38  ;;  %1680 = vmax.xlane.f32.xlu0 %v1679_v12  ;;  %v1673_v1 = vsel %vm1600_vm4, %v7738_v58, -inf }
 0x2f9   : > { %v1682_v38 = vsel %vm1600_vm4, %v7744_v56, -inf }
 0x2fa   : > { %v1676_v42 = vsel %vm1600_vm4, %v7742_v4, -inf }
 0x2fb   : > { %1677 = vmax.xlane.f32.xlu1 %v1676_v42 }
 0x2fc   : > { %v6110_v9 = vpop.f32.mrb[92].mxu0  ;;  %1674 = vmax.xlane.f32.xlu0 %v1673_v1 }
 0x2fd   : > { %v7750_v20 = vmul.f32 0.17677669, %v6110_v9  ;;  %v1553_v22 = vpop.f32.mrb[93].mxu0 }
 0x2fe   : > { %v6111_v5 = vpop.f32.mrb[94].mxu0  ;;  %v7754_v6 = vmul.f32 0.17677669, %v1553_v22 }
 0x2ff   : > { %1683 = vmax.xlane.f32.xlu1 %v1682_v38  ;;  %v1556_v12 = vpop.f32.mrb[95].mxu0  ;;  %v1691_v46 = vsel %vm1600_vm4, %v7750_v20, -inf  ;;  %v7760_v26 = vmul.f32 0.17677669, %v6111_v5 }
 0x300   : > { %v7758_v42 = vmul.f32 0.17677669, %v1556_v12  ;;  %1692 = vmax.xlane.f32.xlu0 %v1691_v46  ;;  %v1685_v1 = vsel %vm1600_vm4, %v7754_v6, -inf }
 0x301   : > { %v1694_v22 = vsel %vm1600_vm4, %v7760_v26, -inf }
 0x302   : > { %v1688_v9 = vsel %vm1600_vm4, %v7758_v42, -inf }
 0x303   : > { %1689 = vmax.xlane.f32.xlu1 %v1688_v9 }
 0x304   : > { %1686 = vmax.xlane.f32.xlu0 %v1685_v1 }
 0x307   : > { %1695 = vmax.xlane.f32.xlu1 %v1694_v22 }
 0x352   : > { %v1609_v38 = vpop.xlane.xlu1 %1608 }
 0x353   : > { %v1699_v27 = vsub.f32 %v7640_v31, %v1609_v38  ;;  %v1603_v12 = vpop.xlane.xlu0 %1602 }
 0x354   : > { %v1697_v46 = vsub.f32 %v7642_v63, %v1603_v12 }
 0x355   : > { %v1733_v5 = vmul.f32 1.442695, %v1699_v27 }
 0x356   : > { %v1729_v47 = vmul.f32 1.442695, %v1697_v46  ;;  %v1612_v17 = vpop.xlane.xlu1 %1611 }
 0x357   : > { %6947 = vpow2.f32 %v1733_v5  ;;  %v1700_v9 = vsub.f32 %v7644_v49, %v1612_v17  ;;  %v1606_v51 = vpop.xlane.xlu0 %1605 }
 0x358   : > { %v1698_v16 = vsub.f32 %v7648_v13, %v1606_v51  ;;  %6949 = vpow2.f32 %v1729_v47 }
 0x359   : > { %v1735_v1 = vmul.f32 1.442695, %v1700_v9 }
 0x35a   : > { %v1731_v14 = vmul.f32 1.442695, %v1698_v16 }
 0x35b   : > { %6951 = vpow2.f32 %v1735_v1  ;;  %v1621_v22 = vpop.xlane.xlu0 %1620 }
 0x35c   : > { %v1703_v15 = vsub.f32 %v7656_v60, %v1621_v22  ;;  %6953 = vpow2.f32 %v1731_v14 }
 0x35d   : > { %v1618_v31 = vpop.xlane.xlu1 %1617 }
 0x35e   : > { %v1741_v38 = vmul.f32 1.442695, %v1703_v15  ;;  %v1702_v27 = vsub.f32 %v7662_v40, %v1618_v31 }
 0x35f   : > { %v1615_v63 = vpop.xlane.xlu0 %1614 }
 0x360   : > { %6955 = vpow2.f32 %v1741_v38  ;;  %v1701_v12 = vsub.f32 %v7660_v35, %v1615_v63  ;;  %v1739_v14 = vmul.f32 1.442695, %v1702_v27 }
 0x361   : > { %v7775_v17 = vpop.eup %6947  ;;  %v1624_v49 = vpop.xlane.xlu1 %1623 }
 0x362   : > { %v1737_v51 = vmul.f32 1.442695, %v1701_v12  ;;  %v1704_v47 = vsub.f32 %v7664_v0, %v1624_v49  ;;  %v1799_v16 = vsel %vm1600_vm4, %v7775_v17, 0.0  ;;  %v7780_v13 = vpop.eup %6949 }
 0x363   : > { %v1633_v60 = vpop.xlane.xlu0 %1632  ;;  %1800 = vadd.xlane.f32.xlu0 %v1799_v16  ;;  %v1793_v0 = vsel %vm1600_vm4, %v7780_v13, 0.0 }
 0x364   : > { %6957 = vpow2.f32 %v1737_v51  ;;  %v1743_v15 = vmul.f32 1.442695, %v1704_v47  ;;  %v1707_v40 = vsub.f32 %v7670_v19, %v1633_v60 }
 0x365   : > { %v7783_v46 = vpop.eup %6951 }
 0x366   : > { %6959 = vpow2.f32 %v1743_v15  ;;  %v1749_v35 = vmul.f32 1.442695, %v1707_v40  ;;  %v1630_v5 = vpop.xlane.xlu1 %1629  ;;  %v1802_v9 = vsel %vm1600_vm4, %v7783_v46, 0.0  ;;  %v7789_v1 = vpop.eup %6953 }
 0x367   : > { %6961 = vpow2.f32 %v1739_v14  ;;  %v1627_v22 = vpop.xlane.xlu0 %1626  ;;  %1794 = vadd.xlane.f32.xlu0 %v1793_v0  ;;  %1803 = vadd.xlane.f32.xlu1 %v1802_v9  ;;  %v1706_v31 = vsub.f32 %v7678_v57, %v1630_v5  ;;  %v1796_v12 = vsel %vm1600_vm4, %v7789_v1, 0.0 }
 0x368   : > { %6963 = vpow2.f32 %v1749_v35  ;;  %v1705_v19 = vsub.f32 %v7674_v36, %v1627_v22 }
 0x369   : > { %v1747_v36 = vmul.f32 1.442695, %v1706_v31 }
 0x36a   : > { %v7793_v38 = vpop.eup %6955  ;;  %v1745_v27 = vmul.f32 1.442695, %v1705_v19  ;;  %v1636_v63 = vpop.xlane.xlu1 %1635 }
 0x36b   : > { %v1708_v49 = vsub.f32 %v7680_v44, %v1636_v63  ;;  %v1645_v51 = vpop.xlane.xlu0 %1644  ;;  %1797 = vadd.xlane.f32.xlu1 %v1796_v12  ;;  %v1811_v47 = vsel %vm1600_vm4, %v7793_v38, 0.0 }
 0x36c   : > { %6965 = vpow2.f32 %v1745_v27  ;;  %v1711_v16 = vsub.f32 %v7686_v52, %v1645_v51  ;;  %1812 = vadd.xlane.f32.xlu0 %v1811_v47 }
 0x36d   : > { %v1751_v57 = vmul.f32 1.442695, %v1708_v49 }
 0x36e   : > { %v7801_v14 = vpop.eup %6957  ;;  %v1757_v60 = vmul.f32 1.442695, %v1711_v16  ;;  %v1642_v15 = vpop.xlane.xlu1 %1641 }
 0x36f   : > { %6967 = vpow2.f32 %v1751_v57  ;;  %v1639_v40 = vpop.xlane.xlu0 %1638  ;;  %v1805_v44 = vsel %vm1600_vm4, %v7801_v14, 0.0  ;;  %v1710_v52 = vsub.f32 %v7694_v3, %v1642_v15 }
 0x370   : > { %v7805_v35 = vpop.eup %6959  ;;  %6969 = vpow2.f32 %v1757_v60  ;;  %v1709_v5 = vsub.f32 %v7690_v29, %v1639_v40  ;;  %1806 = vadd.xlane.f32.xlu0 %v1805_v44 }
 0x371   : > { %v7808_v0 = vpop.eup %6961  ;;  %6971 = vpow2.f32 %v1747_v36  ;;  %v1814_v9 = vsel %vm1600_vm4, %v7805_v35, 0.0  ;;  %v1755_v12 = vmul.f32 1.442695, %v1710_v52 }
 0x372   : > { %v7813_v22 = vpop.eup %6963  ;;  %v1753_v19 = vmul.f32 1.442695, %v1709_v5  ;;  %v1648_v31 = vpop.xlane.xlu1 %1647  ;;  %1815 = vadd.xlane.f32.xlu1 %v1814_v9  ;;  %v1808_v51 = vsel %vm1600_vm4, %v7808_v0, 0.0 }
 0x373   : > { %v1712_v27 = vsub.f32 %v7696_v45, %v1648_v31  ;;  %v1823_v63 = vsel %vm1600_vm4, %v7813_v22, 0.0 }
 0x374   : > { %6973 = vpow2.f32 %v1753_v19  ;;  %v1657_v29 = vpop.xlane.xlu0 %1656  ;;  %1824 = vadd.xlane.f32.xlu0 %v1823_v63 }
 0x375   : > { %v1759_v49 = vmul.f32 1.442695, %v1712_v27  ;;  %v1715_v3 = vsub.f32 %v7702_v55, %v1657_v29 }
 0x376   : > { %v7821_v47 = vpop.eup %6965  ;;  %1809 = vadd.xlane.f32.xlu1 %v1808_v51 }
 0x377   : > { %6975 = vpow2.f32 %v1759_v49  ;;  %v1654_v16 = vpop.xlane.xlu1 %1653  ;;  %v1817_v45 = vsel %vm1600_vm4, %v7821_v47, 0.0  ;;  %v1765_v60 = vmul.f32 1.442695, %v1715_v3 }
 0x378   : > { %v1651_v36 = vpop.xlane.xlu0 %1650  ;;  %1818 = vadd.xlane.f32.xlu0 %v1817_v45  ;;  %6977 = vpow2.f32 %v1755_v12  ;;  %v1714_v49 = vsub.f32 %v7710_v59, %v1654_v16 }
 0x379   : > { %v7825_v57 = vpop.eup %6967  ;;  %v1713_v15 = vsub.f32 %v7706_v33, %v1651_v36  ;;  %6979 = vpow2.f32 %v1765_v60 }
 0x37a   : > { %v7828_v55 = vpop.eup %6969  ;;  %v1826_v40 = vsel %vm1600_vm4, %v7825_v57, 0.0  ;;  %v1763_v36 = vmul.f32 1.442695, %v1714_v49 }
 0x37b   : > { %v7832_v44 = vpop.eup %6971  ;;  %v1660_v5 = vpop.xlane.xlu1 %1659  ;;  %1827 = vadd.xlane.f32.xlu1 %v1826_v40  ;;  %v1835_v52 = vsel %vm1600_vm4, %v7828_v55, 0.0  ;;  %v1761_v19 = vmul.f32 1.442695, %v1713_v15 }
 0x37c   : > { %v7836_v9 = vpop.xlane.xlu0 %1668  ;;  %1836 = vadd.xlane.f32.xlu0 %v1835_v52  ;;  %v1716_v31 = vsub.f32 %v7712_v62, %v1660_v5  ;;  %v1820_v27 = vsel %vm1600_vm4, %v7832_v44, 0.0 }
 0x37d   : > { %6981 = vpow2.f32 %v1761_v19 }
 0x37e   : > { %v7839_v33 = vpop.eup %6973  ;;  %v1767_v3 = vmul.f32 1.442695, %v1716_v31 }
 0x37f   : > { %1821 = vadd.xlane.f32.xlu1 %v1820_v27  ;;  %v1829_v63 = vsel %vm1600_vm4, %v7839_v33, 0.0  ;;  %v1666_v29 = vpop.xlane.xlu1 %1665 }
 0x380   : > { %1830 = vadd.xlane.f32.xlu0 %v1829_v63  ;;  %v1663_v51 = vpop.xlane.xlu0 %1662  ;;  %6983 = vpow2.f32 %v1767_v3 }
 0x381   : > { %v7845_v12 = vpop.eup %6975  ;;  %v1717_v60 = vsub.f32 %v7722_v50, %v1663_v51  ;;  %6985 = vpow2.f32 %v1763_v36  ;;  %v1718_v50 = vsub.f32 %v7726_v48, %v1666_v29 }
 0x382   : > { %v1838_v62 = vsel %vm1600_vm4, %v7845_v12, 0.0  ;;  %v7850_v45 = vpop.eup %6977 }
 0x383   : > { %1839 = vadd.xlane.f32.xlu1 %v1838_v62  ;;  %v1672_v15 = vpop.xlane.xlu1 %1671  ;;  %v1832_v40 = vsel %vm1600_vm4, %v7850_v45, 0.0  ;;  %v7855_v5 = vpop.eup %6979  ;;  %v1769_v59 = vmul.f32 1.442695, %v1717_v60  ;;  %v1771_v51 = vmul.f32 1.442695, %v1718_v50 }
 0x384   : > { %v1720_v16 = vsub.f32 %v7728_v21, %v1672_v15  ;;  %v1847_v52 = vsel %vm1600_vm4, %v7855_v5, 0.0 }
 0x385   : > { %v1681_v31 = vpop.xlane.xlu0 %1680  ;;  %6987 = vpow2.f32 %v1769_v59 }
 0x386   : > { %v1775_v27 = vmul.f32 1.442695, %v1720_v16  ;;  %v1723_v21 = vsub.f32 %v7734_v25, %v1681_v31 }
 0x387   : > { %1833 = vadd.xlane.f32.xlu1 %v1832_v40  ;;  %v7860_v19 = vpop.eup %6981 }
 0x388   : > { %v1678_v63 = vpop.xlane.xlu1 %1677  ;;  %v1841_v49 = vsel %vm1600_vm4, %v7860_v19, 0.0  ;;  %6989 = vpow2.f32 %v1775_v27  ;;  %v1781_v29 = vmul.f32 1.442695, %v1723_v21 }
 0x389   : > { %v1675_v62 = vpop.xlane.xlu0 %1674  ;;  %6991 = vpow2.f32 %v1771_v51 }
 0x38a   : > { %v7865_v3 = vpop.eup %6983  ;;  %v1721_v15 = vsub.f32 %v7738_v58, %v1675_v62  ;;  %6993 = vpow2.f32 %v1781_v29 }
 0x38b   : > { %1848 = vadd.xlane.f32.xlu1 %v1847_v52  ;;  %v1850_v36 = vsel %vm1600_vm4, %v7865_v3, 0.0  ;;  %v7870_v60 = vpop.eup %6985 }
 0x38c   : > { %v1684_v48 = vpop.xlane.xlu1 %1683  ;;  %v1844_v40 = vsel %vm1600_vm4, %v7870_v60, 0.0  ;;  %v1777_v16 = vmul.f32 1.442695, %v1721_v15 }
 0x38d   : > { %v1693_v25 = vpop.xlane.xlu0 %1692  ;;  %v1724_v52 = vsub.f32 %v7744_v56, %v1684_v48  ;;  %v1719_v56 = vsub.f32 %v7718_v2, %v7836_v9 }
 0x38e   : > { %6995 = vpow2.f32 %v1777_v16 }
 0x38f   : > { %1842 = vadd.xlane.f32.xlu1 %v1841_v49  ;;  %v7876_v59 = vpop.eup %6987  ;;  %v1783_v58 = vmul.f32 1.442695, %v1724_v52  ;;  %v1773_v29 = vmul.f32 1.442695, %v1719_v56  ;;  %v1727_v52 = vsub.f32 %v7750_v20, %v1693_v25 }
 0x390   : > { %v1690_v31 = vpop.xlane.xlu1 %1689  ;;  %v1853_v50 = vsel %vm1600_vm4, %v7876_v59, 0.0 }
 0x391   : > { %v1687_v49 = vpop.xlane.xlu0 %1686  ;;  %6997 = vpow2.f32 %v1783_v58 }
 0x392   : > { %v7881_v27 = vpop.eup %6989  ;;  %v1725_v48 = vsub.f32 %v7754_v6, %v1687_v49 }
 0x393   : > { %1851 = vadd.xlane.f32.xlu1 %v1850_v36  ;;  %v1862_v51 = vsel %vm1600_vm4, %v7881_v27, 0.0  ;;  %v7886_v21 = vpop.eup %6991 }
 0x394   : > { %v1696_v62 = vpop.xlane.xlu1 %1695  ;;  %v1785_v16 = vmul.f32 1.442695, %v1725_v48 }
 0x395   : > { %v1728_v15 = vsub.f32 %v7760_v26, %v1696_v62 }
 0x396   : > { %1970 = vrot.lane.b32.xlu0 %v7581_v61, %s7085_s18  ;;  %v1722_v61 = vsub.f32 %v7742_v4, %v1678_v63  ;;  %v1856_v4 = vsel %vm1600_vm4, %v7886_v21, 0.0  ;;  %v7893_v63 = vpop.eup %6993  ;;  %s8634_s18 = scalar_lea.vmem %s8778_s12, %s5741_s13 }
 0x397   : > { %1845 = vadd.xlane.f32.xlu1 %v1844_v40  ;;  %v1726_v40 = vsub.f32 %v7758_v42, %v1690_v31  ;;  %v1871_v2 = vsel %vm1600_vm4, %v7893_v63, 0.0  ;;  %v1791_v6 = vmul.f32 1.442695, %v1728_v15  ;;  %v1789_v42 = vmul.f32 1.442695, %v1727_v52 }
 0x398   : > { %v1779_v36 = vmul.f32 1.442695, %v1722_v61  ;;  %v7899_v9 = vpop.eup %6995 }
 0x399   : > { %v1865_v26 = vsel %vm1600_vm4, %v7899_v9, 0.0 }
 0x39a   : > { %6999 = vpow2.f32 %v1779_v36 }
 0x39b   : > { %1854 = vadd.xlane.f32.xlu1 %v1853_v50  ;;  %7001 = vpow2.f32 %v1773_v29  ;;  %v1787_v50 = vmul.f32 1.442695, %v1726_v40  ;;  %v7904_v61 = vpop.eup %6997 }
 0x39c   : > { %7003 = vpow2.f32 %v1785_v16  ;;  %v1874_v31 = vsel %vm1600_vm4, %v7904_v61, 0.0 }
 0x39d   : > { %7005 = vpow2.f32 %v1791_v6 }
 0x39e   : > { %7007 = vpow2.f32 %v1787_v50 }
 0x39f   : > { %1863 = vadd.xlane.f32.xlu1 %v1862_v51  ;;  %7009 = vpow2.f32 %v1789_v42 }
 0x3a3   : > { %1857 = vadd.xlane.f32.xlu1 %v1856_v4 }
 0x3a4   : > { %v7908_v58 = vpop.eup %6999 }
 0x3a5   : > { %v7910_v49 = vpop.eup %7001  ;;  %v1868_v20 = vsel %vm1600_vm4, %v7908_v58, 0.0 }
 0x3a6   : > { %v7914_v25 = vpop.eup %7003  ;;  %v1859_v51 = vsel %vm1600_vm4, %v7910_v49, 0.0 }
 0x3a7   : > { %1872 = vadd.xlane.f32.xlu1 %v1871_v2  ;;  %v7918_v56 = vpop.eup %7005  ;;  %v1877_v62 = vsel %vm1600_vm4, %v7914_v25, 0.0 }
 0x3a8   : > { %v7922_v36 = vpop.eup %7007  ;;  %v1886_v48 = vsel %vm1600_vm4, %v7918_v56, 0.0 }
 0x3a9   : > { %v1880_v4 = vsel %vm1600_vm4, %v7922_v36, 0.0  ;;  %v7928_v29 = vpop.eup %7009 }
 0x3aa   : > { %v1883_v15 = vsel %vm1600_vm4, %v7928_v29, 0.0 }
 0x3ab   : > { %1866 = vadd.xlane.f32.xlu1 %v1865_v26 }
 0x3af   : > { %1875 = vadd.xlane.f32.xlu1 %v1874_v31 }
 0x3b3   : > { %1869 = vadd.xlane.f32.xlu1 %v1868_v20 }
 0x3b5   : > { %1860 = vadd.xlane.f32.xlu0 %v1859_v51 }
 0x3b7   : > { %1878 = vadd.xlane.f32.xlu1 %v1877_v62 }
 0x3b9   : > { %1887 = vadd.xlane.f32.xlu0 %v1886_v48 }
 0x3bb   : > { %1881 = vadd.xlane.f32.xlu1 %v1880_v4 }
 0x3bf   : > { %1884 = vadd.xlane.f32.xlu1 %v1883_v15 }
 0x3f0   : > { %v1801_v40 = vpop.xlane.xlu0 %1800 }
 0x3f4   : > { %v1795_v16 = vpop.xlane.xlu0 %1794  ;;  %v1804_v2 = vpop.xlane.xlu1 %1803 }
 0x3f5   : > { %7011 = vrcp.f32 %v1795_v16 }
 0x3f8   : > { %v1798_v6 = vpop.xlane.xlu1 %1797 }
 0x3f9   : > { %7013 = vrcp.f32 %v1798_v6  ;;  %v1813_v52 = vpop.xlane.xlu0 %1812 }
 0x3fa   : > { %7015 = vrcp.f32 %v1804_v2 }
 0x3fd   : > { %v1807_v50 = vpop.xlane.xlu0 %1806 }
 0x3ff   : > { %v1816_v26 = vpop.xlane.xlu1 %1815  ;;  %v7012_v42 = vpop.eup %7011 }
 0x400   : > { %v1921_v62 = vmul.f32 %v7012_v42, %v7780_v13 }
 0x401   : > { %v1825_v31 = vpop.xlane.xlu0 %1824 }
 0x403   : > { %v7014_v20 = vpop.eup %7013  ;;  %v1810_v51 = vpop.xlane.xlu1 %1809 }
 0x404   : > { %7017 = vrcp.f32 %v1810_v51  ;;  %v1922_v48 = vmul.f32 %v7014_v20, %v7789_v1  ;;  %v7016_v34 = vpop.eup %7015 }
 0x405   : > { %7019 = vrcp.f32 %v1801_v40  ;;  %v1819_v4 = vpop.xlane.xlu0 %1818  ;;  %v1924_v1 = vmul.f32 %v7016_v34, %v7783_v46 }
 0x406   : > { %7021 = vrcp.f32 %v1807_v50  ;;  %v1953_v15 = vpack.c.bf16 %v1922_v48, %v1921_v62  ;;  %v6799_v50 = vld [vmem:[%s8774_s8] sm:$0xff]  }
 0x407   : > { %7023 = vrcp.f32 %v1816_v26 }
 0x408   : > { %v1828_v16 = vpop.xlane.xlu1 %1827  ;;  %6114 = vmatprep.mubr.msk.bf16.mxu0 %vm1600_vm4, %v1953_v15  ;;  %7025 = vrcp.f32 %v1813_v52 }
 0x409   : > { %v1837_v6 = vpop.xlane.xlu0 %1836 }
 0x40c   : > { %v1822_v18 = vpop.xlane.xlu1 %1821 }
 0x40d   : > { %7027 = vrcp.f32 %v1822_v18  ;;  %v1831_v2 = vpop.xlane.xlu0 %1830 }
 0x40e   : > { %v7018_v24 = vpop.eup %7017  ;;  %7029 = vrcp.f32 %v1819_v4 }
 0x40f   : > { %v7020_v51 = vpop.eup %7019  ;;  %v1926_v26 = vmul.f32 %v7018_v24, %v7808_v0  ;;  %7031 = vrcp.f32 %v1828_v16 }
 0x410   : > { %v7022_v13 = vpop.eup %7021  ;;  %v1840_v40 = vpop.xlane.xlu1 %1839  ;;  %v1923_v52 = vmul.f32 %v7020_v51, %v7775_v17  ;;  %7033 = vrcp.f32 %v1825_v31 }
 0x411   : > { %v1971_v42 = vpop.permute.xlu0 %1970  ;;  %v1925_v18 = vmul.f32 %v7022_v13, %v7801_v14  ;;  %v7024_v34 = vpop.eup %7023 }
 0x412   : > { %v2022_v20 = vsel %vm2020_vm5, %v1971_v42, 0  ;;  %6764 = vmatprep.subr.msk.bf16.mxu0 %vm2020_vm5, %v1971_v42  ;;  %v1954_v62 = vpack.c.bf16 %v1924_v1, %v1923_v52  ;;  %v7026_v4 = vpop.eup %7025  ;;  %v1928_v15 = vmul.f32 %v7024_v34, %v7805_v35 }
 0x413   : > { %6113 = vmatpush3.bf16.msra.mxu0 %v2022_v20  ;;  %v1955_v46 = vpack.c.bf16 %v1926_v26, %v1925_v18  ;;  %v1927_v31 = vmul.f32 %v7026_v4, %v7793_v38 }
 0x414   : > { %v1834_v48 = vpop.xlane.xlu1 %1833  ;;  %6146 = vmatprep.subr.bf16.mxu0 %v6799_v50 }
 0x415   : > { %7035 = vrcp.f32 %v1834_v48  ;;  %v1956_v13 = vpack.c.bf16 %v1928_v15, %v1927_v31 }
 0x416   : > { %7037 = vrcp.f32 %v1831_v2  ;;  %6115 = vmatmul.mubr.msk.bf16.vlgmr.msra.gmra.mrb[96].mxu0 %vm1600_vm4, %v1954_v62 }
 0x417   : > { %v7028_v24 = vpop.eup %7027  ;;  %6118 = vmatprep.mubr.msk.bf16.mxu0 %vm1600_vm4, %v1955_v46  ;;  %6147 = vmatpush3.bf16.msra.mxu0 %v6799_v50  ;;  %7039 = vrcp.f32 %v1840_v40 }
 0x418   : > { %v7030_v17 = vpop.eup %7029  ;;  %v1849_v0 = vpop.xlane.xlu1 %1848  ;;  %v1930_v14 = vmul.f32 %v7028_v24, %v7832_v44  ;;  %7041 = vrcp.f32 %v1837_v6 }
 0x419   : > { %v1929_v16 = vmul.f32 %v7030_v17, %v7821_v47  ;;  %v7032_v2 = vpop.eup %7031 }
 0x41a   : > { %v7034_v42 = vpop.eup %7033  ;;  %v1932_v44 = vmul.f32 %v7032_v2, %v7825_v57 }
 0x41b   : > { %v1957_v1 = vpack.c.bf16 %v1930_v14, %v1929_v16  ;;  %v1931_v47 = vmul.f32 %v7034_v42, %v7813_v22 }
 0x41c   : > { %v1843_v51 = vpop.xlane.xlu1 %1842 }
 0x41d   : > { %7043 = vrcp.f32 %v1843_v51  ;;  %v1958_v52 = vpack.c.bf16 %v1932_v44, %v1931_v47 }
 0x41e   : > { %6119 = vmatmul.mubr.msk.bf16.gmra.mrb[100].mxu0 %vm1600_vm4, %v1956_v13 }
 0x41f   : > { %v7036_v50 = vpop.eup %7035  ;;  %6122 = vmatprep.mubr.msk.bf16.mxu0 %vm1600_vm4, %v1957_v1 }
 0x420   : > { %v7038_v26 = vpop.eup %7037  ;;  %v1852_v35 = vpop.xlane.xlu1 %1851  ;;  %v1934_v38 = vmul.f32 %v7036_v50, %v7850_v45 }
 0x421   : > { %7045 = vrcp.f32 %v1852_v35  ;;  %v1933_v40 = vmul.f32 %v7038_v26, %v7839_v33  ;;  %v7040_v20 = vpop.eup %7039 }
 0x422   : > { %7047 = vrcp.f32 %v1849_v0  ;;  %v7042_v62 = vpop.eup %7041  ;;  %v1936_v45 = vmul.f32 %v7040_v20, %v7845_v12 }
 0x423   : > { %v1959_v18 = vpack.c.bf16 %v1934_v38, %v1933_v40  ;;  %v1935_v48 = vmul.f32 %v7042_v62, %v7828_v55 }
 0x424   : > { %v1846_v6 = vpop.xlane.xlu1 %1845 }
 0x425   : > { %7049 = vrcp.f32 %v1846_v6  ;;  %v1960_v46 = vpack.c.bf16 %v1936_v45, %v1935_v48 }
 0x426   : > { %6123 = vmatmul.mubr.msk.bf16.gmra.mrb[104].mxu0 %vm1600_vm4, %v1958_v52 }
 0x427   : > { %6126 = vmatprep.mubr.msk.bf16.mxu0 %vm1600_vm4, %v1959_v18  ;;  %v7044_v22 = vpop.eup %7043 }
 0x428   : > { %v1855_v57 = vpop.xlane.xlu1 %1854  ;;  %v1937_v0 = vmul.f32 %v7044_v22, %v7860_v19 }
 0x429   : > { %7051 = vrcp.f32 %v1855_v57 }
 0x42b   : > { %v7046_v33 = vpop.eup %7045 }
 0x42c   : > { %v1864_v34 = vpop.xlane.xlu1 %1863  ;;  %v7048_v4 = vpop.eup %7047  ;;  %v1940_v14 = vmul.f32 %v7046_v33, %v7865_v3 }
 0x42d   : > { %v1939_v55 = vmul.f32 %v7048_v4, %v7855_v5 }
 0x42e   : > { %6127 = vmatmul.mubr.msk.bf16.gmra.mrb[108].mxu0 %vm1600_vm4, %v1960_v46 }
 0x42f   : > { %v7050_v24 = vpop.eup %7049  ;;  %v1962_v16 = vpack.c.bf16 %v1940_v14, %v1939_v55 }
 0x430   : > { %v1858_v17 = vpop.xlane.xlu1 %1857  ;;  %v1938_v15 = vmul.f32 %v7050_v24, %v7870_v60 }
 0x431   : > { %7053 = vrcp.f32 %v1858_v17 }
 0x432   : > { %v1961_v12 = vpack.c.bf16 %v1938_v15, %v1937_v0  ;;  %7055 = vrcp.f32 %v1864_v34 }
 0x433   : > { %v7052_v13 = vpop.eup %7051 }
 0x434   : > { %6130 = vmatprep.mubr.msk.bf16.mxu0 %vm1600_vm4, %v1961_v12  ;;  %v1873_v31 = vpop.xlane.xlu1 %1872  ;;  %v1941_v19 = vmul.f32 %v7052_v13, %v7876_v59 }
 0x436   : > { %6131 = vmatmul.mubr.msk.bf16.gmra.mrb[112].mxu0 %vm1600_vm4, %v1962_v16 }
 0x438   : > { %v1867_v51 = vpop.xlane.xlu1 %1866 }
 0x43b   : > { %v7054_v2 = vpop.eup %7053 }
 0x43c   : > { %v1876_v1 = vpop.xlane.xlu1 %1875  ;;  %v1942_v60 = vmul.f32 %v7054_v2, %v7886_v21  ;;  %v7056_v35 = vpop.eup %7055 }
 0x43d   : > { %v1944_v52 = vmul.f32 %v7056_v35, %v7881_v27 }
 0x43e   : > { %v1963_v42 = vpack.c.bf16 %v1942_v60, %v1941_v19 }
 0x440   : > { %6134 = vmatprep.mubr.msk.bf16.mxu0 %vm1600_vm4, %v1963_v42  ;;  %v1870_v3 = vpop.xlane.xlu1 %1869 }
 0x441   : > { %7057 = vrcp.f32 %v1870_v3 }
 0x442   : > { %7059 = vrcp.f32 %v1867_v51  ;;  %v1861_v5 = vpop.xlane.xlu0 %1860 }
 0x443   : > { %7061 = vrcp.f32 %v1861_v5 }
 0x444   : > { %v1879_v50 = vpop.xlane.xlu1 %1878  ;;  %7063 = vrcp.f32 %v1876_v1 }
 0x445   : > { %7065 = vrcp.f32 %v1873_v31 }
 0x446   : > { %v1888_v40 = vpop.xlane.xlu0 %1887 }
 0x448   : > { %v1882_v26 = vpop.xlane.xlu1 %1881 }
 0x449   : > { %7067 = vrcp.f32 %v1882_v26 }
 0x44a   : > { %7069 = vrcp.f32 %v1879_v50 }
 0x44b   : > { %v7058_v44 = vpop.eup %7057 }
 0x44c   : > { %v7060_v59 = vpop.eup %7059  ;;  %v1885_v38 = vpop.xlane.xlu1 %1884  ;;  %v1946_v47 = vmul.f32 %v7058_v44, %v7908_v58 }
 0x44d   : > { %v7062_v21 = vpop.eup %7061  ;;  %7071 = vrcp.f32 %v1885_v38  ;;  %v1945_v20 = vmul.f32 %v7060_v59, %v7899_v9 }
 0x44e   : > { %v1943_v6 = vmul.f32 %v7062_v21, %v7910_v49  ;;  %v7064_v62 = vpop.eup %7063  ;;  %7073 = vrcp.f32 %v1888_v40 }
 0x44f   : > { %v1965_v57 = vpack.c.bf16 %v1946_v47, %v1945_v20  ;;  %v7066_v45 = vpop.eup %7065  ;;  %v1948_v58 = vmul.f32 %v7064_v62, %v7904_v61 }
 0x450   : > { %v1964_v18 = vpack.c.bf16 %v1944_v52, %v1943_v6  ;;  %v1947_v27 = vmul.f32 %v7066_v45, %v7893_v63  ;;  %v6800_v63 = vld [vmem:[%s8774_s8 + $0x8] sm:$0xff]  }
 0x451   : > { %6148 = vmatprep.subr.bf16.mxu0 %v6800_v63 }
 0x452   : > { %6135 = vmatmul.mubr.msk.bf16.gmra.mrb[116].mxu0 %vm1600_vm4, %v1964_v18  ;;  %v1966_v9 = vpack.c.bf16 %v1948_v58, %v1947_v27 }
 0x453   : > { %v7068_v48 = vpop.eup %7067  ;;  %6138 = vmatprep.mubr.msk.bf16.mxu0 %vm1600_vm4, %v1965_v57  ;;  %6149 = vmatpush3.bf16.msra.mxu0 %v6800_v63  ;;  %v6801_v63 = vld [vmem:[%s8776_s10 + $0x10] sm:$0xff]  }
 0x454   : > { %v7070_v22 = vpop.eup %7069  ;;  %v1950_v49 = vmul.f32 %v7068_v48, %v7922_v36  ;;  %6182 = vmatprep.subr.bf16.mxu0 %v6801_v63 }
 0x455   : > { %v1949_v34 = vmul.f32 %v7070_v22, %v7914_v25 }
 0x457   : > { %v7072_v46 = vpop.eup %7071  ;;  %v1967_v33 = vpack.c.bf16 %v1950_v49, %v1949_v34 }
 0x458   : > { %v7074_v4 = vpop.eup %7073  ;;  %v1951_v24 = vmul.f32 %v7072_v46, %v7928_v29 }
 0x459   : > { %v1952_v17 = vmul.f32 %v7074_v4, %v7918_v56 }
 0x45a   : > { %6139 = vmatmul.mubr.msk.bf16.gmra.mrb[120].mxu0 %vm1600_vm4, %v1966_v9 }
 0x45b   : > { %6142 = vmatprep.mubr.msk.bf16.mxu0 %vm1600_vm4, %v1967_v33  ;;  %v1968_v0 = vpack.c.bf16 %v1952_v17, %v1951_v24 }
 0x462   : > { %6143 = vmatmul.mubr.msk.bf16.gmra.mrb[124].mxu0 %vm1600_vm4, %v1968_v0  ;;  %v8817_v0 = vmov 0.0  }
 0x463   : > { %2474 = vst.msk [vmem:[#allocation2 + $0x40] sm:$0x3] %vm2467_vm6, %v8817_v0  ;;  %2468 = vst.msk [vmem:[#allocation2 + $0x10] sm:$0x3] %vm2467_vm6, %v8817_v0 }
 0x464   : > { %2471 = vst.msk [vmem:[#allocation2 + $0x28] sm:$0x3] %vm2467_vm6, %v8817_v0  ;;  %2477 = vst.msk [vmem:[#allocation2 + $0x58] sm:$0x3] %vm2467_vm6, %v8817_v0 }
 0x465   : > { %2480 = vst.msk [vmem:[#allocation2 + $0x70] sm:$0x3] %vm2467_vm6, %v8817_v0  ;;  %2483 = vst.msk [vmem:[#allocation2 + $0x88] sm:$0x3] %vm2467_vm6, %v8817_v0 }
 0x466   : > { %2486 = vst.msk [vmem:[#allocation2 + $0xa0] sm:$0x3] %vm2467_vm6, %v8817_v0  ;;  %2489 = vst.msk [vmem:[#allocation2 + $0xb8] sm:$0x3] %vm2467_vm6, %v8817_v0 }
 0x467   : > { %2492 = vst.msk [vmem:[#allocation2 + $0xd0] sm:$0x3] %vm2467_vm6, %v8817_v0  ;;  %2495 = vst.msk [vmem:[#allocation2 + $0xe8] sm:$0x3] %vm2467_vm6, %v8817_v0 }
 0x468   : > { %2498 = vst.msk [vmem:[#allocation2 + $0x100] sm:$0x3] %vm2467_vm6, %v8817_v0  ;;  %2501 = vst.msk [vmem:[#allocation2 + $0x118] sm:$0x3] %vm2467_vm6, %v8817_v0 }
 0x469   : > { %2504 = vst.msk [vmem:[#allocation2 + $0x130] sm:$0x3] %vm2467_vm6, %v8817_v0  ;;  %2507 = vst.msk [vmem:[#allocation2 + $0x148] sm:$0x3] %vm2467_vm6, %v8817_v0 }
 0x46a   : > { %2510 = vst.msk [vmem:[#allocation2 + $0x160] sm:$0x3] %vm2467_vm6, %v8817_v0  ;;  %2513 = vst.msk [vmem:[#allocation2 + $0x178] sm:$0x3] %vm2467_vm6, %v8817_v0 }
 0x46b   : > { %2516 = vst.msk [vmem:[#allocation2 + $0x190] sm:$0x3] %vm2467_vm6, %v8817_v0  ;;  %2519 = vst.msk [vmem:[#allocation2 + $0x1a8] sm:$0x3] %vm2467_vm6, %v8817_v0 }
 0x4e9   : > { %v6116_v61 = vpop.f32.mrb[96].mxu0 }
 0x4ea   : > { %v2058_v25 = vpop.f32.mrb[97].mxu0 }
 0x4eb   : > { %v6117_v36 = vpop.f32.mrb[98].mxu0 }
 0x4ec   : > { %v2186_v15 = vpack.c.bf16 %v6117_v36, %v6116_v61  ;;  %v2061_v14 = vpop.f32.mrb[99].mxu0  ;;  %v6802_v61 = vld [vmem:[%s8776_s10 + $0x20] sm:$0xff]   ;;  %v6804_v36 = vld [vmem:[%s8776_s10 + $0x28] sm:$0xff]  }
 0x4ed   : > { %v2185_v12 = vpack.c.bf16 %v2061_v14, %v2058_v25  ;;  %6254 = vmatprep.subr.bf16.mxu1 %v6802_v61  ;;  %v6803_v25 = vld [vmem:[%s8776_s10 + $0x18] sm:$0xff]   ;;  %v2606_v14 = vld [vmem:[#allocation2 + $0x9] sm:$0xff] }
 0x4ee   : > { %6255 = vmatpush3.bf16.msra.mxu1 %v6802_v61 }
 0x4ef   : > { %6150 = vmatprep.mubr.msk.bf16.mxu0 %vm1063_vm3, %v2185_v12  ;;  %6256 = vmatprep.subr.bf16.mxu1 %v6804_v36  ;;  %v3100_v12 = vld [vmem:[#allocation2 + $0x2] sm:$0xff] }
 0x4f0   : > { %6151 = vmatmul.mubr.msk.bf16.vlgmr.msra.gmra.mrb[128].mxu0 %vm1063_vm3, %v2186_v15  ;;  %v2605_v15 = vld [vmem:[#allocation2 + $0x1] sm:$0xff] }
 0x4f1   : > { %v6120_v56 = vpop.f32.mrb[100].mxu0  ;;  %6183 = vmatpush3.bf16.msra.mxu0 %v6801_v63 }
 0x4f2   : > { %v2074_v29 = vpop.f32.mrb[101].mxu0  ;;  %6184 = vmatprep.subr.bf16.mxu0 %v6803_v25  ;;  %6257 = vmatpush3.bf16.msra.mxu1 %v6804_v36 }
 0x4f3   : > { %v6121_v55 = vpop.f32.mrb[102].mxu0 }
 0x4f4   : > { %v2188_v31 = vpack.c.bf16 %v6121_v55, %v6120_v56  ;;  %v2077_v16 = vpop.f32.mrb[103].mxu0  ;;  %v2637_v56 = vpack.c.bf16 %v2606_v14, %v2605_v15  ;;  %v8128_v15 = vld [vmem:[%s8776_s10 + $0x40] sm:$0xff]  }
 0x4f5   : > { %v2187_v51 = vpack.c.bf16 %v2077_v16, %v2074_v29  ;;  %6185 = vmatpush3.bf16.msra.mxu0 %v6803_v25  ;;  %v3101_v29 = vld [vmem:[#allocation2 + $0xa] sm:$0xff]  ;;  %v8061_v16 = vld [vmem:[%s8776_s10] sm:$0xff]  }
 0x4f6   : > { %v3132_v55 = vpack.c.bf16 %v3101_v29, %v3100_v12  ;;  %6218 = vmatprep.subr.bf16.mxu0 %v8061_v16 }
 0x4f7   : > { %6154 = vmatprep.mubr.msk.bf16.mxu0 %vm1063_vm3, %v2187_v51  ;;  %v8067_v51 = vld [vmem:[%s8775_s9] ss:$0 sm:$0xff] }
 0x4f8   : > { %6155 = vmatmul.mubr.msk.bf16.gmra.mrb[132].mxu0 %vm1063_vm3, %v2188_v31  ;;  %6258 = vmatprep.mubr.msk.bf16.mxu1 %vm1063_vm3, %v3132_v55  ;;  %v8055_v31 = vld [vmem:[%s8776_s10 + $0x30] sm:$0xff]  }
 0x4f9   : > { %v6124_v13 = vpop.f32.mrb[104].mxu0  ;;  %6290 = vmatprep.subr.bf16.mxu1 %v8055_v31 }
 0x4fa   : > { %v2090_v2 = vpop.f32.mrb[105].mxu0 }
 0x4fb   : > { %v6125_v1 = vpop.f32.mrb[106].mxu0 }
 0x4fc   : > { %v2190_v19 = vpack.c.bf16 %v6125_v1, %v6124_v13  ;;  %v2093_v60 = vpop.f32.mrb[107].mxu0 }
 0x4fd   : > { %v2189_v42 = vpack.c.bf16 %v2093_v60, %v2090_v2 }
 0x4ff   : > { %6158 = vmatprep.mubr.msk.bf16.mxu0 %vm1063_vm3, %v2189_v42 }
 0x500   : > { %6159 = vmatmul.mubr.msk.bf16.gmra.mrb[136].mxu0 %vm1063_vm3, %v2190_v19 }
 0x501   : > { %v6128_v3 = vpop.f32.mrb[108].mxu0 }
 0x502   : > { %v2106_v5 = vpop.f32.mrb[109].mxu0 }
 0x503   : > { %v6129_v50 = vpop.f32.mrb[110].mxu0 }
 0x504   : > { %v2192_v26 = vpack.c.bf16 %v6129_v50, %v6128_v3  ;;  %v2109_v35 = vpop.f32.mrb[111].mxu0 }
 0x505   : > { %v2191_v44 = vpack.c.bf16 %v2109_v35, %v2106_v5 }
 0x507   : > { %6162 = vmatprep.mubr.msk.bf16.mxu0 %vm1063_vm3, %v2191_v44 }
 0x508   : > { %6163 = vmatmul.mubr.msk.bf16.gmra.mrb[140].mxu0 %vm1063_vm3, %v2192_v26 }
 0x509   : > { %v6132_v59 = vpop.f32.mrb[112].mxu0 }
 0x50a   : > { %v2122_v38 = vpop.f32.mrb[113].mxu0 }
 0x50b   : > { %v6133_v21 = vpop.f32.mrb[114].mxu0 }
 0x50c   : > { %v2194_v47 = vpack.c.bf16 %v6133_v21, %v6132_v59  ;;  %v2125_v40 = vpop.f32.mrb[115].mxu0 }
 0x50d   : > { %v2193_v6 = vpack.c.bf16 %v2125_v40, %v2122_v38 }
 0x50f   : > { %6166 = vmatprep.mubr.msk.bf16.mxu0 %vm1063_vm3, %v2193_v6 }
 0x510   : > { %6167 = vmatmul.mubr.msk.bf16.gmra.mrb[144].mxu0 %vm1063_vm3, %v2194_v47 }
 0x525   : > { %v6136_v52 = vpop.f32.mrb[116].mxu0 }
 0x526   : > { %v2138_v20 = vpop.f32.mrb[117].mxu0 }
 0x527   : > { %v6137_v18 = vpop.f32.mrb[118].mxu0 }
 0x528   : > { %v2196_v62 = vpack.c.bf16 %v6137_v18, %v6136_v52  ;;  %v2141_v57 = vpop.f32.mrb[119].mxu0 }
 0x529   : > { %v2195_v45 = vpack.c.bf16 %v2141_v57, %v2138_v20 }
 0x52b   : > { %6170 = vmatprep.mubr.msk.bf16.mxu0 %vm1063_vm3, %v2195_v45 }
 0x52c   : > { %6171 = vmatmul.mubr.msk.bf16.gmra.mrb[148].mxu0 %vm1063_vm3, %v2196_v62 }
 0x52d   : > { %v6140_v48 = vpop.f32.mrb[120].mxu0 }
 0x52e   : > { %v2154_v22 = vpop.f32.mrb[121].mxu0 }
 0x52f   : > { %v6141_v58 = vpop.f32.mrb[122].mxu0 }
 0x530   : > { %v2198_v49 = vpack.c.bf16 %v6141_v58, %v6140_v48  ;;  %v2157_v27 = vpop.f32.mrb[123].mxu0 }
 0x531   : > { %v2197_v34 = vpack.c.bf16 %v2157_v27, %v2154_v22 }
 0x533   : > { %6174 = vmatprep.mubr.msk.bf16.mxu0 %vm1063_vm3, %v2197_v34 }
 0x534   : > { %6175 = vmatmul.mubr.msk.bf16.gmra.mrb[152].mxu0 %vm1063_vm3, %v2198_v49 }
 0x535   : > { %v6144_v9 = vpop.f32.mrb[124].mxu0 }
 0x536   : > { %v2170_v46 = vpop.f32.mrb[125].mxu0 }
 0x537   : > { %v6145_v33 = vpop.f32.mrb[126].mxu0 }
 0x538   : > { %v2200_v4 = vpack.c.bf16 %v6145_v33, %v6144_v9  ;;  %v2173_v24 = vpop.f32.mrb[127].mxu0  ;;  %v6808_v33 = vld [vmem:[%s8776_s10 + $0x38] sm:$0xff]  }
 0x539   : > { %v2199_v17 = vpack.c.bf16 %v2173_v24, %v2170_v46  ;;  %v6807_v46 = vld [vmem:[%s8776_s10 + $0x8] sm:$0xff]  }
 0x53b   : > { %6178 = vmatprep.mubr.msk.bf16.mxu0 %vm1063_vm3, %v2199_v17 }
 0x53c   : > { %6179 = vmatmul.mubr.msk.bf16.gmra.mrb[156].mxu0 %vm1063_vm3, %v2200_v4 }
 0x53d   : > { %6186 = vmatprep.mubr.msk.bf16.mxu0 %vm1063_vm3, %v2637_v56 }
 0x5c3   : > { %v6152_v13 = vpop.f32.mrb[128].mxu0 }
 0x5c4   : > { %v2315_v2 = vadd.f32 %v6152_v13, %v8067_v51  ;;  %v2306_v1 = vpop.f32.mrb[129].mxu0 }
 0x5c5   : > { %v2307_v19 = vadd.f32 %v8067_v51, %v2306_v1  ;;  %v6153_v60 = vpop.f32.mrb[130].mxu0 }
 0x5c6   : > { %v2435_v42 = vadd.f32 %v2315_v2, %v7374_v39  ;;  %v2318_v3 = vadd.f32 %v6153_v60, %v8067_v51  ;;  %v2309_v5 = vpop.f32.mrb[131].mxu0 }
 0x5c7   : > { %v2433_v50 = vadd.f32 %v2307_v19, %v7377_v41  ;;  %v2310_v26 = vadd.f32 %v8067_v51, %v2309_v5 }
 0x5c8   : > { %2523 = vst.msk [vmem:[#allocation2 + $0x31] sm:$0xff] %vm1063_vm3, %v2435_v42  ;;  %v2436_v35 = vadd.f32 %v2318_v3, %v7371_v37 }
 0x5c9   : > { %2521 = vst.msk [vmem:[#allocation2 + $0x19] sm:$0xff] %vm1063_vm3, %v2433_v50  ;;  %v2434_v44 = vadd.f32 %v2310_v26, %v7380_v43 }
 0x5ca   : > { %2524 = vst.msk [vmem:[#allocation2 + $0x39] sm:$0xff] %vm1063_vm3, %v2436_v35 }
 0x5cb   : > { %2522 = vst.msk [vmem:[#allocation2 + $0x21] sm:$0xff] %vm1063_vm3, %v2434_v44  ;;  %v6156_v39 = vpop.f32.mrb[132].mxu0 }
 0x5cc   : > { %v2331_v59 = vadd.f32 %v6156_v39, %v8067_v51  ;;  %v2322_v38 = vpop.f32.mrb[133].mxu0  ;;  %v8818_v39 = vld [vmem:[#allocation3_spill] sm:$0xff] }
 0x5cd   : > { %v2323_v41 = vadd.f32 %v8067_v51, %v2322_v38  ;;  %v6157_v21 = vpop.f32.mrb[134].mxu0 }
 0x5ce   : > { %v2439_v47 = vadd.f32 %v2331_v59, %v7405_v7  ;;  %v2334_v40 = vadd.f32 %v6157_v21, %v8067_v51  ;;  %v2325_v37 = vpop.f32.mrb[135].mxu0 }
 0x5cf   : > { %v2437_v6 = vadd.f32 %v2323_v41, %v7411_v10  ;;  %v2326_v43 = vadd.f32 %v8067_v51, %v2325_v37 }
 0x5d0   : > { %2527 = vst.msk [vmem:[#allocation2 + $0x61] sm:$0xff] %vm1063_vm3, %v2439_v47  ;;  %v2440_v52 = vadd.f32 %v2334_v40, %v7408_v8  ;;  %v2607_v20 = vld [vmem:[#allocation2 + $0x19] sm:$0xff]  ;;  %v2609_v8 = vld [vmem:[#allocation2 + $0x31] sm:$0xff] }
 0x5d1   : > { %2525 = vst.msk [vmem:[#allocation2 + $0x49] sm:$0xff] %vm1063_vm3, %v2437_v6  ;;  %v2438_v18 = vadd.f32 %v2326_v43, %v7414_v11  ;;  %v2610_v62 = vld [vmem:[#allocation2 + $0x39] sm:$0xff] }
 0x5d2   : > { %v3104_v57 = vld [vmem:[#allocation2 + $0x32] sm:$0xff]  ;;  %v3105_v45 = vld [vmem:[#allocation2 + $0x3a] sm:$0xff]  ;;  %2528 = vst.msk [vmem:[#allocation2 + $0x69] sm:$0xff] %vm1063_vm3, %v2440_v52  ;;  %v3103_v22 = vld [vmem:[#allocation2 + $0x22] sm:$0xff]  ;;  %v8098_v11 = vpack.c.bf16 %v2610_v62, %v2609_v8 }
 0x5d3   : > { %v2608_v7 = vld [vmem:[#allocation2 + $0x21] sm:$0xff]  ;;  %2526 = vst.msk [vmem:[#allocation2 + $0x51] sm:$0xff] %vm1063_vm3, %v2438_v18  ;;  %v6160_v10 = vpop.f32.mrb[136].mxu0  ;;  %v8100_v9 = vpack.c.bf16 %v3105_v45, %v3104_v57 }
 0x5d4   : > { %v3102_v48 = vld [vmem:[#allocation2 + $0x1a] sm:$0xff]  ;;  %v8093_v58 = vpack.c.bf16 %v2608_v7, %v2607_v20  ;;  %v2347_v27 = vadd.f32 %v6160_v10, %v8067_v51  ;;  %v2338_v34 = vpop.f32.mrb[137].mxu0 }
 0x5d5   : > { %v8095_v49 = vpack.c.bf16 %v3103_v22, %v3102_v48  ;;  %v2339_v4 = vadd.f32 %v8067_v51, %v2338_v34  ;;  %v6161_v24 = vpop.f32.mrb[138].mxu0  ;;  %v8820_v10 = vld [vmem:[#allocation8_spill] sm:$0xff] }
 0x5d6   : > { %6187 = vmatmul.mubr.msk.bf16.vlgmr.msra.gmra.mrb[160].mxu0 %vm1063_vm3, %v8093_v58  ;;  %v2443_v17 = vadd.f32 %v2347_v27, %v7439_v28  ;;  %v2350_v0 = vadd.f32 %v6161_v24, %v8067_v51  ;;  %v2341_v63 = vpop.f32.mrb[139].mxu0  ;;  %v8822_v24 = vld [vmem:[#allocation5_spill] sm:$0xff] }
 0x5d7   : > { %6259 = vmatmul.mubr.msk.bf16.vlgmr.msra.gmra.mrb[4].mxu1 %vm1063_vm3, %v8095_v49  ;;  %6190 = vmatprep.mubr.msk.bf16.mxu0 %vm1063_vm3, %v8098_v11  ;;  %v2441_v61 = vadd.f32 %v2339_v4, %v7445_v53  ;;  %v2342_v25 = vadd.f32 %v8067_v51, %v2341_v63  ;;  %v2613_v2 = vld [vmem:[#allocation2 + $0x61] sm:$0xff]  ;;  %v8823_v63 = vld [vmem:[#allocation7_spill] sm:$0xff] }
 0x5d8   : > { %6262 = vmatprep.mubr.msk.bf16.mxu1 %vm1063_vm3, %v8100_v9  ;;  %6291 = vmatpush3.bf16.msra.mxu1 %v8055_v31  ;;  %2531 = vst.msk [vmem:[#allocation2 + $0x91] sm:$0xff] %vm1063_vm3, %v2443_v17  ;;  %v2444_v28 = vadd.f32 %v2350_v0, %v7442_v30  ;;  %v2611_v36 = vld [vmem:[#allocation2 + $0x49] sm:$0xff] }
 0x5d9   : > { %6219 = vmatpush3.bf16.msra.mxu0 %v8061_v16  ;;  %6292 = vmatprep.subr.bf16.mxu1 %v6808_v33  ;;  %2529 = vst.msk [vmem:[#allocation2 + $0x79] sm:$0xff] %vm1063_vm3, %v2441_v61  ;;  %v2442_v53 = vadd.f32 %v2342_v25, %v7448_v54  ;;  %v2614_v14 = vld [vmem:[#allocation2 + $0x69] sm:$0xff] }
 0x5da   : > { %6220 = vmatprep.subr.bf16.mxu0 %v6807_v46  ;;  %v3108_v12 = vld [vmem:[#allocation2 + $0x62] sm:$0xff]  ;;  %v3109_v56 = vld [vmem:[#allocation2 + $0x6a] sm:$0xff]  ;;  %2532 = vst.msk [vmem:[#allocation2 + $0x99] sm:$0xff] %vm1063_vm3, %v2444_v28  ;;  %v3107_v30 = vld [vmem:[#allocation2 + $0x52] sm:$0xff]  ;;  %v8139_v19 = vpack.c.bf16 %v2614_v14, %v2613_v2 }
 0x5db   : > { %v2612_v29 = vld [vmem:[#allocation2 + $0x51] sm:$0xff]  ;;  %2530 = vst.msk [vmem:[#allocation2 + $0x81] sm:$0xff] %vm1063_vm3, %v2442_v53  ;;  %v6164_v31 = vpop.f32.mrb[140].mxu0  ;;  %v8141_v60 = vpack.c.bf16 %v3109_v56, %v3108_v12 }
 0x5dc   : > { %v3106_v55 = vld [vmem:[#allocation2 + $0x4a] sm:$0xff]  ;;  %v8134_v16 = vpack.c.bf16 %v2612_v29, %v2611_v36  ;;  %6293 = vmatpush3.bf16.msra.mxu1 %v6808_v33  ;;  %v2363_v54 = vadd.f32 %v6164_v31, %v8067_v51  ;;  %v2354_v1 = vpop.f32.mrb[141].mxu0 }
 0x5dd   : > { %v8136_v13 = vpack.c.bf16 %v3107_v30, %v3106_v55  ;;  %6221 = vmatpush3.bf16.msra.mxu0 %v6807_v46  ;;  %6326 = vmatprep.subr.bf16.mxu1 %v8128_v15  ;;  %v2355_v42 = vadd.f32 %v8067_v51, %v2354_v1  ;;  %v6165_v3 = vpop.f32.mrb[142].mxu0  ;;  %v8821_v46 = vld [vmem:[#allocation6_spill] sm:$0xff] }
 0x5de   : > { %6191 = vmatmul.mubr.msk.bf16.gmra.mrb[164].mxu0 %vm1063_vm3, %v8134_v16  ;;  %v2447_v5 = vadd.f32 %v2363_v54, %v7473_v23  ;;  %v2366_v50 = vadd.f32 %v6165_v3, %v8067_v51  ;;  %v2357_v26 = vpop.f32.mrb[143].mxu0  ;;  %v8819_v23 = vld [vmem:[#allocation4_spill] sm:$0xff] }
 0x5df   : > { %6263 = vmatmul.mubr.msk.bf16.gmra.mrb[8].mxu1 %vm1063_vm3, %v8136_v13  ;;  %6194 = vmatprep.mubr.msk.bf16.mxu0 %vm1063_vm3, %v8139_v19  ;;  %v2445_v35 = vadd.f32 %v2355_v42, %v7479_v32  ;;  %v2358_v44 = vadd.f32 %v8067_v51, %v2357_v26  ;;  %v2617_v18 = vld [vmem:[#allocation2 + $0x91] sm:$0xff] }
 0x5e0   : > { %6266 = vmatprep.mubr.msk.bf16.mxu1 %vm1063_vm3, %v8141_v60  ;;  %2535 = vst.msk [vmem:[#allocation2 + $0xc1] sm:$0xff] %vm1063_vm3, %v2447_v5  ;;  %v2448_v59 = vadd.f32 %v2366_v50, %v8818_v39  ;;  %v2615_v38 = vld [vmem:[#allocation2 + $0x79] sm:$0xff] }
 0x5e1   : > { %2533 = vst.msk [vmem:[#allocation2 + $0xa9] sm:$0xff] %vm1063_vm3, %v2445_v35  ;;  %v2446_v41 = vadd.f32 %v2358_v44, %v8819_v23  ;;  %v2618_v21 = vld [vmem:[#allocation2 + $0x99] sm:$0xff] }
 0x5e2   : > { %v3112_v47 = vld [vmem:[#allocation2 + $0x92] sm:$0xff]  ;;  %v3113_v40 = vld [vmem:[#allocation2 + $0x9a] sm:$0xff]  ;;  %2536 = vst.msk [vmem:[#allocation2 + $0xc9] sm:$0xff] %vm1063_vm3, %v2448_v59  ;;  %v3111_v43 = vld [vmem:[#allocation2 + $0x82] sm:$0xff]  ;;  %v8168_v45 = vpack.c.bf16 %v2618_v21, %v2617_v18 }
 0x5e3   : > { %v2616_v37 = vld [vmem:[#allocation2 + $0x81] sm:$0xff]  ;;  %2534 = vst.msk [vmem:[#allocation2 + $0xb1] sm:$0xff] %vm1063_vm3, %v2446_v41  ;;  %v6168_v32 = vpop.f32.mrb[144].mxu0  ;;  %v8170_v7 = vpack.c.bf16 %v3113_v40, %v3112_v47  ;;  %v8824_v40 = vld [vmem:[#allocation12_spill] sm:$0xff] }
 0x5e4   : > { %v3110_v6 = vld [vmem:[#allocation2 + $0x7a] sm:$0xff]  ;;  %v8163_v52 = vpack.c.bf16 %v2616_v37, %v2615_v38  ;;  %v2379_v62 = vadd.f32 %v6168_v32, %v8067_v51  ;;  %v2370_v57 = vpop.f32.mrb[145].mxu0  ;;  %v8825_v32 = vld [vmem:[#allocation10_spill] sm:$0xff] }
 0x5e5   : > { %v8165_v20 = vpack.c.bf16 %v3111_v43, %v3110_v6  ;;  %v2371_v48 = vadd.f32 %v8067_v51, %v2370_v57  ;;  %v6169_v22 = vpop.f32.mrb[146].mxu0  ;;  %v8826_v57 = vld [vmem:[#allocation9_spill] sm:$0xff] }
 0x5e6   : > { %6195 = vmatmul.mubr.msk.bf16.gmra.mrb[168].mxu0 %vm1063_vm3, %v8163_v52  ;;  %v2451_v8 = vadd.f32 %v2379_v62, %v8820_v10  ;;  %v2382_v27 = vadd.f32 %v6169_v22, %v8067_v51  ;;  %v2373_v34 = vpop.f32.mrb[147].mxu0  ;;  %v8827_v22 = vld [vmem:[#allocation11_spill] sm:$0xff] }
 0x5e7   : > { %6267 = vmatmul.mubr.msk.bf16.gmra.mrb[12].mxu1 %vm1063_vm3, %v8165_v20  ;;  %6198 = vmatprep.mubr.msk.bf16.mxu0 %vm1063_vm3, %v8168_v45  ;;  %v2449_v33 = vadd.f32 %v2371_v48, %v8821_v46  ;;  %v2374_v4 = vadd.f32 %v8067_v51, %v2373_v34  ;;  %v2621_v55 = vld [vmem:[#allocation2 + $0xc1] sm:$0xff] }
 0x5e8   : > { %6270 = vmatprep.mubr.msk.bf16.mxu1 %vm1063_vm3, %v8170_v7  ;;  %2539 = vst.msk [vmem:[#allocation2 + $0xf1] sm:$0xff] %vm1063_vm3, %v2451_v8  ;;  %v2452_v17 = vadd.f32 %v2382_v27, %v8822_v24  ;;  %v2619_v0 = vld [vmem:[#allocation2 + $0xa9] sm:$0xff] }
 0x5e9   : > { %2537 = vst.msk [vmem:[#allocation2 + $0xd9] sm:$0xff] %vm1063_vm3, %v2449_v33  ;;  %v2450_v61 = vadd.f32 %v2374_v4, %v8823_v63  ;;  %v2622_v25 = vld [vmem:[#allocation2 + $0xc9] sm:$0xff]  ;;  %v8828_v4 = vld [vmem:[#allocation16_spill] sm:$0xff] }
 0x5ea   : > { %v3116_v28 = vld [vmem:[#allocation2 + $0xc2] sm:$0xff]  ;;  %v3117_v36 = vld [vmem:[#allocation2 + $0xca] sm:$0xff]  ;;  %2540 = vst.msk [vmem:[#allocation2 + $0xf9] sm:$0xff] %vm1063_vm3, %v2452_v17  ;;  %v3115_v12 = vld [vmem:[#allocation2 + $0xb2] sm:$0xff]  ;;  %v8195_v30 = vpack.c.bf16 %v2622_v25, %v2621_v55 }
 0x5eb   : > { %v2620_v53 = vld [vmem:[#allocation2 + $0xb1] sm:$0xff]  ;;  %2538 = vst.msk [vmem:[#allocation2 + $0xe1] sm:$0xff] %vm1063_vm3, %v2450_v61  ;;  %v8197_v31 = vpack.c.bf16 %v3117_v36, %v3116_v28  ;;  %v8829_v63 = vld [vmem:[#allocation14_spill] sm:$0xff]  ;;  %v8830_v28 = vld [vmem:[#allocation13_spill] sm:$0xff] }
 0x5ec   : > { %v3114_v14 = vld [vmem:[#allocation2 + $0xaa] sm:$0xff]  ;;  %v8191_v56 = vpack.c.bf16 %v2620_v53, %v2619_v0 }
 0x5ed   : > { %v8193_v29 = vpack.c.bf16 %v3115_v12, %v3114_v14  ;;  %v8831_v14 = vld [vmem:[#allocation15_spill] sm:$0xff] }
 0x5ee   : > { %6199 = vmatmul.mubr.msk.bf16.gmra.mrb[172].mxu0 %vm1063_vm3, %v8191_v56 }
 0x5ef   : > { %6271 = vmatmul.mubr.msk.bf16.gmra.mrb[16].mxu1 %vm1063_vm3, %v8193_v29  ;;  %6202 = vmatprep.mubr.msk.bf16.mxu0 %vm1063_vm3, %v8195_v30  ;;  %v2625_v44 = vld [vmem:[#allocation2 + $0xf1] sm:$0xff] }
 0x5f0   : > { %6274 = vmatprep.mubr.msk.bf16.mxu1 %vm1063_vm3, %v8197_v31  ;;  %v2623_v2 = vld [vmem:[#allocation2 + $0xd9] sm:$0xff] }
 0x5f1   : > { %v2626_v54 = vld [vmem:[#allocation2 + $0xf9] sm:$0xff] }
 0x5f2   : > { %v3120_v1 = vld [vmem:[#allocation2 + $0xf2] sm:$0xff]  ;;  %v3121_v42 = vld [vmem:[#allocation2 + $0xfa] sm:$0xff]  ;;  %v3119_v50 = vld [vmem:[#allocation2 + $0xe2] sm:$0xff]  ;;  %v8211_v39 = vpack.c.bf16 %v2626_v54, %v2625_v44 }
 0x5f3   : > { %v2624_v3 = vld [vmem:[#allocation2 + $0xe1] sm:$0xff]  ;;  %v8213_v59 = vpack.c.bf16 %v3121_v42, %v3120_v1 }
 0x5f4   : > { %v3118_v5 = vld [vmem:[#allocation2 + $0xda] sm:$0xff]  ;;  %v8207_v26 = vpack.c.bf16 %v2624_v3, %v2623_v2 }
 0x5f5   : > { %v8209_v35 = vpack.c.bf16 %v3119_v50, %v3118_v5 }
 0x5f6   : > { %6203 = vmatmul.mubr.msk.bf16.gmra.mrb[176].mxu0 %vm1063_vm3, %v8207_v26 }
 0x5f7   : > { %6275 = vmatmul.mubr.msk.bf16.gmra.mrb[20].mxu1 %vm1063_vm3, %v8209_v35  ;;  %6206 = vmatprep.mubr.msk.bf16.mxu0 %vm1063_vm3, %v8211_v39 }
 0x5f8   : > { %6278 = vmatprep.mubr.msk.bf16.mxu1 %vm1063_vm3, %v8213_v59 }
 0x5ff   : > { %v6172_v38 = vpop.f32.mrb[148].mxu0 }
 0x600   : > { %v2395_v23 = vadd.f32 %v6172_v38, %v8067_v51  ;;  %v2386_v41 = vpop.f32.mrb[149].mxu0 }
 0x601   : > { %v2387_v21 = vadd.f32 %v8067_v51, %v2386_v41  ;;  %v6173_v47 = vpop.f32.mrb[150].mxu0 }
 0x602   : > { %v2455_v37 = vadd.f32 %v2395_v23, %v8824_v40  ;;  %v2398_v6 = vadd.f32 %v6173_v47, %v8067_v51  ;;  %v2389_v43 = vpop.f32.mrb[151].mxu0 }
 0x603   : > { %v2453_v18 = vadd.f32 %v2387_v21, %v8825_v32  ;;  %v2390_v62 = vadd.f32 %v8067_v51, %v2389_v43 }
 0x604   : > { %2543 = vst.msk [vmem:[#allocation2 + $0x121] sm:$0xff] %vm1063_vm3, %v2455_v37  ;;  %v2456_v48 = vadd.f32 %v2398_v6, %v8826_v57  ;;  %v8832_v6 = vld [vmem:[#allocation17_spill] sm:$0xff] }
 0x605   : > { %2541 = vst.msk [vmem:[#allocation2 + $0x109] sm:$0xff] %vm1063_vm3, %v2453_v18  ;;  %v2454_v10 = vadd.f32 %v2390_v62, %v8827_v22  ;;  %v8833_v62 = vld [vmem:[#allocation18_spill] sm:$0xff]  ;;  %v8834_v22 = vld [vmem:[#allocation19_spill] sm:$0xff] }
 0x606   : > { %2544 = vst.msk [vmem:[#allocation2 + $0x129] sm:$0xff] %vm1063_vm3, %v2456_v48 }
 0x607   : > { %2542 = vst.msk [vmem:[#allocation2 + $0x111] sm:$0xff] %vm1063_vm3, %v2454_v10  ;;  %v6176_v8 = vpop.f32.mrb[152].mxu0 }
 0x608   : > { %v2411_v27 = vadd.f32 %v6176_v8, %v8067_v51  ;;  %v2402_v34 = vpop.f32.mrb[153].mxu0 }
 0x609   : > { %v2403_v46 = vadd.f32 %v8067_v51, %v2402_v34  ;;  %v6177_v33 = vpop.f32.mrb[154].mxu0 }
 0x60a   : > { %v2459_v24 = vadd.f32 %v2411_v27, %v8828_v4  ;;  %v2414_v17 = vadd.f32 %v6177_v33, %v8067_v51  ;;  %v2405_v0 = vpop.f32.mrb[155].mxu0  ;;  %v8835_v27 = vld [vmem:[#allocation20_spill] sm:$0xff] }
 0x60b   : > { %v2457_v61 = vadd.f32 %v2403_v46, %v8829_v63  ;;  %v2406_v25 = vadd.f32 %v8067_v51, %v2405_v0  ;;  %v2629_v38 = vld [vmem:[#allocation2 + $0x121] sm:$0xff] }
 0x60c   : > { %2547 = vst.msk [vmem:[#allocation2 + $0x151] sm:$0xff] %vm1063_vm3, %v2459_v24  ;;  %v2460_v36 = vadd.f32 %v2414_v17, %v8830_v28  ;;  %v2627_v53 = vld [vmem:[#allocation2 + $0x109] sm:$0xff] }
 0x60d   : > { %2545 = vst.msk [vmem:[#allocation2 + $0x139] sm:$0xff] %vm1063_vm3, %v2457_v61  ;;  %v2458_v12 = vadd.f32 %v2406_v25, %v8831_v14  ;;  %v2630_v55 = vld [vmem:[#allocation2 + $0x129] sm:$0xff] }
 0x60e   : > { %v3124_v2 = vld [vmem:[#allocation2 + $0x122] sm:$0xff]  ;;  %v3125_v54 = vld [vmem:[#allocation2 + $0x12a] sm:$0xff]  ;;  %2548 = vst.msk [vmem:[#allocation2 + $0x159] sm:$0xff] %vm1063_vm3, %v2460_v36  ;;  %v3123_v3 = vld [vmem:[#allocation2 + $0x112] sm:$0xff]  ;;  %v8252_v21 = vpack.c.bf16 %v2630_v55, %v2629_v38 }
 0x60f   : > { %v2628_v1 = vld [vmem:[#allocation2 + $0x111] sm:$0xff]  ;;  %2546 = vst.msk [vmem:[#allocation2 + $0x141] sm:$0xff] %vm1063_vm3, %v2458_v12  ;;  %v6180_v5 = vpop.f32.mrb[156].mxu0  ;;  %v8254_v47 = vpack.c.bf16 %v3125_v54, %v3124_v2  ;;  %v2553_v36 = vld [vmem:[#allocation2] sm:$0xff] }
 0x610   : > { %v3122_v42 = vld [vmem:[#allocation2 + $0x10a] sm:$0xff]  ;;  %v8247_v50 = vpack.c.bf16 %v2628_v1, %v2627_v53  ;;  %v2427_v23 = vadd.f32 %v6180_v5, %v8067_v51  ;;  %v2418_v41 = vpop.f32.mrb[157].mxu0  ;;  %v3407_v12 = vld [vmem:[#allocation2 + $0x20] sm:$0xff]  ;;  %v3406_v5 = vld [vmem:[#allocation2 + $0x18] sm:$0xff] }
 0x611   : > { %v8249_v44 = vpack.c.bf16 %v3123_v3, %v3122_v42  ;;  %v2419_v40 = vadd.f32 %v8067_v51, %v2418_v41  ;;  %v6181_v37 = vpop.f32.mrb[158].mxu0  ;;  %v2554_v53 = vld [vmem:[#allocation2 + $0x8] sm:$0xff]  ;;  %v3438_v38 = vpack.c.bf16 %v3407_v12, %v3406_v5  ;;  %v3411_v41 = vld [vmem:[#allocation2 + $0x50] sm:$0xff] }
 0x612   : > { %6207 = vmatmul.mubr.msk.bf16.gmra.mrb[180].mxu0 %vm1063_vm3, %v8247_v50  ;;  %v2463_v43 = vadd.f32 %v2427_v23, %v8832_v6  ;;  %v2430_v32 = vadd.f32 %v6181_v37, %v8067_v51  ;;  %v2421_v18 = vpop.f32.mrb[159].mxu0  ;;  %v2585_v1 = vpack.c.bf16 %v2554_v53, %v2553_v36  ;;  %v3409_v23 = vld [vmem:[#allocation2 + $0x38] sm:$0xff]  ;;  %v3410_v6 = vld [vmem:[#allocation2 + $0x48] sm:$0xff]  ;;  %v3427_v12 = vld [vmem:[#allocation2 + $0x110] sm:$0xff] }
 0x613   : > { %6279 = vmatmul.mubr.msk.bf16.gmra.mrb[24].mxu1 %vm1063_vm3, %v8249_v44  ;;  %6210 = vmatprep.mubr.msk.bf16.mxu0 %vm1063_vm3, %v8252_v21  ;;  %v2461_v57 = vadd.f32 %v2419_v40, %v8833_v62  ;;  %v2422_v48 = vadd.f32 %v8067_v51, %v2421_v18  ;;  %v2633_v61 = vld [vmem:[#allocation2 + $0x151] sm:$0xff]  ;;  %v3413_v18 = vld [vmem:[#allocation2 + $0x68] sm:$0xff] }
 0x614   : > { %6282 = vmatprep.mubr.msk.bf16.mxu1 %vm1063_vm3, %v8254_v47  ;;  %2551 = vst.msk [vmem:[#allocation2 + $0x181] sm:$0xff] %vm1063_vm3, %v2463_v43  ;;  %v2464_v10 = vadd.f32 %v2430_v32, %v8834_v22  ;;  %v2631_v8 = vld [vmem:[#allocation2 + $0x139] sm:$0xff]  ;;  %v3408_v40 = vld [vmem:[#allocation2 + $0x30] sm:$0xff]  ;;  %v8303_v43 = vpack.c.bf16 %v3411_v41, %v3410_v6  ;;  %v6810_v32 = vld [vmem:[%s8776_s10 + $0x48] sm:$0xff]  }
 0x615   : > { %2549 = vst.msk [vmem:[#allocation2 + $0x169] sm:$0xff] %vm1063_vm3, %v2461_v57  ;;  %v2462_v34 = vadd.f32 %v2422_v48, %v8835_v27  ;;  %v2634_v46 = vld [vmem:[#allocation2 + $0x159] sm:$0xff]  ;;  %v8301_v37 = vpack.c.bf16 %v3409_v23, %v3408_v40  ;;  %v8319_v62 = vld [vmem:[%s8776_s10 + $0x50] sm:$0xff]   ;;  %v3429_v5 = vld [vmem:[#allocation2 + $0x128] sm:$0xff] }
 0x616   : > { %v3128_v33 = vld [vmem:[#allocation2 + $0x152] sm:$0xff]  ;;  %v3129_v4 = vld [vmem:[#allocation2 + $0x15a] sm:$0xff]  ;;  %2552 = vst.msk [vmem:[#allocation2 + $0x189] sm:$0xff] %vm1063_vm3, %v2464_v10  ;;  %v3127_v0 = vld [vmem:[#allocation2 + $0x142] sm:$0xff]  ;;  %v8279_v25 = vpack.c.bf16 %v2634_v46, %v2633_v61 }
 0x617   : > { %v2632_v24 = vld [vmem:[#allocation2 + $0x141] sm:$0xff]  ;;  %2550 = vst.msk [vmem:[#allocation2 + $0x171] sm:$0xff] %vm1063_vm3, %v2462_v34  ;;  %v8281_v28 = vpack.c.bf16 %v3129_v4, %v3128_v33  ;;  %v3414_v10 = vld [vmem:[#allocation2 + $0x78] sm:$0xff]  ;;  %v3419_v27 = vld [vmem:[#allocation2 + $0xb0] sm:$0xff] }
 0x618   : > { %v3126_v17 = vld [vmem:[#allocation2 + $0x13a] sm:$0xff]  ;;  %v8275_v51 = vpack.c.bf16 %v2632_v24, %v2631_v8  ;;  %v3416_v34 = vld [vmem:[#allocation2 + $0x90] sm:$0xff]  ;;  %v3418_v33 = vld [vmem:[#allocation2 + $0xa8] sm:$0xff] }
 0x619   : > { %v8277_v63 = vpack.c.bf16 %v3127_v0, %v3126_v17  ;;  %v3415_v57 = vld [vmem:[#allocation2 + $0x80] sm:$0xff]  ;;  %v8336_v4 = vpack.c.bf16 %v3419_v27, %v3418_v33  ;;  %v3421_v24 = vld [vmem:[#allocation2 + $0xc8] sm:$0xff]  ;;  %v3422_v36 = vld [vmem:[#allocation2 + $0xd8] sm:$0xff] }
 0x61a   : > { %6211 = vmatmul.mubr.msk.bf16.gmra.mrb[184].mxu0 %vm1063_vm3, %v8275_v51  ;;  %v3412_v48 = vld [vmem:[#allocation2 + $0x60] sm:$0xff]  ;;  %v8323_v8 = vpack.c.bf16 %v3415_v57, %v3414_v10  ;;  %v3430_v40 = vld [vmem:[#allocation2 + $0x138] sm:$0xff]  ;;  %v3432_v57 = vld [vmem:[#allocation2 + $0x150] sm:$0xff] }
 0x61b   : > { %6283 = vmatmul.mubr.msk.bf16.gmra.mrb[28].mxu1 %vm1063_vm3, %v8277_v63  ;;  %6214 = vmatprep.mubr.msk.bf16.mxu0 %vm1063_vm3, %v8279_v25  ;;  %v8321_v22 = vpack.c.bf16 %v3413_v18, %v3412_v48  ;;  %v3423_v17 = vld [vmem:[#allocation2 + $0xe0] sm:$0xff] }
 0x61c   : > { %6286 = vmatprep.mubr.msk.bf16.mxu1 %vm1063_vm3, %v8281_v28  ;;  %v2635_v14 = vld [vmem:[#allocation2 + $0x169] sm:$0xff]  ;;  %v3420_v0 = vld [vmem:[#allocation2 + $0xc0] sm:$0xff]  ;;  %v8348_v53 = vpack.c.bf16 %v3423_v17, %v3422_v36  ;;  %v4631_v36 = vld [vmem:[#allocation2 + $0x31] sm:$0xff] }
 0x61d   : > { %v8346_v61 = vpack.c.bf16 %v3421_v24, %v3420_v0  ;;  %v3428_v23 = vld [vmem:[#allocation2 + $0x120] sm:$0xff]  ;;  %v3434_v10 = vld [vmem:[#allocation2 + $0x168] sm:$0xff]  ;;  %v6812_v24 = vld [vmem:[%s8776_s10 + $0x58] sm:$0xff]  }
 0x61e   : > { %v2636_v55 = vld [vmem:[#allocation2 + $0x171] sm:$0xff]  ;;  %v8370_v41 = vpack.c.bf16 %v3429_v5, %v3428_v23  ;;  %v3437_v27 = vld [vmem:[#allocation2 + $0x188] sm:$0xff]  ;;  %v6813_v17 = vld [vmem:[%s8776_s10 + $0x60] sm:$0xff]  }
 0x61f   : > { %v3130_v2 = vld [vmem:[#allocation2 + $0x16a] sm:$0xff]  ;;  %v3131_v54 = vld [vmem:[#allocation2 + $0x172] sm:$0xff]  ;;  %v8291_v42 = vpack.c.bf16 %v2636_v55, %v2635_v14  ;;  %v4635_v23 = vld [vmem:[#allocation2 + $0x61] sm:$0xff] }
 0x620   : > { %v8293_v3 = vpack.c.bf16 %v3131_v54, %v3130_v2  ;;  %v3425_v14 = vld [vmem:[#allocation2 + $0xf8] sm:$0xff]  ;;  %v3424_v55 = vld [vmem:[#allocation2 + $0xf0] sm:$0xff]  ;;  %v3426_v54 = vld [vmem:[#allocation2 + $0x108] sm:$0xff] }
 0x621   : > { %v8358_v2 = vpack.c.bf16 %v3425_v14, %v3424_v55  ;;  %v3435_v18 = vld [vmem:[#allocation2 + $0x170] sm:$0xff] }
 0x622   : > { %6215 = vmatmul.mubr.msk.bf16.gmra.mrb[188].mxu0 %vm1063_vm3, %v8291_v42 }
 0x623   : > { %6287 = vmatmul.mubr.msk.bf16.gmra.mrb[32].mxu1 %vm1063_vm3, %v8293_v3  ;;  %6222 = vmatprep.mubr.msk.bf16.mxu0 %vm1063_vm3, %v2585_v1  ;;  %v8360_v1 = vpack.c.bf16 %v3427_v12, %v3426_v54  ;;  %v4634_v12 = vld [vmem:[#allocation2 + $0x51] sm:$0xff] }
 0x624   : > { %6294 = vmatprep.mubr.msk.bf16.mxu1 %vm1063_vm3, %v3438_v38 }
 0x62a   : > { %6223 = vmatmul.mubr.msk.bf16.vlgmr.msra.gmra.mrb[160].mxu0 %vm1063_vm3, %v3438_v38  ;;  %v3431_v38 = vld [vmem:[#allocation2 + $0x140] sm:$0xff] }
 0x62b   : > { %6295 = vmatmul.mubr.msk.bf16.vlgmr.msra.gmra.mrb[4].mxu1 %vm1063_vm3, %v8301_v37  ;;  %6226 = vmatprep.mubr.msk.bf16.mxu0 %vm1063_vm3, %v8301_v37  ;;  %v8372_v6 = vpack.c.bf16 %v3431_v38, %v3430_v40 }
 0x62c   : > { %6298 = vmatprep.mubr.msk.bf16.mxu1 %vm1063_vm3, %v8303_v43  ;;  %6327 = vmatpush3.bf16.msra.mxu1 %v8128_v15  ;;  %v3417_v15 = vld [vmem:[#allocation2 + $0x98] sm:$0xff] }
 0x62d   : > { %6328 = vmatprep.subr.bf16.mxu1 %v6810_v32  ;;  %v8334_v46 = vpack.c.bf16 %v3417_v15, %v3416_v34  ;;  %v8384_v15 = vpack.c.bf16 %v3435_v18, %v3434_v10  ;;  %v3436_v34 = vld [vmem:[#allocation2 + $0x180] sm:$0xff] }
 0x62e   : > { %v8394_v33 = vpack.c.bf16 %v3437_v27, %v3436_v34  ;;  %v4637_v10 = vld [vmem:[#allocation2 + $0x79] sm:$0xff]  ;;  %v4639_v34 = vld [vmem:[#allocation2 + $0x91] sm:$0xff] }
 0x630   : > { %6329 = vmatpush3.bf16.msra.mxu1 %v6810_v32  ;;  %v3433_v32 = vld [vmem:[#allocation2 + $0x158] sm:$0xff] }
 0x631   : > { %6362 = vmatprep.subr.bf16.mxu1 %v8319_v62  ;;  %v8382_v48 = vpack.c.bf16 %v3433_v32, %v3432_v57  ;;  %v4638_v32 = vld [vmem:[#allocation2 + $0x81] sm:$0xff]  ;;  %v4640_v57 = vld [vmem:[#allocation2 + $0x99] sm:$0xff] }
 0x632   : > { %6227 = vmatmul.mubr.msk.bf16.gmra.mrb[164].mxu0 %vm1063_vm3, %v8303_v43  ;;  %v4666_v27 = vpack.c.bf16 %v4638_v32, %v4637_v10  ;;  %v4946_v10 = vld [vmem:[#allocation2 + $0x9a] sm:$0xff] }
 0x633   : > { %6299 = vmatmul.mubr.msk.bf16.gmra.mrb[8].mxu1 %vm1063_vm3, %v8321_v22  ;;  %6230 = vmatprep.mubr.msk.bf16.mxu0 %vm1063_vm3, %v8321_v22 }
 0x634   : > { %6302 = vmatprep.mubr.msk.bf16.mxu1 %vm1063_vm3, %v8323_v8 }
 0x63a   : > { %6231 = vmatmul.mubr.msk.bf16.gmra.mrb[168].mxu0 %vm1063_vm3, %v8323_v8 }
 0x63b   : > { %6303 = vmatmul.mubr.msk.bf16.gmra.mrb[12].mxu1 %vm1063_vm3, %v8334_v46  ;;  %6234 = vmatprep.mubr.msk.bf16.mxu0 %vm1063_vm3, %v8334_v46 }
 0x63c   : > { %6306 = vmatprep.mubr.msk.bf16.mxu1 %vm1063_vm3, %v8336_v4 }
 0x642   : > { %6235 = vmatmul.mubr.msk.bf16.gmra.mrb[172].mxu0 %vm1063_vm3, %v8336_v4 }
 0x643   : > { %6307 = vmatmul.mubr.msk.bf16.gmra.mrb[16].mxu1 %vm1063_vm3, %v8346_v61  ;;  %6238 = vmatprep.mubr.msk.bf16.mxu0 %vm1063_vm3, %v8346_v61 }
 0x644   : > { %6310 = vmatprep.mubr.msk.bf16.mxu1 %vm1063_vm3, %v8348_v53 }
 0x64a   : > { %6239 = vmatmul.mubr.msk.bf16.gmra.mrb[176].mxu0 %vm1063_vm3, %v8348_v53 }
 0x64b   : > { %6311 = vmatmul.mubr.msk.bf16.gmra.mrb[20].mxu1 %vm1063_vm3, %v8358_v2  ;;  %6242 = vmatprep.mubr.msk.bf16.mxu0 %vm1063_vm3, %v8358_v2 }
 0x64c   : > { %6314 = vmatprep.mubr.msk.bf16.mxu1 %vm1063_vm3, %v8360_v1 }
 0x652   : > { %6243 = vmatmul.mubr.msk.bf16.gmra.mrb[180].mxu0 %vm1063_vm3, %v8360_v1 }
 0x653   : > { %6315 = vmatmul.mubr.msk.bf16.gmra.mrb[24].mxu1 %vm1063_vm3, %v8370_v41  ;;  %6246 = vmatprep.mubr.msk.bf16.mxu0 %vm1063_vm3, %v8370_v41 }
 0x654   : > { %6318 = vmatprep.mubr.msk.bf16.mxu1 %vm1063_vm3, %v8372_v6 }
 0x65a   : > { %6247 = vmatmul.mubr.msk.bf16.gmra.mrb[184].mxu0 %vm1063_vm3, %v8372_v6 }
 0x65b   : > { %6319 = vmatmul.mubr.msk.bf16.gmra.mrb[28].mxu1 %vm1063_vm3, %v8382_v48  ;;  %6250 = vmatprep.mubr.msk.bf16.mxu0 %vm1063_vm3, %v8382_v48 }
 0x65c   : > { %6322 = vmatprep.mubr.msk.bf16.mxu1 %vm1063_vm3, %v8384_v15 }
 0x662   : > { %6251 = vmatmul.mubr.msk.bf16.gmra.mrb[188].mxu0 %vm1063_vm3, %v8384_v15 }
 0x663   : > { %6323 = vmatmul.mubr.msk.bf16.gmra.mrb[32].mxu1 %vm1063_vm3, %v8394_v33 }
 0x664   : > { %6330 = vmatprep.mubr.msk.bf16.mxu1 %vm1063_vm3, %v8093_v58  ;;  %v3743_v58 = vld [vmem:[#allocation2 + $0x189] sm:$0xff] }
 0x66b   : > { %6331 = vmatmul.mubr.msk.bf16.vlgmr.msra.gmra.mrb[4].mxu1 %vm1063_vm3, %v8098_v11  ;;  %v3742_v11 = vld [vmem:[#allocation2 + $0x181] sm:$0xff] }
 0x66c   : > { %6334 = vmatprep.mubr.msk.bf16.mxu1 %vm1063_vm3, %v8134_v16  ;;  %6363 = vmatpush3.bf16.msra.mxu1 %v8319_v62  ;;  %v8437_v16 = vpack.c.bf16 %v3743_v58, %v3742_v11  ;;  %v4356_v62 = vld [vmem:[#allocation2 + $0x1a0] sm:$0xff]  ;;  %v4644_v11 = vld [vmem:[#allocation2 + $0xc9] sm:$0xff] }
 0x66d   : > { %6364 = vmatprep.subr.bf16.mxu1 %v6812_v24 }
 0x670   : > { %6365 = vmatpush3.bf16.msra.mxu1 %v6812_v24 }
 0x671   : > { %6398 = vmatprep.subr.bf16.mxu1 %v6813_v17 }
 0x673   : > { %6335 = vmatmul.mubr.msk.bf16.gmra.mrb[8].mxu1 %vm1063_vm3, %v8139_v19  ;;  %v6814_v19 = vld [vmem:[%s8776_s10 + $0x68] sm:$0xff]  }
 0x674   : > { %6338 = vmatprep.mubr.msk.bf16.mxu1 %vm1063_vm3, %v8163_v52  ;;  %v6815_v52 = vld [vmem:[%s8776_s10 + $0x70] sm:$0xff]  }
 0x67b   : > { %6339 = vmatmul.mubr.msk.bf16.gmra.mrb[12].mxu1 %vm1063_vm3, %v8168_v45 }
 0x67c   : > { %6342 = vmatprep.mubr.msk.bf16.mxu1 %vm1063_vm3, %v8191_v56 }
 0x683   : > { %6343 = vmatmul.mubr.msk.bf16.gmra.mrb[16].mxu1 %vm1063_vm3, %v8195_v30 }
 0x684   : > { %6346 = vmatprep.mubr.msk.bf16.mxu1 %vm1063_vm3, %v8207_v26 }
 0x68b   : > { %6347 = vmatmul.mubr.msk.bf16.gmra.mrb[20].mxu1 %vm1063_vm3, %v8211_v39 }
 0x68c   : > { %6350 = vmatprep.mubr.msk.bf16.mxu1 %vm1063_vm3, %v8247_v50 }
 0x693   : > { %6351 = vmatmul.mubr.msk.bf16.gmra.mrb[24].mxu1 %vm1063_vm3, %v8252_v21 }
 0x694   : > { %6354 = vmatprep.mubr.msk.bf16.mxu1 %vm1063_vm3, %v8275_v51 }
 0x69b   : > { %6355 = vmatmul.mubr.msk.bf16.gmra.mrb[28].mxu1 %vm1063_vm3, %v8279_v25 }
 0x69c   : > { %6358 = vmatprep.mubr.msk.bf16.mxu1 %vm1063_vm3, %v8291_v42 }
 0x6a3   : > { %6359 = vmatmul.mubr.msk.bf16.gmra.mrb[32].mxu1 %vm1063_vm3, %v8437_v16 }
 0x6a4   : > { %6366 = vmatprep.mubr.msk.bf16.mxu1 %vm1063_vm3, %v8095_v49  ;;  %v4048_v49 = vld [vmem:[#allocation2 + $0x182] sm:$0xff] }
 0x6ab   : > { %6367 = vmatmul.mubr.msk.bf16.vlgmr.msra.gmra.mrb[4].mxu1 %vm1063_vm3, %v8100_v9  ;;  %v4049_v9 = vld [vmem:[#allocation2 + $0x18a] sm:$0xff] }
 0x6ac   : > { %6370 = vmatprep.mubr.msk.bf16.mxu1 %vm1063_vm3, %v8136_v13  ;;  %6399 = vmatpush3.bf16.msra.mxu1 %v6813_v17  ;;  %v8477_v13 = vpack.c.bf16 %v4049_v9, %v4048_v49  ;;  %v4642_v17 = vld [vmem:[#allocation2 + $0xb1] sm:$0xff] }
 0x6ad   : > { %6400 = vmatprep.subr.bf16.mxu1 %v6814_v19 }
 0x6b0   : > { %6401 = vmatpush3.bf16.msra.mxu1 %v6814_v19 }
 0x6b1   : > { %6434 = vmatprep.subr.bf16.mxu1 %v6815_v52 }
 0x6b3   : > { %6371 = vmatmul.mubr.msk.bf16.gmra.mrb[8].mxu1 %vm1063_vm3, %v8141_v60  ;;  %v6816_v60 = vld [vmem:[%s8776_s10 + $0x78] sm:$0xff]  }
 0x6b4   : > { %6374 = vmatprep.mubr.msk.bf16.mxu1 %vm1063_vm3, %v8165_v20  ;;  %v6817_v20 = vld [vmem:[%s8776_s10 + $0x80] sm:$0xff]  }
 0x6bb   : > { %6375 = vmatmul.mubr.msk.bf16.gmra.mrb[12].mxu1 %vm1063_vm3, %v8170_v7 }
 0x6bc   : > { %6378 = vmatprep.mubr.msk.bf16.mxu1 %vm1063_vm3, %v8193_v29 }
 0x6c3   : > { %6379 = vmatmul.mubr.msk.bf16.gmra.mrb[16].mxu1 %vm1063_vm3, %v8197_v31 }
 0x6c4   : > { %6382 = vmatprep.mubr.msk.bf16.mxu1 %vm1063_vm3, %v8209_v35 }
 0x6cb   : > { %6383 = vmatmul.mubr.msk.bf16.gmra.mrb[20].mxu1 %vm1063_vm3, %v8213_v59 }
 0x6cc   : > { %6386 = vmatprep.mubr.msk.bf16.mxu1 %vm1063_vm3, %v8249_v44 }
 0x6d3   : > { %6387 = vmatmul.mubr.msk.bf16.gmra.mrb[24].mxu1 %vm1063_vm3, %v8254_v47 }
 0x6d4   : > { %6390 = vmatprep.mubr.msk.bf16.mxu1 %vm1063_vm3, %v8277_v63 }
 0x6db   : > { %6391 = vmatmul.mubr.msk.bf16.gmra.mrb[28].mxu1 %vm1063_vm3, %v8281_v28 }
 0x6dc   : > { %6394 = vmatprep.mubr.msk.bf16.mxu1 %vm1063_vm3, %v8293_v3 }
 0x6e3   : > { %6395 = vmatmul.mubr.msk.bf16.gmra.mrb[32].mxu1 %vm1063_vm3, %v8477_v13 }
 0x6e4   : > { %6402 = vmatprep.mubr.msk.bf16.mxu1 %vm1063_vm3, %v8301_v37 }
 0x6eb   : > { %6403 = vmatmul.mubr.msk.bf16.vlgmr.msra.gmra.mrb[4].mxu1 %vm1063_vm3, %v8303_v43  ;;  %v4355_v43 = vld [vmem:[#allocation2 + $0x198] sm:$0xff] }
 0x6ec   : > { %6406 = vmatprep.mubr.msk.bf16.mxu1 %vm1063_vm3, %v8321_v22  ;;  %6435 = vmatpush3.bf16.msra.mxu1 %v6815_v52  ;;  %v4641_v52 = vld [vmem:[#allocation2 + $0xa9] sm:$0xff] }
 0x6ed   : > { %6436 = vmatprep.subr.bf16.mxu1 %v6816_v60  ;;  %v4668_v9 = vpack.c.bf16 %v4642_v17, %v4641_v52  ;;  %v4948_v17 = vld [vmem:[#allocation2 + $0xb2] sm:$0xff]  ;;  %v4950_v52 = vld [vmem:[#allocation2 + $0xca] sm:$0xff] }
 0x6f0   : > { %6437 = vmatpush3.bf16.msra.mxu1 %v6816_v60  ;;  %v4643_v60 = vld [vmem:[#allocation2 + $0xc1] sm:$0xff] }
 0x6f1   : > { %6470 = vmatprep.subr.bf16.mxu1 %v6817_v20 }
 0x6f3   : > { %6407 = vmatmul.mubr.msk.bf16.gmra.mrb[8].mxu1 %vm1063_vm3, %v8323_v8 }
 0x6f4   : > { %6410 = vmatprep.mubr.msk.bf16.mxu1 %vm1063_vm3, %v8334_v46  ;;  %v4372_v46 = vpack.c.bf16 %v4356_v62, %v4355_v43  ;;  %v4646_v43 = vld [vmem:[#allocation2 + $0xe1] sm:$0xff]  ;;  %v4648_v62 = vld [vmem:[#allocation2 + $0xf9] sm:$0xff] }
 0x6fb   : > { %6411 = vmatmul.mubr.msk.bf16.gmra.mrb[12].mxu1 %vm1063_vm3, %v8336_v4  ;;  %v4632_v4 = vld [vmem:[#allocation2 + $0x39] sm:$0xff] }
 0x6fc   : > { %6414 = vmatprep.mubr.msk.bf16.mxu1 %vm1063_vm3, %v8346_v61 }
 0x6fd   : > { %v8501_v45 = vpop.f32.mrb[160].mxu0 }
 0x6fe   : > { %v8503_v7 = vpop.f32.mrb[161].mxu0 }
 0x6ff   : > { %v8505_v56 = vpop.f32.mrb[162].mxu0 }
 0x700   : > { %v8507_v29 = vpop.f32.mrb[163].mxu0 }
 0x703   : > { %6415 = vmatmul.mubr.msk.bf16.gmra.mrb[16].mxu1 %vm1063_vm3, %v8348_v53  ;;  %v4663_v53 = vpack.c.bf16 %v4632_v4, %v4631_v36  ;;  %v4647_v36 = vld [vmem:[#allocation2 + $0xf1] sm:$0xff] }
 0x704   : > { %6418 = vmatprep.mubr.msk.bf16.mxu1 %vm1063_vm3, %v8358_v2  ;;  %v4636_v2 = vld [vmem:[#allocation2 + $0x69] sm:$0xff] }
 0x705   : > { %v8513_v30 = vpop.f32.mrb[164].mxu0  ;;  %v4665_v40 = vpack.c.bf16 %v4636_v2, %v4635_v23  ;;  %v4662_v2 = vld [vmem:[#allocation2 + $0x1a1] sm:$0xff] }
 0x706   : > { %v8515_v31 = vpop.f32.mrb[165].mxu0 }
 0x707   : > { %v8517_v26 = vpop.f32.mrb[166].mxu0 }
 0x708   : > { %v8519_v35 = vpop.f32.mrb[167].mxu0 }
 0x70b   : > { %6419 = vmatmul.mubr.msk.bf16.gmra.mrb[20].mxu1 %vm1063_vm3, %v8360_v1  ;;  %v4633_v1 = vld [vmem:[#allocation2 + $0x49] sm:$0xff] }
 0x70c   : > { %6422 = vmatprep.mubr.msk.bf16.mxu1 %vm1063_vm3, %v8370_v41  ;;  %v4664_v38 = vpack.c.bf16 %v4634_v12, %v4633_v1  ;;  %v6818_v41 = vld [vmem:[%s8776_s10 + $0x88] sm:$0xff]   ;;  %v4661_v12 = vld [vmem:[#allocation2 + $0x199] sm:$0xff] }
 0x70d   : > { %v8525_v39 = vpop.f32.mrb[168].mxu0  ;;  %v4678_v1 = vpack.c.bf16 %v4662_v2, %v4661_v12  ;;  %v4956_v12 = vld [vmem:[#allocation2 + $0x112] sm:$0xff]  ;;  %v4957_v2 = vld [vmem:[#allocation2 + $0x122] sm:$0xff] }
 0x70e   : > { %v8527_v59 = vpop.f32.mrb[169].mxu0 }
 0x70f   : > { %v8529_v44 = vpop.f32.mrb[170].mxu0 }
 0x710   : > { %v8531_v47 = vpop.f32.mrb[171].mxu0 }
 0x713   : > { %6423 = vmatmul.mubr.msk.bf16.gmra.mrb[24].mxu1 %vm1063_vm3, %v8372_v6 }
 0x714   : > { %6426 = vmatprep.mubr.msk.bf16.mxu1 %vm1063_vm3, %v8382_v48 }
 0x715   : > { %v8537_v63 = vpop.f32.mrb[172].mxu0 }
 0x716   : > { %v8539_v28 = vpop.f32.mrb[173].mxu0 }
 0x717   : > { %v8541_v3 = vpop.f32.mrb[174].mxu0 }
 0x718   : > { %v8543_v37 = vpop.f32.mrb[175].mxu0 }
 0x71b   : > { %6427 = vmatmul.mubr.msk.bf16.gmra.mrb[28].mxu1 %vm1063_vm3, %v8384_v15 }
 0x71c   : > { %6430 = vmatprep.mubr.msk.bf16.mxu1 %vm1063_vm3, %v8394_v33  ;;  %v4667_v33 = vpack.c.bf16 %v4640_v57, %v4639_v34  ;;  %v4945_v57 = vld [vmem:[#allocation2 + $0x92] sm:$0xff] }
 0x71d   : > { %v8549_v22 = vpop.f32.mrb[176].mxu0  ;;  %v4973_v34 = vpack.c.bf16 %v4946_v10, %v4945_v57  ;;  %v4967_v57 = vld [vmem:[#allocation2 + $0x19a] sm:$0xff]  ;;  %v4968_v10 = vld [vmem:[#allocation2 + $0x1a2] sm:$0xff] }
 0x71e   : > { %v8551_v8 = vpop.f32.mrb[177].mxu0 }
 0x71f   : > { %v8553_v0 = vpop.f32.mrb[178].mxu0 }
 0x720   : > { %v8555_v61 = vpop.f32.mrb[179].mxu0 }
 0x723   : > { %6431 = vmatmul.mubr.msk.bf16.gmra.mrb[32].mxu1 %vm1063_vm3, %v4372_v46  ;;  %v4645_v46 = vld [vmem:[#allocation2 + $0xd9] sm:$0xff] }
 0x724   : > { %6438 = vmatprep.mubr.msk.bf16.mxu1 %vm1063_vm3, %v4663_v53  ;;  %v4670_v4 = vpack.c.bf16 %v4646_v43, %v4645_v46  ;;  %v4671_v53 = vpack.c.bf16 %v4648_v62, %v4647_v36  ;;  %v4952_v43 = vld [vmem:[#allocation2 + $0xe2] sm:$0xff]  ;;  %v4953_v62 = vld [vmem:[#allocation2 + $0xf2] sm:$0xff]  ;;  %v4954_v46 = vld [vmem:[#allocation2 + $0xfa] sm:$0xff] }
 0x725   : > { %v8559_v14 = vpop.f32.mrb[180].mxu0  ;;  %v4977_v36 = vpack.c.bf16 %v4954_v46, %v4953_v62 }
 0x726   : > { %v8561_v55 = vpop.f32.mrb[181].mxu0 }
 0x727   : > { %v8563_v54 = vpop.f32.mrb[182].mxu0 }
 0x728   : > { %v8565_v5 = vpop.f32.mrb[183].mxu0 }
 0x72b   : > { %6439 = vmatmul.mubr.msk.bf16.vlgmr.msra.gmra.mrb[4].mxu1 %vm1063_vm3, %v4664_v38  ;;  %v4937_v38 = vld [vmem:[#allocation2 + $0x32] sm:$0xff] }
 0x72c   : > { %6442 = vmatprep.mubr.msk.bf16.mxu1 %vm1063_vm3, %v4665_v40  ;;  %6471 = vmatpush3.bf16.msra.mxu1 %v6817_v20  ;;  %v4669_v20 = vpack.c.bf16 %v4644_v11, %v4643_v60  ;;  %v4949_v11 = vld [vmem:[#allocation2 + $0xc2] sm:$0xff] }
 0x72d   : > { %6472 = vmatprep.subr.bf16.mxu1 %v6818_v41  ;;  %v8572_v6 = vpop.f32.mrb[184].mxu0  ;;  %v4975_v60 = vpack.c.bf16 %v4950_v52, %v4949_v11 }
 0x72e   : > { %v8574_v18 = vpop.f32.mrb[185].mxu0 }
 0x72f   : > { %v8576_v48 = vpop.f32.mrb[186].mxu0 }
 0x730   : > { %6473 = vmatpush3.bf16.msra.mxu1 %v6818_v41  ;;  %v8578_v15 = vpop.f32.mrb[187].mxu0  ;;  %v4941_v41 = vld [vmem:[#allocation2 + $0x62] sm:$0xff] }
 0x733   : > { %6443 = vmatmul.mubr.msk.bf16.gmra.mrb[8].mxu1 %vm1063_vm3, %v4666_v27 }
 0x734   : > { %6446 = vmatprep.mubr.msk.bf16.mxu1 %vm1063_vm3, %v4667_v33  ;;  %v4947_v33 = vld [vmem:[#allocation2 + $0xaa] sm:$0xff] }
 0x735   : > { %v8582_v24 = vpop.f32.mrb[188].mxu0 }
 0x736   : > { %v8584_v58 = vpop.f32.mrb[189].mxu0 }
 0x737   : > { %v8586_v19 = vpop.f32.mrb[190].mxu0 }
 0x738   : > { %v8588_v49 = vpop.f32.mrb[191].mxu0 }
 0x73b   : > { %6447 = vmatmul.mubr.msk.bf16.gmra.mrb[12].mxu1 %vm1063_vm3, %v4668_v9  ;;  %v4974_v9 = vpack.c.bf16 %v4948_v17, %v4947_v33  ;;  %v8628_v33 = vld [vmem:[%s8777_s11] ss:$0 sm:$0xff] }
 0x73c   : > { %6450 = vmatprep.mubr.msk.bf16.mxu1 %vm1063_vm3, %v4669_v20  ;;  %v4951_v20 = vld [vmem:[#allocation2 + $0xda] sm:$0xff] }
 0x743   : > { %6451 = vmatmul.mubr.msk.bf16.gmra.mrb[16].mxu1 %vm1063_vm3, %v4670_v4  ;;  %v4976_v4 = vpack.c.bf16 %v4952_v43, %v4951_v20 }
 0x744   : > { %6454 = vmatprep.mubr.msk.bf16.mxu1 %vm1063_vm3, %v4671_v53  ;;  %v4955_v53 = vld [vmem:[#allocation2 + $0x10a] sm:$0xff] }
 0x74b   : > { %6455 = vmatmul.mubr.msk.bf16.gmra.mrb[20].mxu1 %vm1063_vm3, %v8247_v50  ;;  %v4938_v50 = vld [vmem:[#allocation2 + $0x3a] sm:$0xff] }
 0x74c   : > { %6458 = vmatprep.mubr.msk.bf16.mxu1 %vm1063_vm3, %v8252_v21  ;;  %v4969_v23 = vpack.c.bf16 %v4938_v50, %v4937_v38  ;;  %v4939_v21 = vld [vmem:[#allocation2 + $0x4a] sm:$0xff]  ;;  %v4978_v38 = vpack.c.bf16 %v4956_v12, %v4955_v53 }
 0x753   : > { %6459 = vmatmul.mubr.msk.bf16.gmra.mrb[24].mxu1 %vm1063_vm3, %v8275_v51  ;;  %v4940_v51 = vld [vmem:[#allocation2 + $0x52] sm:$0xff] }
 0x754   : > { %6462 = vmatprep.mubr.msk.bf16.mxu1 %vm1063_vm3, %v8279_v25  ;;  %v4942_v25 = vld [vmem:[#allocation2 + $0x6a] sm:$0xff]  ;;  %v4970_v40 = vpack.c.bf16 %v4940_v51, %v4939_v21  ;;  %v4960_v21 = vld [vmem:[#allocation2 + $0x142] sm:$0xff]  ;;  %v4961_v51 = vld [vmem:[#allocation2 + $0x152] sm:$0xff] }
 0x755   : > { %v4971_v32 = vpack.c.bf16 %v4942_v25, %v4941_v41  ;;  %v4962_v41 = vld [vmem:[#allocation2 + $0x15a] sm:$0xff] }
 0x75b   : > { %6463 = vmatmul.mubr.msk.bf16.gmra.mrb[28].mxu1 %vm1063_vm3, %v8291_v42  ;;  %v4943_v42 = vld [vmem:[#allocation2 + $0x7a] sm:$0xff] }
 0x75c   : > { %6466 = vmatprep.mubr.msk.bf16.mxu1 %vm1063_vm3, %v8437_v16  ;;  %v4944_v16 = vld [vmem:[#allocation2 + $0x82] sm:$0xff] }
 0x75d   : > { %v4972_v27 = vpack.c.bf16 %v4944_v16, %v4943_v42  ;;  %v4964_v42 = vld [vmem:[#allocation2 + $0x172] sm:$0xff] }
 0x763   : > { %6467 = vmatmul.mubr.msk.bf16.gmra.mrb[32].mxu1 %vm1063_vm3, %v4678_v1  ;;  %v4958_v1 = vld [vmem:[#allocation2 + $0x12a] sm:$0xff] }
 0x764   : > { %6474 = vmatprep.mubr.msk.bf16.mxu1 %vm1063_vm3, %v4969_v23  ;;  %v4979_v50 = vpack.c.bf16 %v4958_v1, %v4957_v2  ;;  %v4959_v23 = vld [vmem:[#allocation2 + $0x13a] sm:$0xff] }
 0x765   : > { %v4980_v25 = vpack.c.bf16 %v4960_v21, %v4959_v23 }
 0x76b   : > { %6475 = vmatmul.mubr.msk.bf16.vlgmr.msra.gmra.mrb[4].mxu1 %vm1063_vm3, %v4970_v40  ;;  %v4981_v40 = vpack.c.bf16 %v4962_v41, %v4961_v51 }
 0x76c   : > { %6478 = vmatprep.mubr.msk.bf16.mxu1 %vm1063_vm3, %v4971_v32  ;;  %v4963_v32 = vld [vmem:[#allocation2 + $0x16a] sm:$0xff] }
 0x76d   : > { %v4982_v16 = vpack.c.bf16 %v4964_v42, %v4963_v32 }
 0x773   : > { %6479 = vmatmul.mubr.msk.bf16.gmra.mrb[8].mxu1 %vm1063_vm3, %v4972_v27  ;;  %v4984_v27 = vpack.c.bf16 %v4968_v10, %v4967_v57 }
 0x774   : > { %6482 = vmatprep.mubr.msk.bf16.mxu1 %vm1063_vm3, %v4973_v34 }
 0x77b   : > { %6483 = vmatmul.mubr.msk.bf16.gmra.mrb[12].mxu1 %vm1063_vm3, %v4974_v9 }
 0x77c   : > { %6486 = vmatprep.mubr.msk.bf16.mxu1 %vm1063_vm3, %v4975_v60 }
 0x783   : > { %6487 = vmatmul.mubr.msk.bf16.gmra.mrb[16].mxu1 %vm1063_vm3, %v4976_v4 }
 0x784   : > { %6490 = vmatprep.mubr.msk.bf16.mxu1 %vm1063_vm3, %v4977_v36 }
 0x78b   : > { %6491 = vmatmul.mubr.msk.bf16.gmra.mrb[20].mxu1 %vm1063_vm3, %v4978_v38 }
 0x78c   : > { %6494 = vmatprep.mubr.msk.bf16.mxu1 %vm1063_vm3, %v4979_v50 }
 0x793   : > { %6495 = vmatmul.mubr.msk.bf16.gmra.mrb[24].mxu1 %vm1063_vm3, %v4980_v25 }
 0x794   : > { %6498 = vmatprep.mubr.msk.bf16.mxu1 %vm1063_vm3, %v4981_v40 }
 0x79b   : > { %6499 = vmatmul.mubr.msk.bf16.gmra.mrb[28].mxu1 %vm1063_vm3, %v4982_v16 }
 0x79c   : > { %6502 = vmatprep.mubr.msk.bf16.mxu1 %vm1063_vm3, %v8477_v13 }
 0x7a3   : > { %6503 = vmatmul.mubr.msk.bf16.gmra.mrb[32].mxu1 %vm1063_vm3, %v4984_v27 }
 0x83e   : > { %v6476_v34 = vpop.f32.mrb[4].mxu1 }
 0x83f   : > { %v6506_v17 = vadd.f32 %v6476_v34, %v8501_v45  ;;  %v5084_v11 = vpop.f32.mrb[5].mxu1 }
 0x840   : > { %v6507_v13 = vadd.f32 %v5084_v11, %v8503_v7  ;;  %v6477_v52 = vpop.f32.mrb[6].mxu1 }
 0x841   : > { %v5252_v9 = vadd.f32 %v6506_v17, %v8628_v33  ;;  %v6508_v60 = vadd.f32 %v6477_v52, %v8505_v56  ;;  %v5087_v20 = vpop.f32.mrb[7].mxu1 }
 0x842   : > { %v5250_v45 = vadd.f32 %v6507_v13, %v8628_v33  ;;  %v6509_v43 = vadd.f32 %v5087_v20, %v8507_v29 }
 0x843   : > { %5285 = vst.msk [vmem:[%s8634_s18 + $0x10] sm:$0xff] %vm5282_vm7, %v5252_v9  ;;  %v5253_v62 = vadd.f32 %v6508_v60, %v8628_v33 }
 0x844   : > { %5283 = vst.msk [vmem:[%s8634_s18] sm:$0xff] %vm5282_vm7, %v5250_v45  ;;  %v5251_v7 = vadd.f32 %v6509_v43, %v8628_v33 }
 0x845   : > { %5286 = vst.msk [vmem:[%s8634_s18 + $0x18] sm:$0xff] %vm5282_vm7, %v5253_v62 }
 0x846   : > { %5284 = vst.msk [vmem:[%s8634_s18 + $0x8] sm:$0xff] %vm5282_vm7, %v5251_v7  ;;  %v6480_v56 = vpop.f32.mrb[8].mxu1 }
 0x847   : > { %v6510_v46 = vadd.f32 %v6480_v56, %v8513_v30  ;;  %v5100_v29 = vpop.f32.mrb[9].mxu1 }
 0x848   : > { %v6511_v4 = vadd.f32 %v5100_v29, %v8515_v31  ;;  %v6481_v36 = vpop.f32.mrb[10].mxu1 }
 0x849   : > { %v5256_v53 = vadd.f32 %v6510_v46, %v8628_v33  ;;  %v6512_v12 = vadd.f32 %v6481_v36, %v8517_v26  ;;  %v5103_v2 = vpop.f32.mrb[11].mxu1 }
 0x84a   : > { %v5254_v1 = vadd.f32 %v6511_v4, %v8628_v33  ;;  %v6513_v38 = vadd.f32 %v5103_v2, %v8519_v35 }
 0x84b   : > { %5289 = vst.msk [vmem:[%s8634_s18 + $0x30] sm:$0xff] %vm5282_vm7, %v5256_v53  ;;  %v5257_v50 = vadd.f32 %v6512_v12, %v8628_v33 }
 0x84c   : > { %5287 = vst.msk [vmem:[%s8634_s18 + $0x20] sm:$0xff] %vm5282_vm7, %v5254_v1  ;;  %v5255_v30 = vadd.f32 %v6513_v38, %v8628_v33 }
 0x84d   : > { %5290 = vst.msk [vmem:[%s8634_s18 + $0x38] sm:$0xff] %vm5282_vm7, %v5257_v50 }
 0x84e   : > { %5288 = vst.msk [vmem:[%s8634_s18 + $0x28] sm:$0xff] %vm5282_vm7, %v5255_v30  ;;  %v6484_v31 = vpop.f32.mrb[12].mxu1 }
 0x84f   : > { %v6514_v26 = vadd.f32 %v6484_v31, %v8525_v39  ;;  %v5116_v35 = vpop.f32.mrb[13].mxu1 }
 0x850   : > { %v6515_v23 = vadd.f32 %v5116_v35, %v8527_v59  ;;  %v6485_v21 = vpop.f32.mrb[14].mxu1 }
 0x851   : > { %v5260_v51 = vadd.f32 %v6514_v26, %v8628_v33  ;;  %v6516_v41 = vadd.f32 %v6485_v21, %v8529_v44  ;;  %v5119_v25 = vpop.f32.mrb[15].mxu1 }
 0x852   : > { %v5258_v40 = vadd.f32 %v6515_v23, %v8628_v33  ;;  %v6517_v32 = vadd.f32 %v5119_v25, %v8531_v47 }
 0x853   : > { %5293 = vst.msk [vmem:[%s8634_s18 + $0x50] sm:$0xff] %vm5282_vm7, %v5260_v51  ;;  %v5261_v42 = vadd.f32 %v6516_v41, %v8628_v33 }
 0x854   : > { %5291 = vst.msk [vmem:[%s8634_s18 + $0x40] sm:$0xff] %vm5282_vm7, %v5258_v40  ;;  %v5259_v39 = vadd.f32 %v6517_v32, %v8628_v33 }
 0x855   : > { %5294 = vst.msk [vmem:[%s8634_s18 + $0x58] sm:$0xff] %vm5282_vm7, %v5261_v42 }
 0x856   : > { %5292 = vst.msk [vmem:[%s8634_s18 + $0x48] sm:$0xff] %vm5282_vm7, %v5259_v39  ;;  %v6488_v59 = vpop.f32.mrb[16].mxu1 }
 0x857   : > { %v6518_v44 = vadd.f32 %v6488_v59, %v8537_v63  ;;  %v5132_v47 = vpop.f32.mrb[17].mxu1 }
 0x858   : > { %v6519_v16 = vadd.f32 %v5132_v47, %v8539_v28  ;;  %v6489_v57 = vpop.f32.mrb[18].mxu1 }
 0x859   : > { %v5264_v10 = vadd.f32 %v6518_v44, %v8628_v33  ;;  %v6520_v27 = vadd.f32 %v6489_v57, %v8541_v3  ;;  %v5135_v34 = vpop.f32.mrb[19].mxu1 }
 0x85a   : > { %v5262_v17 = vadd.f32 %v6519_v16, %v8628_v33  ;;  %v6521_v11 = vadd.f32 %v5135_v34, %v8543_v37 }
 0x85b   : > { %5297 = vst.msk [vmem:[%s8634_s18 + $0x70] sm:$0xff] %vm5282_vm7, %v5264_v10  ;;  %v5265_v13 = vadd.f32 %v6520_v27, %v8628_v33 }
 0x85c   : > { %5295 = vst.msk [vmem:[%s8634_s18 + $0x60] sm:$0xff] %vm5282_vm7, %v5262_v17  ;;  %v5263_v63 = vadd.f32 %v6521_v11, %v8628_v33 }
 0x85d   : > { %5298 = vst.msk [vmem:[%s8634_s18 + $0x78] sm:$0xff] %vm5282_vm7, %v5265_v13 }
 0x85e   : > { %5296 = vst.msk [vmem:[%s8634_s18 + $0x68] sm:$0xff] %vm5282_vm7, %v5263_v63  ;;  %v6492_v28 = vpop.f32.mrb[20].mxu1 }
 0x85f   : > { %v6522_v3 = vadd.f32 %v6492_v28, %v8549_v22  ;;  %v5148_v37 = vpop.f32.mrb[21].mxu1 }
 0x860   : > { %v6523_v52 = vadd.f32 %v5148_v37, %v8551_v8  ;;  %v6493_v9 = vpop.f32.mrb[22].mxu1 }
 0x861   : > { %v5268_v60 = vadd.f32 %v6522_v3, %v8628_v33  ;;  %v6524_v20 = vadd.f32 %v6493_v9, %v8553_v0  ;;  %v5151_v45 = vpop.f32.mrb[23].mxu1 }
 0x862   : > { %v5266_v43 = vadd.f32 %v6523_v52, %v8628_v33  ;;  %v6525_v62 = vadd.f32 %v5151_v45, %v8555_v61 }
 0x863   : > { %5301 = vst.msk [vmem:[%s8634_s18 + $0x90] sm:$0xff] %vm5282_vm7, %v5268_v60  ;;  %v5269_v7 = vadd.f32 %v6524_v20, %v8628_v33 }
 0x864   : > { %5299 = vst.msk [vmem:[%s8634_s18 + $0x80] sm:$0xff] %vm5282_vm7, %v5266_v43  ;;  %v5267_v22 = vadd.f32 %v6525_v62, %v8628_v33 }
 0x865   : > { %5302 = vst.msk [vmem:[%s8634_s18 + $0x98] sm:$0xff] %vm5282_vm7, %v5269_v7 }
 0x866   : > { %5300 = vst.msk [vmem:[%s8634_s18 + $0x88] sm:$0xff] %vm5282_vm7, %v5267_v22  ;;  %v6496_v8 = vpop.f32.mrb[24].mxu1 }
 0x867   : > { %v6526_v0 = vadd.f32 %v6496_v8, %v8559_v14  ;;  %v5164_v61 = vpop.f32.mrb[25].mxu1 }
 0x868   : > { %v6527_v56 = vadd.f32 %v5164_v61, %v8561_v55  ;;  %v6497_v46 = vpop.f32.mrb[26].mxu1 }
 0x869   : > { %v5272_v29 = vadd.f32 %v6526_v0, %v8628_v33  ;;  %v6528_v4 = vadd.f32 %v6497_v46, %v8563_v54  ;;  %v5167_v36 = vpop.f32.mrb[27].mxu1 }
 0x86a   : > { %v5270_v53 = vadd.f32 %v6527_v56, %v8628_v33  ;;  %v6529_v12 = vadd.f32 %v5167_v36, %v8565_v5 }
 0x86b   : > { %5305 = vst.msk [vmem:[%s8634_s18 + $0xb0] sm:$0xff] %vm5282_vm7, %v5272_v29  ;;  %v5273_v2 = vadd.f32 %v6528_v4, %v8628_v33 }
 0x86c   : > { %5303 = vst.msk [vmem:[%s8634_s18 + $0xa0] sm:$0xff] %vm5282_vm7, %v5270_v53  ;;  %v5271_v14 = vadd.f32 %v6529_v12, %v8628_v33 }
 0x86d   : > { %5306 = vst.msk [vmem:[%s8634_s18 + $0xb8] sm:$0xff] %vm5282_vm7, %v5273_v2 }
 0x86e   : > { %5304 = vst.msk [vmem:[%s8634_s18 + $0xa8] sm:$0xff] %vm5282_vm7, %v5271_v14  ;;  %v6500_v55 = vpop.f32.mrb[28].mxu1 }
 0x86f   : > { %v6530_v54 = vadd.f32 %v6500_v55, %v8572_v6  ;;  %v5180_v5 = vpop.f32.mrb[29].mxu1 }
 0x870   : > { %v6531_v1 = vadd.f32 %v5180_v5, %v8574_v18  ;;  %v6501_v38 = vpop.f32.mrb[30].mxu1 }
 0x871   : > { %v5276_v50 = vadd.f32 %v6530_v54, %v8628_v33  ;;  %v6532_v30 = vadd.f32 %v6501_v38, %v8576_v48  ;;  %v5183_v31 = vpop.f32.mrb[31].mxu1 }
 0x872   : > { %v5274_v26 = vadd.f32 %v6531_v1, %v8628_v33  ;;  %v6533_v35 = vadd.f32 %v5183_v31, %v8578_v15 }
 0x873   : > { %5309 = vst.msk [vmem:[%s8634_s18 + $0xd0] sm:$0xff] %vm5282_vm7, %v5276_v50  ;;  %v5277_v23 = vadd.f32 %v6532_v30, %v8628_v33 }
 0x874   : > { %5307 = vst.msk [vmem:[%s8634_s18 + $0xc0] sm:$0xff] %vm5282_vm7, %v5274_v26  ;;  %v5275_v6 = vadd.f32 %v6533_v35, %v8628_v33 }
 0x875   : > { %5310 = vst.msk [vmem:[%s8634_s18 + $0xd8] sm:$0xff] %vm5282_vm7, %v5277_v23 }
 0x876   : > { %5308 = vst.msk [vmem:[%s8634_s18 + $0xc8] sm:$0xff] %vm5282_vm7, %v5275_v6  ;;  %v6504_v18 = vpop.f32.mrb[32].mxu1 }
 0x877   : > { %v6534_v48 = vadd.f32 %v6504_v18, %v8582_v24  ;;  %v5196_v15 = vpop.f32.mrb[33].mxu1 }
 0x878   : > { %v6535_v21 = vadd.f32 %v5196_v15, %v8584_v58  ;;  %v6505_v51 = vpop.f32.mrb[34].mxu1 }
 0x879   : > { %v5280_v41 = vadd.f32 %v6534_v48, %v8628_v33  ;;  %v6536_v25 = vadd.f32 %v6505_v51, %v8586_v19  ;;  %v5199_v40 = vpop.f32.mrb[35].mxu1 }
 0x87a   : > { %v5278_v32 = vadd.f32 %v6535_v21, %v8628_v33  ;;  %v6537_v42 = vadd.f32 %v5199_v40, %v8588_v49 }
 0x87b   : > { %5313 = vst.msk [vmem:[%s8634_s18 + $0xf0] sm:$0xff] %vm5282_vm7, %v5280_v41  ;;  %v5281_v39 = vadd.f32 %v6536_v25, %v8628_v33 }
 0x87c   : > { %5311 = vst.msk [vmem:[%s8634_s18 + $0xe0] sm:$0xff] %vm5282_vm7, %v5278_v32  ;;  %v5279_v24 = vadd.f32 %v6537_v42, %v8628_v33 }
 0x87d   : > { %5314 = vst.msk [vmem:[%s8634_s18 + $0xf8] sm:$0xff] %vm5282_vm7, %v5281_v39 }
 0x87e   : > { %5312 = vst.msk [vmem:[%s8634_s18 + $0xe8] sm:$0xff] %vm5282_vm7, %v5279_v24 }
 0x87f PF: > { %s22_s21 = sadd.s32 1, %s7081_s21  }
 0x880   : > { %p19_p4 = scmp.ge.s32.totalorder %s22_s21, 4  }
 0x882   :  { %21 = sbr.rel (!%p19_p4) target bundleno = 1 (0x1), region = 114 }

</bundles_post_ra>
